<compile_context>
chip_gen: v7x
topology: tpu7x:2x2x1
jax: 0.10.0
libtpu: 0.0.40
codegen_flags: <defaults>
</compile_context>

<pallas_src>
import functools
from math import sqrt

import numpy as np
import jax
import jax.numpy as jnp
from jax.experimental import pallas as pl
from jax.experimental.pallas import tpu as pltpu


# ----------------------------------------------------------------------------
# Moving-average decomposition as a (L, L) mixing matrix (host-side, one time).
#   A @ x == AvgPool1d(replicate_pad(x, (K-1)//2), kernel_size=K, stride=1)
# ----------------------------------------------------------------------------
def _moving_avg_matrix(L, kernel_size):
    pad = (kernel_size - 1) // 2
    A = np.zeros((L, L), np.float32)
    for t in range(L):
        for d in range(-pad, kernel_size - pad):
            j = min(max(t + d, 0), L - 1)
            A[t, j] += 1.0
    return A / np.float32(kernel_size)


# ----------------------------------------------------------------------------
# In-kernel PWattn block (operates on one (R, S) row-block kept in VMEM/vregs).
# ----------------------------------------------------------------------------
def _pwattn_block(x, wq_ref, bq_ref, wk_ref, bk_ref, wv_ref, bv_ref, wo_ref, bo_ref,
                  qbuf, kbuf, vbuf, cbuf, *, n_heads, out_relu):
    """q = relu(x Wq + bq); k = x Wk + bk; v = relu(x Wv + bv);
    per-row H-head attention; out = q + ctx Wo + bo (+ optional relu)."""
    R, S = x.shape
    P = wq_ref.shape[1]
    H = n_heads
    Lq, Lk = P // H, S // H
    scale = 1.0 / sqrt(H)

    xb = x.astype(jnp.bfloat16)   # bf16 operands, f32 accumulation (MXU fast path)
    q = jnp.maximum(
        jnp.dot(xb, wq_ref[...], preferred_element_type=jnp.float32) + bq_ref[...], 0.0)
    k = jnp.dot(xb, wk_ref[...], preferred_element_type=jnp.float32) + bk_ref[...]
    v = jnp.maximum(
        jnp.dot(xb, wv_ref[...], preferred_element_type=jnp.float32) + bv_ref[...], 0.0)

    # Stage q/k/v in VMEM scratch so the 16-lane head chunks become plain ref loads
    # (no value relayouts / lane-splitting reshapes, nothing written back to HBM).
    qbuf[:, :P] = q
    kbuf[:, :S] = k
    vbuf[:, :S] = v

    k_ch = [kbuf[:, s * H:(s + 1) * H] for s in range(Lk)]   # each (R, H)
    v_ch = [vbuf[:, s * H:(s + 1) * H] for s in range(Lk)]

    # Per-head attention on the VPU: the contraction dim (H=16) is far too small
    # for the MXU; everything stays elementwise + lane reductions.
    for l in range(Lq):
        ql = qbuf[:, l * H:(l + 1) * H]                                        # (R, H)
        sc = [jnp.sum(ql * k_ch[s], axis=-1, keepdims=True) * scale            # (R, 1)
              for s in range(Lk)]
        mx = sc[0]
        for s in range(1, Lk):
            mx = jnp.maximum(mx, sc[s])
        p = [jnp.exp(t - mx) for t in sc]
        den = p[0]
        for s in range(1, Lk):
            den = den + p[s]
        inv = pl.reciprocal(den, approx=True)                                   # EUP slot
        ctx_l = (p[0] * inv) * v_ch[0]
        for s in range(1, Lk):
            ctx_l = ctx_l + (p[s] * inv) * v_ch[s]
        cbuf[:, l * H:(l + 1) * H] = ctx_l

    ctx = cbuf[:, :P]                                                           # (R, P)
    out = q + jnp.dot(ctx.astype(jnp.bfloat16), wo_ref[...],
                      preferred_element_type=jnp.float32) + bo_ref[...]
    if out_relu:
        out = jnp.maximum(out, 0.0)
    return out


# ----------------------------------------------------------------------------
# Fused EncoderLayer kernel: decomp1 -> relu(ff1) -> ff2 -> decomp2, one batch
# element per grid step, all intermediates resident in VMEM.
# ----------------------------------------------------------------------------
def _encoder_layer_kernel(
        x_ref, nx_ref, a_ref,
        wq1, bq1, wk1, bk1, wv1, bv1, wo1, bo1,
        wq2, bq2, wk2, bk2, wv2, bv2, wo2, bo2,
        o_ref,
        qbuf, kbuf, vbuf, cbuf,
        *, n_heads):
    a = a_ref[...]                                                      # (L, L) avg weights
    z = x_ref[0].astype(jnp.float32) + nx_ref[0].astype(jnp.float32)    # x + new_x  (L, D)
    # decomp1 residual: z - A @ z  (tiny matmul kept in f32; negligible work)
    x1 = z - jnp.dot(a, z, preferred_element_type=jnp.float32)

    y = _pwattn_block(x1, wq1, bq1, wk1, bk1, wv1, bv1, wo1, bo1,
                      qbuf, kbuf, vbuf, cbuf, n_heads=n_heads, out_relu=True)   # relu(ff1)
    # TODO(synk): activation='gelu' variant would swap the fused relu for jax.nn.gelu.
    y = _pwattn_block(y, wq2, bq2, wk2, bk2, wv2, bv2, wo2, bo2,
                      qbuf, kbuf, vbuf, cbuf, n_heads=n_heads, out_relu=False)  # ff2

    z2 = x1 + y
    res = z2 - jnp.dot(a, z2, preferred_element_type=jnp.float32)       # decomp2 residual
    o_ref[0] = res.astype(o_ref.dtype)


# ----------------------------------------------------------------------------
# Wrappers
# ----------------------------------------------------------------------------
def prepare_params(raw):
    """One-time parameter prep: transpose weights to (in, out), cast to bf16,
    reshape biases to (1, out) f32 — keeps transposes off the per-forward hot path."""
    def prep(p):
        return dict(
            wq=jnp.asarray(p['wq'].T, jnp.bfloat16),
            bq=jnp.asarray(p['bq'], jnp.float32).reshape(1, -1),
            wk=jnp.asarray(p['wk'].T, jnp.bfloat16),
            bk=jnp.asarray(p['bk'], jnp.float32).reshape(1, -1),
            wv=jnp.asarray(p['wv'].T, jnp.bfloat16),
            bv=jnp.asarray(p['bv'], jnp.float32).reshape(1, -1),
            wo=jnp.asarray(p['wo'].T, jnp.bfloat16),
            bo=jnp.asarray(p['bo'], jnp.float32).reshape(1, -1),
        )
    return {'ff1': prep(raw['ff1']), 'ff2': prep(raw['ff2'])}


def encoder_layer_forward(x, new_x, params, *, kernel_size=25, n_heads=16):
    """Fused EncoderLayer forward. `params` must come from prepare_params()."""
    # TODO(synk): the injected `attention` module (constructor argument) is external;
    # its output new_x = attention(x, x, x, attn_mask)[0] is taken as an input.
    # All dropout layers are identity (eval-mode forward).
    B, L, D = x.shape
    f1, f2 = params['ff1'], params['ff2']
    F = f1['wq'].shape[1]                              # d_ff
    assert D % n_heads == 0 and F % n_heads == 0
    assert f2['wq'].shape == (F, D)

    A = jnp.asarray(_moving_avg_matrix(L, kernel_size))
    Fmax = max(D, F)

    def full(arr):
        zeros = (0,) * arr.ndim
        return pl.BlockSpec(arr.shape, lambda b: zeros)

    weight_args = (f1['wq'], f1['bq'], f1['wk'], f1['bk'], f1['wv'], f1['bv'], f1['wo'], f1['bo'],
                   f2['wq'], f2['bq'], f2['wk'], f2['bk'], f2['wv'], f2['bv'], f2['wo'], f2['bo'])

    # TODO(synk): at production sizes on v7x (64 MiB VMEM) mark the grid-invariant
    # weight specs pipeline_mode=pl.Buffered(1) to skip double-buffering; irrelevant
    # at these shapes.
    kern = functools.partial(_encoder_layer_kernel, n_heads=n_heads)
    return pl.pallas_call(
        kern,
        out_shape=jax.ShapeDtypeStruct((B, L, D), x.dtype),
        grid_spec=pltpu.PrefetchScalarGridSpec(
            num_scalar_prefetch=0,
            grid=(B,),                                  # parallel over batch (2 -> both v7x TCs)
            in_specs=[
                pl.BlockSpec((1, L, D), lambda b: (b, 0, 0)),
                pl.BlockSpec((1, L, D), lambda b: (b, 0, 0)),
                full(A),
                *[full(w) for w in weight_args],
            ],
            out_specs=pl.BlockSpec((1, L, D), lambda b: (b, 0, 0)),
            scratch_shapes=[pltpu.VMEM((L, Fmax), jnp.float32) for _ in range(4)],
        ),
        compiler_params=pltpu.CompilerParams(dimension_semantics=("parallel",)),
    )(x, new_x, A, *weight_args)


# ----------------------------------------------------------------------------
# Pure-JAX f32 reference (mirrors the PyTorch module, eval mode)
# ----------------------------------------------------------------------------
def _moving_avg_ref(x, kernel_size):
    pad = (kernel_size - 1) // 2
    front = jnp.repeat(x[:, 0:1, :], pad, axis=1)
    end = jnp.repeat(x[:, -1:, :], pad, axis=1)
    xp = jnp.concatenate([front, x, end], axis=1)
    L = x.shape[1]
    return jnp.stack([xp[:, t:t + kernel_size, :].mean(axis=1) for t in range(L)], axis=1)


def _pwattn_ref(x, p, H):
    q = jax.nn.relu(x @ p['wq'].T + p['bq'])
    k = x @ p['wk'].T + p['bk']
    v = jax.nn.relu(x @ p['wv'].T + p['bv'])
    N, P = q.shape
    S = x.shape[1]
    q3 = q.reshape(N, P // H, H)
    k3 = k.reshape(N, S // H, H)
    v3 = v.reshape(N, S // H, H)
    scores = jnp.einsum('ble,bse->bls', q3, k3)
    Aw = jax.nn.softmax(scores / sqrt(H), axis=-1)
    V = jnp.einsum('bls,bse->ble', Aw, v3).reshape(N, P)
    return q + V @ p['wo'].T + p['bo']


def encoder_layer_ref(x, new_x, raw_params, kernel_size, H):
    x1 = x + new_x
    x1 = x1 - _moving_avg_ref(x1, kernel_size)
    B, n_vars, D = x.shape
    y = x1.reshape(B * n_vars, D)
    y = jax.nn.relu(_pwattn_ref(y, raw_params['ff1'], H))
    y = _pwattn_ref(y, raw_params['ff2'], H)
    y = y.reshape(B, n_vars, D)
    z = x1 + y
    return z - _moving_avg_ref(z, kernel_size)


# ----------------------------------------------------------------------------
# main
# ----------------------------------------------------------------------------
if __name__ == "__main__":
    B, n_vars, d_model = 2, 8, 32
    d_ff = 4 * d_model          # EncoderLayer default d_ff = 4 * d_model = 128
    H = 16                      # PWattn default n_heads
    K = 25                      # default moving_avg kernel size

    key = jax.random.PRNGKey(0)
    ks = jax.random.split(key, 18)

    def linear_init(kw, kb, out_f, in_f):
        bound = 1.0 / sqrt(in_f)
        w = jax.random.uniform(kw, (out_f, in_f), jnp.float32, -bound, bound)
        b = jax.random.uniform(kb, (out_f,), jnp.float32, -bound, bound)
        return w, b

    def pwattn_init(keys8, seq_len, pred_len):
        wq, bq = linear_init(keys8[0], keys8[1], pred_len, seq_len)
        wk, bk = linear_init(keys8[2], keys8[3], seq_len, seq_len)
        wv, bv = linear_init(keys8[4], keys8[5], seq_len, seq_len)
        wo, bo = linear_init(keys8[6], keys8[7], pred_len, pred_len)
        return dict(wq=wq, bq=bq, wk=wk, bk=bk, wv=wv, bv=bv, wo=wo, bo=bo)

    x = jax.random.normal(ks[0], (B, n_vars, d_model), jnp.float32)
    new_x = 0.1 * jax.random.normal(ks[1], (B, n_vars, d_model), jnp.float32)

    raw_params = {
        'ff1': pwattn_init(ks[2:10], d_model, d_ff),
        'ff2': pwattn_init(ks[10:18], d_ff, d_model),
    }
    params = prepare_params(raw_params)     # one-time transpose + bf16 cast

    fwd = jax.jit(functools.partial(encoder_layer_forward, kernel_size=K, n_heads=H))
    out = jax.block_until_ready(fwd(x, new_x, params))

    ref = encoder_layer_ref(x, new_x, raw_params, K, H)
    assert out.shape == (B, n_vars, d_model)
    max_err = float(jnp.max(jnp.abs(out - ref)))
    # bf16 MXU operands (f32 accumulation) + approx-reciprocal softmax bound the error
    # at the ~1e-2 level vs the pure-f32 reference; genuine bugs would show up as O(1).
    assert jnp.allclose(out, ref, atol=5e-2, rtol=5e-2), \
        f"mismatch vs reference, max_err={max_err}"

    print("KERNEL_OK")
</pallas_src>

<mosaic_0001>
module attributes {stable_mosaic.version = 11 : i64} {
  func.func @_encoder_layer_kernel(%arg0: i32, %arg1: memref<1x8x32xf32, #tpu.memory_space<vmem>>, %arg2: memref<1x8x32xf32, #tpu.memory_space<vmem>>, %arg3: memref<8x8xf32, #tpu.memory_space<vmem>>, %arg4: memref<32x128xbf16, #tpu.memory_space<vmem>>, %arg5: memref<1x128xf32, #tpu.memory_space<vmem>>, %arg6: memref<32x32xbf16, #tpu.memory_space<vmem>>, %arg7: memref<1x32xf32, #tpu.memory_space<vmem>>, %arg8: memref<32x32xbf16, #tpu.memory_space<vmem>>, %arg9: memref<1x32xf32, #tpu.memory_space<vmem>>, %arg10: memref<128x128xbf16, #tpu.memory_space<vmem>>, %arg11: memref<1x128xf32, #tpu.memory_space<vmem>>, %arg12: memref<128x32xbf16, #tpu.memory_space<vmem>>, %arg13: memref<1x32xf32, #tpu.memory_space<vmem>>, %arg14: memref<128x128xbf16, #tpu.memory_space<vmem>>, %arg15: memref<1x128xf32, #tpu.memory_space<vmem>>, %arg16: memref<128x128xbf16, #tpu.memory_space<vmem>>, %arg17: memref<1x128xf32, #tpu.memory_space<vmem>>, %arg18: memref<32x32xbf16, #tpu.memory_space<vmem>>, %arg19: memref<1x32xf32, #tpu.memory_space<vmem>>, %arg20: memref<1x8x32xf32, #tpu.memory_space<vmem>>, %arg21: memref<8x128xf32, #tpu.memory_space<vmem>>, %arg22: memref<8x128xf32, #tpu.memory_space<vmem>>, %arg23: memref<8x128xf32, #tpu.memory_space<vmem>>, %arg24: memref<8x128xf32, #tpu.memory_space<vmem>>) attributes {dimension_semantics = [#tpu.dimension_semantics<parallel>], iteration_bounds = array<i64: 2>, scalar_prefetch = 0 : i64, scratch_operands = 4 : i64, tpu.core_type = #tpu.core_type<tc>, window_params = [{transform_indices = @transform_0, window_bounds = array<i64: 1, 8, 32>}, {transform_indices = @transform_1, window_bounds = array<i64: 1, 8, 32>}, {pipeline_mode = #tpu.pipeline_mode<synchronous>, transform_indices = @transform_2, window_bounds = array<i64: 8, 8>}, {pipeline_mode = #tpu.pipeline_mode<synchronous>, transform_indices = @transform_3, window_bounds = array<i64: 32, 128>}, {pipeline_mode = #tpu.pipeline_mode<synchronous>, transform_indices = @transform_4, window_bounds = array<i64: 1, 128>}, {pipeline_mode = #tpu.pipeline_mode<synchronous>, transform_indices = @transform_5, window_bounds = array<i64: 32, 32>}, {pipeline_mode = #tpu.pipeline_mode<synchronous>, transform_indices = @transform_6, window_bounds = array<i64: 1, 32>}, {pipeline_mode = #tpu.pipeline_mode<synchronous>, transform_indices = @transform_7, window_bounds = array<i64: 32, 32>}, {pipeline_mode = #tpu.pipeline_mode<synchronous>, transform_indices = @transform_8, window_bounds = array<i64: 1, 32>}, {pipeline_mode = #tpu.pipeline_mode<synchronous>, transform_indices = @transform_9, window_bounds = array<i64: 128, 128>}, {pipeline_mode = #tpu.pipeline_mode<synchronous>, transform_indices = @transform_10, window_bounds = array<i64: 1, 128>}, {pipeline_mode = #tpu.pipeline_mode<synchronous>, transform_indices = @transform_11, window_bounds = array<i64: 128, 32>}, {pipeline_mode = #tpu.pipeline_mode<synchronous>, transform_indices = @transform_12, window_bounds = array<i64: 1, 32>}, {pipeline_mode = #tpu.pipeline_mode<synchronous>, transform_indices = @transform_13, window_bounds = array<i64: 128, 128>}, {pipeline_mode = #tpu.pipeline_mode<synchronous>, transform_indices = @transform_14, window_bounds = array<i64: 1, 128>}, {pipeline_mode = #tpu.pipeline_mode<synchronous>, transform_indices = @transform_15, window_bounds = array<i64: 128, 128>}, {pipeline_mode = #tpu.pipeline_mode<synchronous>, transform_indices = @transform_16, window_bounds = array<i64: 1, 128>}, {pipeline_mode = #tpu.pipeline_mode<synchronous>, transform_indices = @transform_17, window_bounds = array<i64: 32, 32>}, {pipeline_mode = #tpu.pipeline_mode<synchronous>, transform_indices = @transform_18, window_bounds = array<i64: 1, 32>}, {transform_indices = @transform_19, window_bounds = array<i64: 1, 8, 32>}]} {
    %c0 = arith.constant 0 : index
    %c0_0 = arith.constant 0 : index
    %0 = vector.load %arg3[%c0, %c0_0] : memref<8x8xf32, #tpu.memory_space<vmem>>, vector<8x8xf32>
    %c0_1 = arith.constant 0 : index
    %c0_2 = arith.constant 0 : index
    %c0_3 = arith.constant 0 : index
    %1 = vector.load %arg1[%c0_1, %c0_2, %c0_3] : memref<1x8x32xf32, #tpu.memory_space<vmem>>, vector<1x8x32xf32>
    %2 = vector.shape_cast %1 : vector<1x8x32xf32> to vector<8x32xf32>
    %c0_4 = arith.constant 0 : index
    %c0_5 = arith.constant 0 : index
    %c0_6 = arith.constant 0 : index
    %3 = vector.load %arg2[%c0_4, %c0_5, %c0_6] : memref<1x8x32xf32, #tpu.memory_space<vmem>>, vector<1x8x32xf32>
    %4 = vector.shape_cast %3 : vector<1x8x32xf32> to vector<8x32xf32>
    %5 = arith.addf %2, %4 : vector<8x32xf32>
    %cst = arith.constant dense<0.000000e+00> : vector<8x32xf32>
    %6 = tpu.matmul %0, %5, %cst {dimension_numbers = #tpu.dot_dimension_numbers<[1], [0], [0], [1], [0, 0, 1, 1], [], []>} : vector<8x8xf32>, vector<8x32xf32>, vector<8x32xf32> -> vector<8x32xf32>
    %7 = arith.subf %5, %6 : vector<8x32xf32>
    %8 = arith.truncf %7 : vector<8x32xf32> to vector<8x32xbf16>
    %c0_7 = arith.constant 0 : index
    %c0_8 = arith.constant 0 : index
    %9 = vector.load %arg4[%c0_7, %c0_8] : memref<32x128xbf16, #tpu.memory_space<vmem>>, vector<32x128xbf16>
    %cst_9 = arith.constant dense<0.000000e+00> : vector<8x128xf32>
    %10 = tpu.matmul %8, %9, %cst_9 {dimension_numbers = #tpu.dot_dimension_numbers<[1], [0], [0], [1], [0, 0, 1, 1], [], []>} : vector<8x32xbf16>, vector<32x128xbf16>, vector<8x128xf32> -> vector<8x128xf32>
    %c0_10 = arith.constant 0 : index
    %c0_11 = arith.constant 0 : index
    %11 = vector.load %arg5[%c0_10, %c0_11] : memref<1x128xf32, #tpu.memory_space<vmem>>, vector<1x128xf32>
    %12 = vector.broadcast %11 : vector<1x128xf32> to vector<8x128xf32>
    %13 = arith.addf %10, %12 : vector<8x128xf32>
    %cst_12 = arith.constant 0.000000e+00 : f32
    %14 = vector.broadcast %cst_12 : f32 to vector<8x128xf32>
    %15 = arith.maximumf %13, %14 : vector<8x128xf32>
    %c0_13 = arith.constant 0 : index
    %c0_14 = arith.constant 0 : index
    %16 = vector.load %arg6[%c0_13, %c0_14] : memref<32x32xbf16, #tpu.memory_space<vmem>>, vector<32x32xbf16>
    %cst_15 = arith.constant dense<0.000000e+00> : vector<8x32xf32>
    %17 = tpu.matmul %8, %16, %cst_15 {dimension_numbers = #tpu.dot_dimension_numbers<[1], [0], [0], [1], [0, 0, 1, 1], [], []>} : vector<8x32xbf16>, vector<32x32xbf16>, vector<8x32xf32> -> vector<8x32xf32>
    %c0_16 = arith.constant 0 : index
    %c0_17 = arith.constant 0 : index
    %18 = vector.load %arg7[%c0_16, %c0_17] : memref<1x32xf32, #tpu.memory_space<vmem>>, vector<1x32xf32>
    %19 = vector.broadcast %18 : vector<1x32xf32> to vector<8x32xf32>
    %20 = arith.addf %17, %19 : vector<8x32xf32>
    %c0_18 = arith.constant 0 : index
    %c0_19 = arith.constant 0 : index
    %21 = vector.load %arg8[%c0_18, %c0_19] : memref<32x32xbf16, #tpu.memory_space<vmem>>, vector<32x32xbf16>
    %cst_20 = arith.constant dense<0.000000e+00> : vector<8x32xf32>
    %22 = tpu.matmul %8, %21, %cst_20 {dimension_numbers = #tpu.dot_dimension_numbers<[1], [0], [0], [1], [0, 0, 1, 1], [], []>} : vector<8x32xbf16>, vector<32x32xbf16>, vector<8x32xf32> -> vector<8x32xf32>
    %c0_21 = arith.constant 0 : index
    %c0_22 = arith.constant 0 : index
    %23 = vector.load %arg9[%c0_21, %c0_22] : memref<1x32xf32, #tpu.memory_space<vmem>>, vector<1x32xf32>
    %24 = vector.broadcast %23 : vector<1x32xf32> to vector<8x32xf32>
    %25 = arith.addf %22, %24 : vector<8x32xf32>
    %cst_23 = arith.constant 0.000000e+00 : f32
    %26 = vector.broadcast %cst_23 : f32 to vector<8x32xf32>
    %27 = arith.maximumf %25, %26 : vector<8x32xf32>
    %c0_24 = arith.constant 0 : index
    %c0_25 = arith.constant 0 : index
    %28 = vector.load %arg21[%c0_24, %c0_25] : memref<8x128xf32, #tpu.memory_space<vmem>>, vector<8x128xf32>
    tpu.vector_store %arg21[%c0_24, %c0_25], %15 {strides = array<i32>} : memref<8x128xf32, #tpu.memory_space<vmem>>, vector<8x128xf32>,
    %c0_26 = arith.constant 0 : index
    %c0_27 = arith.constant 0 : index
    %29 = vector.load %arg22[%c0_26, %c0_27] : memref<8x128xf32, #tpu.memory_space<vmem>>, vector<8x32xf32>
    tpu.vector_store %arg22[%c0_26, %c0_27], %20 {strides = array<i32>} : memref<8x128xf32, #tpu.memory_space<vmem>>, vector<8x32xf32>,
    %c0_28 = arith.constant 0 : index
    %c0_29 = arith.constant 0 : index
    %30 = vector.load %arg23[%c0_28, %c0_29] : memref<8x128xf32, #tpu.memory_space<vmem>>, vector<8x32xf32>
    tpu.vector_store %arg23[%c0_28, %c0_29], %27 {strides = array<i32>} : memref<8x128xf32, #tpu.memory_space<vmem>>, vector<8x32xf32>,
    %c0_30 = arith.constant 0 : index
    %c0_31 = arith.constant 0 : index
    %31 = vector.load %arg22[%c0_30, %c0_31] : memref<8x128xf32, #tpu.memory_space<vmem>>, vector<8x16xf32>
    %c0_32 = arith.constant 0 : index
    %c16 = arith.constant 16 : index
    %32 = vector.load %arg22[%c0_32, %c16] : memref<8x128xf32, #tpu.memory_space<vmem>>, vector<8x16xf32>
    %c0_33 = arith.constant 0 : index
    %c0_34 = arith.constant 0 : index
    %33 = vector.load %arg23[%c0_33, %c0_34] : memref<8x128xf32, #tpu.memory_space<vmem>>, vector<8x16xf32>
    %c0_35 = arith.constant 0 : index
    %c16_36 = arith.constant 16 : index
    %34 = vector.load %arg23[%c0_35, %c16_36] : memref<8x128xf32, #tpu.memory_space<vmem>>, vector<8x16xf32>
    %c0_37 = arith.constant 0 : index
    %c0_38 = arith.constant 0 : index
    %35 = vector.load %arg21[%c0_37, %c0_38] : memref<8x128xf32, #tpu.memory_space<vmem>>, vector<8x16xf32>
    %36 = arith.mulf %35, %31 : vector<8x16xf32>
    %cst_39 = arith.constant dense<0.000000e+00> : vector<8xf32>
    %37 = vector.multi_reduction <add>, %36, %cst_39 [1] : vector<8x16xf32> to vector<8xf32>
    %38 = vector.shape_cast %37 : vector<8xf32> to vector<8x1xf32>
    %cst_40 = arith.constant 2.500000e-01 : f32
    %39 = vector.broadcast %cst_40 : f32 to vector<8x1xf32>
    %40 = arith.mulf %38, %39 : vector<8x1xf32>
    %41 = arith.mulf %35, %32 : vector<8x16xf32>
    %cst_41 = arith.constant dense<0.000000e+00> : vector<8xf32>
    %42 = vector.multi_reduction <add>, %41, %cst_41 [1] : vector<8x16xf32> to vector<8xf32>
    %43 = vector.shape_cast %42 : vector<8xf32> to vector<8x1xf32>
    %cst_42 = arith.constant 2.500000e-01 : f32
    %44 = vector.broadcast %cst_42 : f32 to vector<8x1xf32>
    %45 = arith.mulf %43, %44 : vector<8x1xf32>
    %46 = arith.maximumf %40, %45 : vector<8x1xf32>
    %47 = arith.subf %40, %46 : vector<8x1xf32>
    %48 = math.exp %47 : vector<8x1xf32>
    %49 = arith.subf %45, %46 : vector<8x1xf32>
    %50 = math.exp %49 : vector<8x1xf32>
    %51 = arith.addf %48, %50 : vector<8x1xf32>
    %52 = tpu.reciprocal %51 {approx = true} : vector<8x1xf32> -> vector<8x1xf32>
    %53 = arith.mulf %48, %52 : vector<8x1xf32>
    %54 = vector.broadcast %53 : vector<8x1xf32> to vector<8x16xf32>
    %55 = arith.mulf %54, %33 : vector<8x16xf32>
    %56 = arith.mulf %50, %52 : vector<8x1xf32>
    %57 = vector.broadcast %56 : vector<8x1xf32> to vector<8x16xf32>
    %58 = arith.mulf %57, %34 : vector<8x16xf32>
    %59 = arith.addf %55, %58 : vector<8x16xf32>
    %c0_43 = arith.constant 0 : index
    %c0_44 = arith.constant 0 : index
    %60 = vector.load %arg24[%c0_43, %c0_44] : memref<8x128xf32, #tpu.memory_space<vmem>>, vector<8x16xf32>
    tpu.vector_store %arg24[%c0_43, %c0_44], %59 {strides = array<i32>} : memref<8x128xf32, #tpu.memory_space<vmem>>, vector<8x16xf32>,
    %c0_45 = arith.constant 0 : index
    %c16_46 = arith.constant 16 : index
    %61 = vector.load %arg21[%c0_45, %c16_46] : memref<8x128xf32, #tpu.memory_space<vmem>>, vector<8x16xf32>
    %62 = arith.mulf %61, %31 : vector<8x16xf32>
    %cst_47 = arith.constant dense<0.000000e+00> : vector<8xf32>
    %63 = vector.multi_reduction <add>, %62, %cst_47 [1] : vector<8x16xf32> to vector<8xf32>
    %64 = vector.shape_cast %63 : vector<8xf32> to vector<8x1xf32>
    %cst_48 = arith.constant 2.500000e-01 : f32
    %65 = vector.broadcast %cst_48 : f32 to vector<8x1xf32>
    %66 = arith.mulf %64, %65 : vector<8x1xf32>
    %67 = arith.mulf %61, %32 : vector<8x16xf32>
    %cst_49 = arith.constant dense<0.000000e+00> : vector<8xf32>
    %68 = vector.multi_reduction <add>, %67, %cst_49 [1] : vector<8x16xf32> to vector<8xf32>
    %69 = vector.shape_cast %68 : vector<8xf32> to vector<8x1xf32>
    %cst_50 = arith.constant 2.500000e-01 : f32
    %70 = vector.broadcast %cst_50 : f32 to vector<8x1xf32>
    %71 = arith.mulf %69, %70 : vector<8x1xf32>
    %72 = arith.maximumf %66, %71 : vector<8x1xf32>
    %73 = arith.subf %66, %72 : vector<8x1xf32>
    %74 = math.exp %73 : vector<8x1xf32>
    %75 = arith.subf %71, %72 : vector<8x1xf32>
    %76 = math.exp %75 : vector<8x1xf32>
    %77 = arith.addf %74, %76 : vector<8x1xf32>
    %78 = tpu.reciprocal %77 {approx = true} : vector<8x1xf32> -> vector<8x1xf32>
    %79 = arith.mulf %74, %78 : vector<8x1xf32>
    %80 = vector.broadcast %79 : vector<8x1xf32> to vector<8x16xf32>
    %81 = arith.mulf %80, %33 : vector<8x16xf32>
    %82 = arith.mulf %76, %78 : vector<8x1xf32>
    %83 = vector.broadcast %82 : vector<8x1xf32> to vector<8x16xf32>
    %84 = arith.mulf %83, %34 : vector<8x16xf32>
    %85 = arith.addf %81, %84 : vector<8x16xf32>
    %c0_51 = arith.constant 0 : index
    %c16_52 = arith.constant 16 : index
    %86 = vector.load %arg24[%c0_51, %c16_52] : memref<8x128xf32, #tpu.memory_space<vmem>>, vector<8x16xf32>
    tpu.vector_store %arg24[%c0_51, %c16_52], %85 {strides = array<i32>} : memref<8x128xf32, #tpu.memory_space<vmem>>, vector<8x16xf32>,
    %c0_53 = arith.constant 0 : index
    %c32 = arith.constant 32 : index
    %87 = vector.load %arg21[%c0_53, %c32] : memref<8x128xf32, #tpu.memory_space<vmem>>, vector<8x16xf32>
    %88 = arith.mulf %87, %31 : vector<8x16xf32>
    %cst_54 = arith.constant dense<0.000000e+00> : vector<8xf32>
    %89 = vector.multi_reduction <add>, %88, %cst_54 [1] : vector<8x16xf32> to vector<8xf32>
    %90 = vector.shape_cast %89 : vector<8xf32> to vector<8x1xf32>
    %cst_55 = arith.constant 2.500000e-01 : f32
    %91 = vector.broadcast %cst_55 : f32 to vector<8x1xf32>
    %92 = arith.mulf %90, %91 : vector<8x1xf32>
    %93 = arith.mulf %87, %32 : vector<8x16xf32>
    %cst_56 = arith.constant dense<0.000000e+00> : vector<8xf32>
    %94 = vector.multi_reduction <add>, %93, %cst_56 [1] : vector<8x16xf32> to vector<8xf32>
    %95 = vector.shape_cast %94 : vector<8xf32> to vector<8x1xf32>
    %cst_57 = arith.constant 2.500000e-01 : f32
    %96 = vector.broadcast %cst_57 : f32 to vector<8x1xf32>
    %97 = arith.mulf %95, %96 : vector<8x1xf32>
    %98 = arith.maximumf %92, %97 : vector<8x1xf32>
    %99 = arith.subf %92, %98 : vector<8x1xf32>
    %100 = math.exp %99 : vector<8x1xf32>
    %101 = arith.subf %97, %98 : vector<8x1xf32>
    %102 = math.exp %101 : vector<8x1xf32>
    %103 = arith.addf %100, %102 : vector<8x1xf32>
    %104 = tpu.reciprocal %103 {approx = true} : vector<8x1xf32> -> vector<8x1xf32>
    %105 = arith.mulf %100, %104 : vector<8x1xf32>
    %106 = vector.broadcast %105 : vector<8x1xf32> to vector<8x16xf32>
    %107 = arith.mulf %106, %33 : vector<8x16xf32>
    %108 = arith.mulf %102, %104 : vector<8x1xf32>
    %109 = vector.broadcast %108 : vector<8x1xf32> to vector<8x16xf32>
    %110 = arith.mulf %109, %34 : vector<8x16xf32>
    %111 = arith.addf %107, %110 : vector<8x16xf32>
    %c0_58 = arith.constant 0 : index
    %c32_59 = arith.constant 32 : index
    %112 = vector.load %arg24[%c0_58, %c32_59] : memref<8x128xf32, #tpu.memory_space<vmem>>, vector<8x16xf32>
    tpu.vector_store %arg24[%c0_58, %c32_59], %111 {strides = array<i32>} : memref<8x128xf32, #tpu.memory_space<vmem>>, vector<8x16xf32>,
    %c0_60 = arith.constant 0 : index
    %c48 = arith.constant 48 : index
    %113 = vector.load %arg21[%c0_60, %c48] : memref<8x128xf32, #tpu.memory_space<vmem>>, vector<8x16xf32>
    %114 = arith.mulf %113, %31 : vector<8x16xf32>
    %cst_61 = arith.constant dense<0.000000e+00> : vector<8xf32>
    %115 = vector.multi_reduction <add>, %114, %cst_61 [1] : vector<8x16xf32> to vector<8xf32>
    %116 = vector.shape_cast %115 : vector<8xf32> to vector<8x1xf32>
    %cst_62 = arith.constant 2.500000e-01 : f32
    %117 = vector.broadcast %cst_62 : f32 to vector<8x1xf32>
    %118 = arith.mulf %116, %117 : vector<8x1xf32>
    %119 = arith.mulf %113, %32 : vector<8x16xf32>
    %cst_63 = arith.constant dense<0.000000e+00> : vector<8xf32>
    %120 = vector.multi_reduction <add>, %119, %cst_63 [1] : vector<8x16xf32> to vector<8xf32>
    %121 = vector.shape_cast %120 : vector<8xf32> to vector<8x1xf32>
    %cst_64 = arith.constant 2.500000e-01 : f32
    %122 = vector.broadcast %cst_64 : f32 to vector<8x1xf32>
    %123 = arith.mulf %121, %122 : vector<8x1xf32>
    %124 = arith.maximumf %118, %123 : vector<8x1xf32>
    %125 = arith.subf %118, %124 : vector<8x1xf32>
    %126 = math.exp %125 : vector<8x1xf32>
    %127 = arith.subf %123, %124 : vector<8x1xf32>
    %128 = math.exp %127 : vector<8x1xf32>
    %129 = arith.addf %126, %128 : vector<8x1xf32>
    %130 = tpu.reciprocal %129 {approx = true} : vector<8x1xf32> -> vector<8x1xf32>
    %131 = arith.mulf %126, %130 : vector<8x1xf32>
    %132 = vector.broadcast %131 : vector<8x1xf32> to vector<8x16xf32>
    %133 = arith.mulf %132, %33 : vector<8x16xf32>
    %134 = arith.mulf %128, %130 : vector<8x1xf32>
    %135 = vector.broadcast %134 : vector<8x1xf32> to vector<8x16xf32>
    %136 = arith.mulf %135, %34 : vector<8x16xf32>
    %137 = arith.addf %133, %136 : vector<8x16xf32>
    %c0_65 = arith.constant 0 : index
    %c48_66 = arith.constant 48 : index
    %138 = vector.load %arg24[%c0_65, %c48_66] : memref<8x128xf32, #tpu.memory_space<vmem>>, vector<8x16xf32>
    tpu.vector_store %arg24[%c0_65, %c48_66], %137 {strides = array<i32>} : memref<8x128xf32, #tpu.memory_space<vmem>>, vector<8x16xf32>,
    %c0_67 = arith.constant 0 : index
    %c64 = arith.constant 64 : index
    %139 = vector.load %arg21[%c0_67, %c64] : memref<8x128xf32, #tpu.memory_space<vmem>>, vector<8x16xf32>
    %140 = arith.mulf %139, %31 : vector<8x16xf32>
    %cst_68 = arith.constant dense<0.000000e+00> : vector<8xf32>
    %141 = vector.multi_reduction <add>, %140, %cst_68 [1] : vector<8x16xf32> to vector<8xf32>
    %142 = vector.shape_cast %141 : vector<8xf32> to vector<8x1xf32>
    %cst_69 = arith.constant 2.500000e-01 : f32
    %143 = vector.broadcast %cst_69 : f32 to vector<8x1xf32>
    %144 = arith.mulf %142, %143 : vector<8x1xf32>
    %145 = arith.mulf %139, %32 : vector<8x16xf32>
    %cst_70 = arith.constant dense<0.000000e+00> : vector<8xf32>
    %146 = vector.multi_reduction <add>, %145, %cst_70 [1] : vector<8x16xf32> to vector<8xf32>
    %147 = vector.shape_cast %146 : vector<8xf32> to vector<8x1xf32>
    %cst_71 = arith.constant 2.500000e-01 : f32
    %148 = vector.broadcast %cst_71 : f32 to vector<8x1xf32>
    %149 = arith.mulf %147, %148 : vector<8x1xf32>
    %150 = arith.maximumf %144, %149 : vector<8x1xf32>
    %151 = arith.subf %144, %150 : vector<8x1xf32>
    %152 = math.exp %151 : vector<8x1xf32>
    %153 = arith.subf %149, %150 : vector<8x1xf32>
    %154 = math.exp %153 : vector<8x1xf32>
    %155 = arith.addf %152, %154 : vector<8x1xf32>
    %156 = tpu.reciprocal %155 {approx = true} : vector<8x1xf32> -> vector<8x1xf32>
    %157 = arith.mulf %152, %156 : vector<8x1xf32>
    %158 = vector.broadcast %157 : vector<8x1xf32> to vector<8x16xf32>
    %159 = arith.mulf %158, %33 : vector<8x16xf32>
    %160 = arith.mulf %154, %156 : vector<8x1xf32>
    %161 = vector.broadcast %160 : vector<8x1xf32> to vector<8x16xf32>
    %162 = arith.mulf %161, %34 : vector<8x16xf32>
    %163 = arith.addf %159, %162 : vector<8x16xf32>
    %c0_72 = arith.constant 0 : index
    %c64_73 = arith.constant 64 : index
    %164 = vector.load %arg24[%c0_72, %c64_73] : memref<8x128xf32, #tpu.memory_space<vmem>>, vector<8x16xf32>
    tpu.vector_store %arg24[%c0_72, %c64_73], %163 {strides = array<i32>} : memref<8x128xf32, #tpu.memory_space<vmem>>, vector<8x16xf32>,
    %c0_74 = arith.constant 0 : index
    %c80 = arith.constant 80 : index
    %165 = vector.load %arg21[%c0_74, %c80] : memref<8x128xf32, #tpu.memory_space<vmem>>, vector<8x16xf32>
    %166 = arith.mulf %165, %31 : vector<8x16xf32>
    %cst_75 = arith.constant dense<0.000000e+00> : vector<8xf32>
    %167 = vector.multi_reduction <add>, %166, %cst_75 [1] : vector<8x16xf32> to vector<8xf32>
    %168 = vector.shape_cast %167 : vector<8xf32> to vector<8x1xf32>
    %cst_76 = arith.constant 2.500000e-01 : f32
    %169 = vector.broadcast %cst_76 : f32 to vector<8x1xf32>
    %170 = arith.mulf %168, %169 : vector<8x1xf32>
    %171 = arith.mulf %165, %32 : vector<8x16xf32>
    %cst_77 = arith.constant dense<0.000000e+00> : vector<8xf32>
    %172 = vector.multi_reduction <add>, %171, %cst_77 [1] : vector<8x16xf32> to vector<8xf32>
    %173 = vector.shape_cast %172 : vector<8xf32> to vector<8x1xf32>
    %cst_78 = arith.constant 2.500000e-01 : f32
    %174 = vector.broadcast %cst_78 : f32 to vector<8x1xf32>
    %175 = arith.mulf %173, %174 : vector<8x1xf32>
    %176 = arith.maximumf %170, %175 : vector<8x1xf32>
    %177 = arith.subf %170, %176 : vector<8x1xf32>
    %178 = math.exp %177 : vector<8x1xf32>
    %179 = arith.subf %175, %176 : vector<8x1xf32>
    %180 = math.exp %179 : vector<8x1xf32>
    %181 = arith.addf %178, %180 : vector<8x1xf32>
    %182 = tpu.reciprocal %181 {approx = true} : vector<8x1xf32> -> vector<8x1xf32>
    %183 = arith.mulf %178, %182 : vector<8x1xf32>
    %184 = vector.broadcast %183 : vector<8x1xf32> to vector<8x16xf32>
    %185 = arith.mulf %184, %33 : vector<8x16xf32>
    %186 = arith.mulf %180, %182 : vector<8x1xf32>
    %187 = vector.broadcast %186 : vector<8x1xf32> to vector<8x16xf32>
    %188 = arith.mulf %187, %34 : vector<8x16xf32>
    %189 = arith.addf %185, %188 : vector<8x16xf32>
    %c0_79 = arith.constant 0 : index
    %c80_80 = arith.constant 80 : index
    %190 = vector.load %arg24[%c0_79, %c80_80] : memref<8x128xf32, #tpu.memory_space<vmem>>, vector<8x16xf32>
    tpu.vector_store %arg24[%c0_79, %c80_80], %189 {strides = array<i32>} : memref<8x128xf32, #tpu.memory_space<vmem>>, vector<8x16xf32>,
    %c0_81 = arith.constant 0 : index
    %c96 = arith.constant 96 : index
    %191 = vector.load %arg21[%c0_81, %c96] : memref<8x128xf32, #tpu.memory_space<vmem>>, vector<8x16xf32>
    %192 = arith.mulf %191, %31 : vector<8x16xf32>
    %cst_82 = arith.constant dense<0.000000e+00> : vector<8xf32>
    %193 = vector.multi_reduction <add>, %192, %cst_82 [1] : vector<8x16xf32> to vector<8xf32>
    %194 = vector.shape_cast %193 : vector<8xf32> to vector<8x1xf32>
    %cst_83 = arith.constant 2.500000e-01 : f32
    %195 = vector.broadcast %cst_83 : f32 to vector<8x1xf32>
    %196 = arith.mulf %194, %195 : vector<8x1xf32>
    %197 = arith.mulf %191, %32 : vector<8x16xf32>
    %cst_84 = arith.constant dense<0.000000e+00> : vector<8xf32>
    %198 = vector.multi_reduction <add>, %197, %cst_84 [1] : vector<8x16xf32> to vector<8xf32>
    %199 = vector.shape_cast %198 : vector<8xf32> to vector<8x1xf32>
    %cst_85 = arith.constant 2.500000e-01 : f32
    %200 = vector.broadcast %cst_85 : f32 to vector<8x1xf32>
    %201 = arith.mulf %199, %200 : vector<8x1xf32>
    %202 = arith.maximumf %196, %201 : vector<8x1xf32>
    %203 = arith.subf %196, %202 : vector<8x1xf32>
    %204 = math.exp %203 : vector<8x1xf32>
    %205 = arith.subf %201, %202 : vector<8x1xf32>
    %206 = math.exp %205 : vector<8x1xf32>
    %207 = arith.addf %204, %206 : vector<8x1xf32>
    %208 = tpu.reciprocal %207 {approx = true} : vector<8x1xf32> -> vector<8x1xf32>
    %209 = arith.mulf %204, %208 : vector<8x1xf32>
    %210 = vector.broadcast %209 : vector<8x1xf32> to vector<8x16xf32>
    %211 = arith.mulf %210, %33 : vector<8x16xf32>
    %212 = arith.mulf %206, %208 : vector<8x1xf32>
    %213 = vector.broadcast %212 : vector<8x1xf32> to vector<8x16xf32>
    %214 = arith.mulf %213, %34 : vector<8x16xf32>
    %215 = arith.addf %211, %214 : vector<8x16xf32>
    %c0_86 = arith.constant 0 : index
    %c96_87 = arith.constant 96 : index
    %216 = vector.load %arg24[%c0_86, %c96_87] : memref<8x128xf32, #tpu.memory_space<vmem>>, vector<8x16xf32>
    tpu.vector_store %arg24[%c0_86, %c96_87], %215 {strides = array<i32>} : memref<8x128xf32, #tpu.memory_space<vmem>>, vector<8x16xf32>,
    %c0_88 = arith.constant 0 : index
    %c112 = arith.constant 112 : index
    %217 = vector.load %arg21[%c0_88, %c112] : memref<8x128xf32, #tpu.memory_space<vmem>>, vector<8x16xf32>
    %218 = arith.mulf %217, %31 : vector<8x16xf32>
    %cst_89 = arith.constant dense<0.000000e+00> : vector<8xf32>
    %219 = vector.multi_reduction <add>, %218, %cst_89 [1] : vector<8x16xf32> to vector<8xf32>
    %220 = vector.shape_cast %219 : vector<8xf32> to vector<8x1xf32>
    %cst_90 = arith.constant 2.500000e-01 : f32
    %221 = vector.broadcast %cst_90 : f32 to vector<8x1xf32>
    %222 = arith.mulf %220, %221 : vector<8x1xf32>
    %223 = arith.mulf %217, %32 : vector<8x16xf32>
    %cst_91 = arith.constant dense<0.000000e+00> : vector<8xf32>
    %224 = vector.multi_reduction <add>, %223, %cst_91 [1] : vector<8x16xf32> to vector<8xf32>
    %225 = vector.shape_cast %224 : vector<8xf32> to vector<8x1xf32>
    %cst_92 = arith.constant 2.500000e-01 : f32
    %226 = vector.broadcast %cst_92 : f32 to vector<8x1xf32>
    %227 = arith.mulf %225, %226 : vector<8x1xf32>
    %228 = arith.maximumf %222, %227 : vector<8x1xf32>
    %229 = arith.subf %222, %228 : vector<8x1xf32>
    %230 = math.exp %229 : vector<8x1xf32>
    %231 = arith.subf %227, %228 : vector<8x1xf32>
    %232 = math.exp %231 : vector<8x1xf32>
    %233 = arith.addf %230, %232 : vector<8x1xf32>
    %234 = tpu.reciprocal %233 {approx = true} : vector<8x1xf32> -> vector<8x1xf32>
    %235 = arith.mulf %230, %234 : vector<8x1xf32>
    %236 = vector.broadcast %235 : vector<8x1xf32> to vector<8x16xf32>
    %237 = arith.mulf %236, %33 : vector<8x16xf32>
    %238 = arith.mulf %232, %234 : vector<8x1xf32>
    %239 = vector.broadcast %238 : vector<8x1xf32> to vector<8x16xf32>
    %240 = arith.mulf %239, %34 : vector<8x16xf32>
    %241 = arith.addf %237, %240 : vector<8x16xf32>
    %c0_93 = arith.constant 0 : index
    %c112_94 = arith.constant 112 : index
    %242 = vector.load %arg24[%c0_93, %c112_94] : memref<8x128xf32, #tpu.memory_space<vmem>>, vector<8x16xf32>
    tpu.vector_store %arg24[%c0_93, %c112_94], %241 {strides = array<i32>} : memref<8x128xf32, #tpu.memory_space<vmem>>, vector<8x16xf32>,
    %c0_95 = arith.constant 0 : index
    %c0_96 = arith.constant 0 : index
    %243 = vector.load %arg24[%c0_95, %c0_96] : memref<8x128xf32, #tpu.memory_space<vmem>>, vector<8x128xf32>
    %244 = arith.truncf %243 : vector<8x128xf32> to vector<8x128xbf16>
    %c0_97 = arith.constant 0 : index
    %c0_98 = arith.constant 0 : index
    %245 = vector.load %arg10[%c0_97, %c0_98] : memref<128x128xbf16, #tpu.memory_space<vmem>>, vector<128x128xbf16>
    %cst_99 = arith.constant dense<0.000000e+00> : vector<8x128xf32>
    %246 = tpu.matmul %244, %245, %cst_99 {dimension_numbers = #tpu.dot_dimension_numbers<[1], [0], [0], [1], [0, 0, 1, 1], [], []>} : vector<8x128xbf16>, vector<128x128xbf16>, vector<8x128xf32> -> vector<8x128xf32>
    %247 = arith.addf %15, %246 : vector<8x128xf32>
    %c0_100 = arith.constant 0 : index
    %c0_101 = arith.constant 0 : index
    %248 = vector.load %arg11[%c0_100, %c0_101] : memref<1x128xf32, #tpu.memory_space<vmem>>, vector<1x128xf32>
    %249 = vector.broadcast %248 : vector<1x128xf32> to vector<8x128xf32>
    %250 = arith.addf %247, %249 : vector<8x128xf32>
    %cst_102 = arith.constant 0.000000e+00 : f32
    %251 = vector.broadcast %cst_102 : f32 to vector<8x128xf32>
    %252 = arith.maximumf %250, %251 : vector<8x128xf32>
    %253 = arith.truncf %252 : vector<8x128xf32> to vector<8x128xbf16>
    %c0_103 = arith.constant 0 : index
    %c0_104 = arith.constant 0 : index
    %254 = vector.load %arg12[%c0_103, %c0_104] : memref<128x32xbf16, #tpu.memory_space<vmem>>, vector<128x32xbf16>
    %cst_105 = arith.constant dense<0.000000e+00> : vector<8x32xf32>
    %255 = tpu.matmul %253, %254, %cst_105 {dimension_numbers = #tpu.dot_dimension_numbers<[1], [0], [0], [1], [0, 0, 1, 1], [], []>} : vector<8x128xbf16>, vector<128x32xbf16>, vector<8x32xf32> -> vector<8x32xf32>
    %c0_106 = arith.constant 0 : index
    %c0_107 = arith.constant 0 : index
    %256 = vector.load %arg13[%c0_106, %c0_107] : memref<1x32xf32, #tpu.memory_space<vmem>>, vector<1x32xf32>
    %257 = vector.broadcast %256 : vector<1x32xf32> to vector<8x32xf32>
    %258 = arith.addf %255, %257 : vector<8x32xf32>
    %cst_108 = arith.constant 0.000000e+00 : f32
    %259 = vector.broadcast %cst_108 : f32 to vector<8x32xf32>
    %260 = arith.maximumf %258, %259 : vector<8x32xf32>
    %c0_109 = arith.constant 0 : index
    %c0_110 = arith.constant 0 : index
    %261 = vector.load %arg14[%c0_109, %c0_110] : memref<128x128xbf16, #tpu.memory_space<vmem>>, vector<128x128xbf16>
    %cst_111 = arith.constant dense<0.000000e+00> : vector<8x128xf32>
    %262 = tpu.matmul %253, %261, %cst_111 {dimension_numbers = #tpu.dot_dimension_numbers<[1], [0], [0], [1], [0, 0, 1, 1], [], []>} : vector<8x128xbf16>, vector<128x128xbf16>, vector<8x128xf32> -> vector<8x128xf32>
    %c0_112 = arith.constant 0 : index
    %c0_113 = arith.constant 0 : index
    %263 = vector.load %arg15[%c0_112, %c0_113] : memref<1x128xf32, #tpu.memory_space<vmem>>, vector<1x128xf32>
    %264 = vector.broadcast %263 : vector<1x128xf32> to vector<8x128xf32>
    %265 = arith.addf %262, %264 : vector<8x128xf32>
    %c0_114 = arith.constant 0 : index
    %c0_115 = arith.constant 0 : index
    %266 = vector.load %arg16[%c0_114, %c0_115] : memref<128x128xbf16, #tpu.memory_space<vmem>>, vector<128x128xbf16>
    %cst_116 = arith.constant dense<0.000000e+00> : vector<8x128xf32>
    %267 = tpu.matmul %253, %266, %cst_116 {dimension_numbers = #tpu.dot_dimension_numbers<[1], [0], [0], [1], [0, 0, 1, 1], [], []>} : vector<8x128xbf16>, vector<128x128xbf16>, vector<8x128xf32> -> vector<8x128xf32>
    %c0_117 = arith.constant 0 : index
    %c0_118 = arith.constant 0 : index
    %268 = vector.load %arg17[%c0_117, %c0_118] : memref<1x128xf32, #tpu.memory_space<vmem>>, vector<1x128xf32>
    %269 = vector.broadcast %268 : vector<1x128xf32> to vector<8x128xf32>
    %270 = arith.addf %267, %269 : vector<8x128xf32>
    %cst_119 = arith.constant 0.000000e+00 : f32
    %271 = vector.broadcast %cst_119 : f32 to vector<8x128xf32>
    %272 = arith.maximumf %270, %271 : vector<8x128xf32>
    %c0_120 = arith.constant 0 : index
    %c0_121 = arith.constant 0 : index
    %273 = vector.load %arg21[%c0_120, %c0_121] : memref<8x128xf32, #tpu.memory_space<vmem>>, vector<8x32xf32>
    tpu.vector_store %arg21[%c0_120, %c0_121], %260 {strides = array<i32>} : memref<8x128xf32, #tpu.memory_space<vmem>>, vector<8x32xf32>,
    %c0_122 = arith.constant 0 : index
    %c0_123 = arith.constant 0 : index
    %274 = vector.load %arg22[%c0_122, %c0_123] : memref<8x128xf32, #tpu.memory_space<vmem>>, vector<8x128xf32>
    tpu.vector_store %arg22[%c0_122, %c0_123], %265 {strides = array<i32>} : memref<8x128xf32, #tpu.memory_space<vmem>>, vector<8x128xf32>,
    %c0_124 = arith.constant 0 : index
    %c0_125 = arith.constant 0 : index
    %275 = vector.load %arg23[%c0_124, %c0_125] : memref<8x128xf32, #tpu.memory_space<vmem>>, vector<8x128xf32>
    tpu.vector_store %arg23[%c0_124, %c0_125], %272 {strides = array<i32>} : memref<8x128xf32, #tpu.memory_space<vmem>>, vector<8x128xf32>,
    %c0_126 = arith.constant 0 : index
    %c0_127 = arith.constant 0 : index
    %276 = vector.load %arg22[%c0_126, %c0_127] : memref<8x128xf32, #tpu.memory_space<vmem>>, vector<8x16xf32>
    %c0_128 = arith.constant 0 : index
    %c16_129 = arith.constant 16 : index
    %277 = vector.load %arg22[%c0_128, %c16_129] : memref<8x128xf32, #tpu.memory_space<vmem>>, vector<8x16xf32>
    %c0_130 = arith.constant 0 : index
    %c32_131 = arith.constant 32 : index
    %278 = vector.load %arg22[%c0_130, %c32_131] : memref<8x128xf32, #tpu.memory_space<vmem>>, vector<8x16xf32>
    %c0_132 = arith.constant 0 : index
    %c48_133 = arith.constant 48 : index
    %279 = vector.load %arg22[%c0_132, %c48_133] : memref<8x128xf32, #tpu.memory_space<vmem>>, vector<8x16xf32>
    %c0_134 = arith.constant 0 : index
    %c64_135 = arith.constant 64 : index
    %280 = vector.load %arg22[%c0_134, %c64_135] : memref<8x128xf32, #tpu.memory_space<vmem>>, vector<8x16xf32>
    %c0_136 = arith.constant 0 : index
    %c80_137 = arith.constant 80 : index
    %281 = vector.load %arg22[%c0_136, %c80_137] : memref<8x128xf32, #tpu.memory_space<vmem>>, vector<8x16xf32>
    %c0_138 = arith.constant 0 : index
    %c96_139 = arith.constant 96 : index
    %282 = vector.load %arg22[%c0_138, %c96_139] : memref<8x128xf32, #tpu.memory_space<vmem>>, vector<8x16xf32>
    %c0_140 = arith.constant 0 : index
    %c112_141 = arith.constant 112 : index
    %283 = vector.load %arg22[%c0_140, %c112_141] : memref<8x128xf32, #tpu.memory_space<vmem>>, vector<8x16xf32>
    %c0_142 = arith.constant 0 : index
    %c0_143 = arith.constant 0 : index
    %284 = vector.load %arg23[%c0_142, %c0_143] : memref<8x128xf32, #tpu.memory_space<vmem>>, vector<8x16xf32>
    %c0_144 = arith.constant 0 : index
    %c16_145 = arith.constant 16 : index
    %285 = vector.load %arg23[%c0_144, %c16_145] : memref<8x128xf32, #tpu.memory_space<vmem>>, vector<8x16xf32>
    %c0_146 = arith.constant 0 : index
    %c32_147 = arith.constant 32 : index
    %286 = vector.load %arg23[%c0_146, %c32_147] : memref<8x128xf32, #tpu.memory_space<vmem>>, vector<8x16xf32>
    %c0_148 = arith.constant 0 : index
    %c48_149 = arith.constant 48 : index
    %287 = vector.load %arg23[%c0_148, %c48_149] : memref<8x128xf32, #tpu.memory_space<vmem>>, vector<8x16xf32>
    %c0_150 = arith.constant 0 : index
    %c64_151 = arith.constant 64 : index
    %288 = vector.load %arg23[%c0_150, %c64_151] : memref<8x128xf32, #tpu.memory_space<vmem>>, vector<8x16xf32>
    %c0_152 = arith.constant 0 : index
    %c80_153 = arith.constant 80 : index
    %289 = vector.load %arg23[%c0_152, %c80_153] : memref<8x128xf32, #tpu.memory_space<vmem>>, vector<8x16xf32>
    %c0_154 = arith.constant 0 : index
    %c96_155 = arith.constant 96 : index
    %290 = vector.load %arg23[%c0_154, %c96_155] : memref<8x128xf32, #tpu.memory_space<vmem>>, vector<8x16xf32>
    %c0_156 = arith.constant 0 : index
    %c112_157 = arith.constant 112 : index
    %291 = vector.load %arg23[%c0_156, %c112_157] : memref<8x128xf32, #tpu.memory_space<vmem>>, vector<8x16xf32>
    %c0_158 = arith.constant 0 : index
    %c0_159 = arith.constant 0 : index
    %292 = vector.load %arg21[%c0_158, %c0_159] : memref<8x128xf32, #tpu.memory_space<vmem>>, vector<8x16xf32>
    %293 = arith.mulf %292, %276 : vector<8x16xf32>
    %cst_160 = arith.constant dense<0.000000e+00> : vector<8xf32>
    %294 = vector.multi_reduction <add>, %293, %cst_160 [1] : vector<8x16xf32> to vector<8xf32>
    %295 = vector.shape_cast %294 : vector<8xf32> to vector<8x1xf32>
    %cst_161 = arith.constant 2.500000e-01 : f32
    %296 = vector.broadcast %cst_161 : f32 to vector<8x1xf32>
    %297 = arith.mulf %295, %296 : vector<8x1xf32>
    %298 = arith.mulf %292, %277 : vector<8x16xf32>
    %cst_162 = arith.constant dense<0.000000e+00> : vector<8xf32>
    %299 = vector.multi_reduction <add>, %298, %cst_162 [1] : vector<8x16xf32> to vector<8xf32>
    %300 = vector.shape_cast %299 : vector<8xf32> to vector<8x1xf32>
    %cst_163 = arith.constant 2.500000e-01 : f32
    %301 = vector.broadcast %cst_163 : f32 to vector<8x1xf32>
    %302 = arith.mulf %300, %301 : vector<8x1xf32>
    %303 = arith.mulf %292, %278 : vector<8x16xf32>
    %cst_164 = arith.constant dense<0.000000e+00> : vector<8xf32>
    %304 = vector.multi_reduction <add>, %303, %cst_164 [1] : vector<8x16xf32> to vector<8xf32>
    %305 = vector.shape_cast %304 : vector<8xf32> to vector<8x1xf32>
    %cst_165 = arith.constant 2.500000e-01 : f32
    %306 = vector.broadcast %cst_165 : f32 to vector<8x1xf32>
    %307 = arith.mulf %305, %306 : vector<8x1xf32>
    %308 = arith.mulf %292, %279 : vector<8x16xf32>
    %cst_166 = arith.constant dense<0.000000e+00> : vector<8xf32>
    %309 = vector.multi_reduction <add>, %308, %cst_166 [1] : vector<8x16xf32> to vector<8xf32>
    %310 = vector.shape_cast %309 : vector<8xf32> to vector<8x1xf32>
    %cst_167 = arith.constant 2.500000e-01 : f32
    %311 = vector.broadcast %cst_167 : f32 to vector<8x1xf32>
    %312 = arith.mulf %310, %311 : vector<8x1xf32>
    %313 = arith.mulf %292, %280 : vector<8x16xf32>
    %cst_168 = arith.constant dense<0.000000e+00> : vector<8xf32>
    %314 = vector.multi_reduction <add>, %313, %cst_168 [1] : vector<8x16xf32> to vector<8xf32>
    %315 = vector.shape_cast %314 : vector<8xf32> to vector<8x1xf32>
    %cst_169 = arith.constant 2.500000e-01 : f32
    %316 = vector.broadcast %cst_169 : f32 to vector<8x1xf32>
    %317 = arith.mulf %315, %316 : vector<8x1xf32>
    %318 = arith.mulf %292, %281 : vector<8x16xf32>
    %cst_170 = arith.constant dense<0.000000e+00> : vector<8xf32>
    %319 = vector.multi_reduction <add>, %318, %cst_170 [1] : vector<8x16xf32> to vector<8xf32>
    %320 = vector.shape_cast %319 : vector<8xf32> to vector<8x1xf32>
    %cst_171 = arith.constant 2.500000e-01 : f32
    %321 = vector.broadcast %cst_171 : f32 to vector<8x1xf32>
    %322 = arith.mulf %320, %321 : vector<8x1xf32>
    %323 = arith.mulf %292, %282 : vector<8x16xf32>
    %cst_172 = arith.constant dense<0.000000e+00> : vector<8xf32>
    %324 = vector.multi_reduction <add>, %323, %cst_172 [1] : vector<8x16xf32> to vector<8xf32>
    %325 = vector.shape_cast %324 : vector<8xf32> to vector<8x1xf32>
    %cst_173 = arith.constant 2.500000e-01 : f32
    %326 = vector.broadcast %cst_173 : f32 to vector<8x1xf32>
    %327 = arith.mulf %325, %326 : vector<8x1xf32>
    %328 = arith.mulf %292, %283 : vector<8x16xf32>
    %cst_174 = arith.constant dense<0.000000e+00> : vector<8xf32>
    %329 = vector.multi_reduction <add>, %328, %cst_174 [1] : vector<8x16xf32> to vector<8xf32>
    %330 = vector.shape_cast %329 : vector<8xf32> to vector<8x1xf32>
    %cst_175 = arith.constant 2.500000e-01 : f32
    %331 = vector.broadcast %cst_175 : f32 to vector<8x1xf32>
    %332 = arith.mulf %330, %331 : vector<8x1xf32>
    %333 = arith.maximumf %297, %302 : vector<8x1xf32>
    %334 = arith.maximumf %333, %307 : vector<8x1xf32>
    %335 = arith.maximumf %334, %312 : vector<8x1xf32>
    %336 = arith.maximumf %335, %317 : vector<8x1xf32>
    %337 = arith.maximumf %336, %322 : vector<8x1xf32>
    %338 = arith.maximumf %337, %327 : vector<8x1xf32>
    %339 = arith.maximumf %338, %332 : vector<8x1xf32>
    %340 = arith.subf %297, %339 : vector<8x1xf32>
    %341 = math.exp %340 : vector<8x1xf32>
    %342 = arith.subf %302, %339 : vector<8x1xf32>
    %343 = math.exp %342 : vector<8x1xf32>
    %344 = arith.subf %307, %339 : vector<8x1xf32>
    %345 = math.exp %344 : vector<8x1xf32>
    %346 = arith.subf %312, %339 : vector<8x1xf32>
    %347 = math.exp %346 : vector<8x1xf32>
    %348 = arith.subf %317, %339 : vector<8x1xf32>
    %349 = math.exp %348 : vector<8x1xf32>
    %350 = arith.subf %322, %339 : vector<8x1xf32>
    %351 = math.exp %350 : vector<8x1xf32>
    %352 = arith.subf %327, %339 : vector<8x1xf32>
    %353 = math.exp %352 : vector<8x1xf32>
    %354 = arith.subf %332, %339 : vector<8x1xf32>
    %355 = math.exp %354 : vector<8x1xf32>
    %356 = arith.addf %341, %343 : vector<8x1xf32>
    %357 = arith.addf %356, %345 : vector<8x1xf32>
    %358 = arith.addf %357, %347 : vector<8x1xf32>
    %359 = arith.addf %358, %349 : vector<8x1xf32>
    %360 = arith.addf %359, %351 : vector<8x1xf32>
    %361 = arith.addf %360, %353 : vector<8x1xf32>
    %362 = arith.addf %361, %355 : vector<8x1xf32>
    %363 = tpu.reciprocal %362 {approx = true} : vector<8x1xf32> -> vector<8x1xf32>
    %364 = arith.mulf %341, %363 : vector<8x1xf32>
    %365 = vector.broadcast %364 : vector<8x1xf32> to vector<8x16xf32>
    %366 = arith.mulf %365, %284 : vector<8x16xf32>
    %367 = arith.mulf %343, %363 : vector<8x1xf32>
    %368 = vector.broadcast %367 : vector<8x1xf32> to vector<8x16xf32>
    %369 = arith.mulf %368, %285 : vector<8x16xf32>
    %370 = arith.addf %366, %369 : vector<8x16xf32>
    %371 = arith.mulf %345, %363 : vector<8x1xf32>
    %372 = vector.broadcast %371 : vector<8x1xf32> to vector<8x16xf32>
    %373 = arith.mulf %372, %286 : vector<8x16xf32>
    %374 = arith.addf %370, %373 : vector<8x16xf32>
    %375 = arith.mulf %347, %363 : vector<8x1xf32>
    %376 = vector.broadcast %375 : vector<8x1xf32> to vector<8x16xf32>
    %377 = arith.mulf %376, %287 : vector<8x16xf32>
    %378 = arith.addf %374, %377 : vector<8x16xf32>
    %379 = arith.mulf %349, %363 : vector<8x1xf32>
    %380 = vector.broadcast %379 : vector<8x1xf32> to vector<8x16xf32>
    %381 = arith.mulf %380, %288 : vector<8x16xf32>
    %382 = arith.addf %378, %381 : vector<8x16xf32>
    %383 = arith.mulf %351, %363 : vector<8x1xf32>
    %384 = vector.broadcast %383 : vector<8x1xf32> to vector<8x16xf32>
    %385 = arith.mulf %384, %289 : vector<8x16xf32>
    %386 = arith.addf %382, %385 : vector<8x16xf32>
    %387 = arith.mulf %353, %363 : vector<8x1xf32>
    %388 = vector.broadcast %387 : vector<8x1xf32> to vector<8x16xf32>
    %389 = arith.mulf %388, %290 : vector<8x16xf32>
    %390 = arith.addf %386, %389 : vector<8x16xf32>
    %391 = arith.mulf %355, %363 : vector<8x1xf32>
    %392 = vector.broadcast %391 : vector<8x1xf32> to vector<8x16xf32>
    %393 = arith.mulf %392, %291 : vector<8x16xf32>
    %394 = arith.addf %390, %393 : vector<8x16xf32>
    %c0_176 = arith.constant 0 : index
    %c0_177 = arith.constant 0 : index
    %395 = vector.load %arg24[%c0_176, %c0_177] : memref<8x128xf32, #tpu.memory_space<vmem>>, vector<8x16xf32>
    tpu.vector_store %arg24[%c0_176, %c0_177], %394 {strides = array<i32>} : memref<8x128xf32, #tpu.memory_space<vmem>>, vector<8x16xf32>,
    %c0_178 = arith.constant 0 : index
    %c16_179 = arith.constant 16 : index
    %396 = vector.load %arg21[%c0_178, %c16_179] : memref<8x128xf32, #tpu.memory_space<vmem>>, vector<8x16xf32>
    %397 = arith.mulf %396, %276 : vector<8x16xf32>
    %cst_180 = arith.constant dense<0.000000e+00> : vector<8xf32>
    %398 = vector.multi_reduction <add>, %397, %cst_180 [1] : vector<8x16xf32> to vector<8xf32>
    %399 = vector.shape_cast %398 : vector<8xf32> to vector<8x1xf32>
    %cst_181 = arith.constant 2.500000e-01 : f32
    %400 = vector.broadcast %cst_181 : f32 to vector<8x1xf32>
    %401 = arith.mulf %399, %400 : vector<8x1xf32>
    %402 = arith.mulf %396, %277 : vector<8x16xf32>
    %cst_182 = arith.constant dense<0.000000e+00> : vector<8xf32>
    %403 = vector.multi_reduction <add>, %402, %cst_182 [1] : vector<8x16xf32> to vector<8xf32>
    %404 = vector.shape_cast %403 : vector<8xf32> to vector<8x1xf32>
    %cst_183 = arith.constant 2.500000e-01 : f32
    %405 = vector.broadcast %cst_183 : f32 to vector<8x1xf32>
    %406 = arith.mulf %404, %405 : vector<8x1xf32>
    %407 = arith.mulf %396, %278 : vector<8x16xf32>
    %cst_184 = arith.constant dense<0.000000e+00> : vector<8xf32>
    %408 = vector.multi_reduction <add>, %407, %cst_184 [1] : vector<8x16xf32> to vector<8xf32>
    %409 = vector.shape_cast %408 : vector<8xf32> to vector<8x1xf32>
    %cst_185 = arith.constant 2.500000e-01 : f32
    %410 = vector.broadcast %cst_185 : f32 to vector<8x1xf32>
    %411 = arith.mulf %409, %410 : vector<8x1xf32>
    %412 = arith.mulf %396, %279 : vector<8x16xf32>
    %cst_186 = arith.constant dense<0.000000e+00> : vector<8xf32>
    %413 = vector.multi_reduction <add>, %412, %cst_186 [1] : vector<8x16xf32> to vector<8xf32>
    %414 = vector.shape_cast %413 : vector<8xf32> to vector<8x1xf32>
    %cst_187 = arith.constant 2.500000e-01 : f32
    %415 = vector.broadcast %cst_187 : f32 to vector<8x1xf32>
    %416 = arith.mulf %414, %415 : vector<8x1xf32>
    %417 = arith.mulf %396, %280 : vector<8x16xf32>
    %cst_188 = arith.constant dense<0.000000e+00> : vector<8xf32>
    %418 = vector.multi_reduction <add>, %417, %cst_188 [1] : vector<8x16xf32> to vector<8xf32>
    %419 = vector.shape_cast %418 : vector<8xf32> to vector<8x1xf32>
    %cst_189 = arith.constant 2.500000e-01 : f32
    %420 = vector.broadcast %cst_189 : f32 to vector<8x1xf32>
    %421 = arith.mulf %419, %420 : vector<8x1xf32>
    %422 = arith.mulf %396, %281 : vector<8x16xf32>
    %cst_190 = arith.constant dense<0.000000e+00> : vector<8xf32>
    %423 = vector.multi_reduction <add>, %422, %cst_190 [1] : vector<8x16xf32> to vector<8xf32>
    %424 = vector.shape_cast %423 : vector<8xf32> to vector<8x1xf32>
    %cst_191 = arith.constant 2.500000e-01 : f32
    %425 = vector.broadcast %cst_191 : f32 to vector<8x1xf32>
    %426 = arith.mulf %424, %425 : vector<8x1xf32>
    %427 = arith.mulf %396, %282 : vector<8x16xf32>
    %cst_192 = arith.constant dense<0.000000e+00> : vector<8xf32>
    %428 = vector.multi_reduction <add>, %427, %cst_192 [1] : vector<8x16xf32> to vector<8xf32>
    %429 = vector.shape_cast %428 : vector<8xf32> to vector<8x1xf32>
    %cst_193 = arith.constant 2.500000e-01 : f32
    %430 = vector.broadcast %cst_193 : f32 to vector<8x1xf32>
    %431 = arith.mulf %429, %430 : vector<8x1xf32>
    %432 = arith.mulf %396, %283 : vector<8x16xf32>
    %cst_194 = arith.constant dense<0.000000e+00> : vector<8xf32>
    %433 = vector.multi_reduction <add>, %432, %cst_194 [1] : vector<8x16xf32> to vector<8xf32>
    %434 = vector.shape_cast %433 : vector<8xf32> to vector<8x1xf32>
    %cst_195 = arith.constant 2.500000e-01 : f32
    %435 = vector.broadcast %cst_195 : f32 to vector<8x1xf32>
    %436 = arith.mulf %434, %435 : vector<8x1xf32>
    %437 = arith.maximumf %401, %406 : vector<8x1xf32>
    %438 = arith.maximumf %437, %411 : vector<8x1xf32>
    %439 = arith.maximumf %438, %416 : vector<8x1xf32>
    %440 = arith.maximumf %439, %421 : vector<8x1xf32>
    %441 = arith.maximumf %440, %426 : vector<8x1xf32>
    %442 = arith.maximumf %441, %431 : vector<8x1xf32>
    %443 = arith.maximumf %442, %436 : vector<8x1xf32>
    %444 = arith.subf %401, %443 : vector<8x1xf32>
    %445 = math.exp %444 : vector<8x1xf32>
    %446 = arith.subf %406, %443 : vector<8x1xf32>
    %447 = math.exp %446 : vector<8x1xf32>
    %448 = arith.subf %411, %443 : vector<8x1xf32>
    %449 = math.exp %448 : vector<8x1xf32>
    %450 = arith.subf %416, %443 : vector<8x1xf32>
    %451 = math.exp %450 : vector<8x1xf32>
    %452 = arith.subf %421, %443 : vector<8x1xf32>
    %453 = math.exp %452 : vector<8x1xf32>
    %454 = arith.subf %426, %443 : vector<8x1xf32>
    %455 = math.exp %454 : vector<8x1xf32>
    %456 = arith.subf %431, %443 : vector<8x1xf32>
    %457 = math.exp %456 : vector<8x1xf32>
    %458 = arith.subf %436, %443 : vector<8x1xf32>
    %459 = math.exp %458 : vector<8x1xf32>
    %460 = arith.addf %445, %447 : vector<8x1xf32>
    %461 = arith.addf %460, %449 : vector<8x1xf32>
    %462 = arith.addf %461, %451 : vector<8x1xf32>
    %463 = arith.addf %462, %453 : vector<8x1xf32>
    %464 = arith.addf %463, %455 : vector<8x1xf32>
    %465 = arith.addf %464, %457 : vector<8x1xf32>
    %466 = arith.addf %465, %459 : vector<8x1xf32>
    %467 = tpu.reciprocal %466 {approx = true} : vector<8x1xf32> -> vector<8x1xf32>
    %468 = arith.mulf %445, %467 : vector<8x1xf32>
    %469 = vector.broadcast %468 : vector<8x1xf32> to vector<8x16xf32>
    %470 = arith.mulf %469, %284 : vector<8x16xf32>
    %471 = arith.mulf %447, %467 : vector<8x1xf32>
    %472 = vector.broadcast %471 : vector<8x1xf32> to vector<8x16xf32>
    %473 = arith.mulf %472, %285 : vector<8x16xf32>
    %474 = arith.addf %470, %473 : vector<8x16xf32>
    %475 = arith.mulf %449, %467 : vector<8x1xf32>
    %476 = vector.broadcast %475 : vector<8x1xf32> to vector<8x16xf32>
    %477 = arith.mulf %476, %286 : vector<8x16xf32>
    %478 = arith.addf %474, %477 : vector<8x16xf32>
    %479 = arith.mulf %451, %467 : vector<8x1xf32>
    %480 = vector.broadcast %479 : vector<8x1xf32> to vector<8x16xf32>
    %481 = arith.mulf %480, %287 : vector<8x16xf32>
    %482 = arith.addf %478, %481 : vector<8x16xf32>
    %483 = arith.mulf %453, %467 : vector<8x1xf32>
    %484 = vector.broadcast %483 : vector<8x1xf32> to vector<8x16xf32>
    %485 = arith.mulf %484, %288 : vector<8x16xf32>
    %486 = arith.addf %482, %485 : vector<8x16xf32>
    %487 = arith.mulf %455, %467 : vector<8x1xf32>
    %488 = vector.broadcast %487 : vector<8x1xf32> to vector<8x16xf32>
    %489 = arith.mulf %488, %289 : vector<8x16xf32>
    %490 = arith.addf %486, %489 : vector<8x16xf32>
    %491 = arith.mulf %457, %467 : vector<8x1xf32>
    %492 = vector.broadcast %491 : vector<8x1xf32> to vector<8x16xf32>
    %493 = arith.mulf %492, %290 : vector<8x16xf32>
    %494 = arith.addf %490, %493 : vector<8x16xf32>
    %495 = arith.mulf %459, %467 : vector<8x1xf32>
    %496 = vector.broadcast %495 : vector<8x1xf32> to vector<8x16xf32>
    %497 = arith.mulf %496, %291 : vector<8x16xf32>
    %498 = arith.addf %494, %497 : vector<8x16xf32>
    %c0_196 = arith.constant 0 : index
    %c16_197 = arith.constant 16 : index
    %499 = vector.load %arg24[%c0_196, %c16_197] : memref<8x128xf32, #tpu.memory_space<vmem>>, vector<8x16xf32>
    tpu.vector_store %arg24[%c0_196, %c16_197], %498 {strides = array<i32>} : memref<8x128xf32, #tpu.memory_space<vmem>>, vector<8x16xf32>,
    %c0_198 = arith.constant 0 : index
    %c0_199 = arith.constant 0 : index
    %500 = vector.load %arg24[%c0_198, %c0_199] : memref<8x128xf32, #tpu.memory_space<vmem>>, vector<8x32xf32>
    %501 = arith.truncf %500 : vector<8x32xf32> to vector<8x32xbf16>
    %c0_200 = arith.constant 0 : index
    %c0_201 = arith.constant 0 : index
    %502 = vector.load %arg18[%c0_200, %c0_201] : memref<32x32xbf16, #tpu.memory_space<vmem>>, vector<32x32xbf16>
    %cst_202 = arith.constant dense<0.000000e+00> : vector<8x32xf32>
    %503 = tpu.matmul %501, %502, %cst_202 {dimension_numbers = #tpu.dot_dimension_numbers<[1], [0], [0], [1], [0, 0, 1, 1], [], []>} : vector<8x32xbf16>, vector<32x32xbf16>, vector<8x32xf32> -> vector<8x32xf32>
    %504 = arith.addf %260, %503 : vector<8x32xf32>
    %c0_203 = arith.constant 0 : index
    %c0_204 = arith.constant 0 : index
    %505 = vector.load %arg19[%c0_203, %c0_204] : memref<1x32xf32, #tpu.memory_space<vmem>>, vector<1x32xf32>
    %506 = vector.broadcast %505 : vector<1x32xf32> to vector<8x32xf32>
    %507 = arith.addf %504, %506 : vector<8x32xf32>
    %508 = arith.addf %7, %507 : vector<8x32xf32>
    %cst_205 = arith.constant dense<0.000000e+00> : vector<8x32xf32>
    %509 = tpu.matmul %0, %508, %cst_205 {dimension_numbers = #tpu.dot_dimension_numbers<[1], [0], [0], [1], [0, 0, 1, 1], [], []>} : vector<8x8xf32>, vector<8x32xf32>, vector<8x32xf32> -> vector<8x32xf32>
    %510 = arith.subf %508, %509 : vector<8x32xf32>
    %c0_206 = arith.constant 0 : index
    %c0_207 = arith.constant 0 : index
    %c0_208 = arith.constant 0 : index
    %511 = vector.load %arg20[%c0_206, %c0_207, %c0_208] : memref<1x8x32xf32, #tpu.memory_space<vmem>>, vector<1x8x32xf32>
    %512 = vector.shape_cast %511 : vector<1x8x32xf32> to vector<8x32xf32>
    %513 = vector.shape_cast %510 : vector<8x32xf32> to vector<1x8x32xf32>
    tpu.vector_store %arg20[%c0_206, %c0_207, %c0_208], %513 {strides = array<i32>} : memref<1x8x32xf32, #tpu.memory_space<vmem>>, vector<1x8x32xf32>,
    return
  }
  func.func @transform_0(%arg0: i32) -> (i32, i32, i32) {
    %c0_i32 = arith.constant 0 : i32
    %c0_i32_0 = arith.constant 0 : i32
    %c0_i32_1 = arith.constant 0 : i32
    return %arg0, %c0_i32, %c0_i32_0 : i32, i32, i32
  }
  func.func @transform_1(%arg0: i32) -> (i32, i32, i32) {
    %c0_i32 = arith.constant 0 : i32
    %c0_i32_0 = arith.constant 0 : i32
    %c0_i32_1 = arith.constant 0 : i32
    return %arg0, %c0_i32, %c0_i32_0 : i32, i32, i32
  }
  func.func @transform_2(%arg0: i32) -> (i32, i32) {
    %c0_i32 = arith.constant 0 : i32
    %c0_i32_0 = arith.constant 0 : i32
    %c0_i32_1 = arith.constant 0 : i32
    return %c0_i32, %c0_i32_0 : i32, i32
  }
  func.func @transform_3(%arg0: i32) -> (i32, i32) {
    %c0_i32 = arith.constant 0 : i32
    %c0_i32_0 = arith.constant 0 : i32
    %c0_i32_1 = arith.constant 0 : i32
    return %c0_i32, %c0_i32_0 : i32, i32
  }
  func.func @transform_4(%arg0: i32) -> (i32, i32) {
    %c0_i32 = arith.constant 0 : i32
    %c0_i32_0 = arith.constant 0 : i32
    %c0_i32_1 = arith.constant 0 : i32
    return %c0_i32, %c0_i32_0 : i32, i32
  }
  func.func @transform_5(%arg0: i32) -> (i32, i32) {
    %c0_i32 = arith.constant 0 : i32
    %c0_i32_0 = arith.constant 0 : i32
    %c0_i32_1 = arith.constant 0 : i32
    return %c0_i32, %c0_i32_0 : i32, i32
  }
  func.func @transform_6(%arg0: i32) -> (i32, i32) {
    %c0_i32 = arith.constant 0 : i32
    %c0_i32_0 = arith.constant 0 : i32
    %c0_i32_1 = arith.constant 0 : i32
    return %c0_i32, %c0_i32_0 : i32, i32
  }
  func.func @transform_7(%arg0: i32) -> (i32, i32) {
    %c0_i32 = arith.constant 0 : i32
    %c0_i32_0 = arith.constant 0 : i32
    %c0_i32_1 = arith.constant 0 : i32
    return %c0_i32, %c0_i32_0 : i32, i32
  }
  func.func @transform_8(%arg0: i32) -> (i32, i32) {
    %c0_i32 = arith.constant 0 : i32
    %c0_i32_0 = arith.constant 0 : i32
    %c0_i32_1 = arith.constant 0 : i32
    return %c0_i32, %c0_i32_0 : i32, i32
  }
  func.func @transform_9(%arg0: i32) -> (i32, i32) {
    %c0_i32 = arith.constant 0 : i32
    %c0_i32_0 = arith.constant 0 : i32
    %c0_i32_1 = arith.constant 0 : i32
    return %c0_i32, %c0_i32_0 : i32, i32
  }
  func.func @transform_10(%arg0: i32) -> (i32, i32) {
    %c0_i32 = arith.constant 0 : i32
    %c0_i32_0 = arith.constant 0 : i32
    %c0_i32_1 = arith.constant 0 : i32
    return %c0_i32, %c0_i32_0 : i32, i32
  }
  func.func @transform_11(%arg0: i32) -> (i32, i32) {
    %c0_i32 = arith.constant 0 : i32
    %c0_i32_0 = arith.constant 0 : i32
    %c0_i32_1 = arith.constant 0 : i32
    return %c0_i32, %c0_i32_0 : i32, i32
  }
  func.func @transform_12(%arg0: i32) -> (i32, i32) {
    %c0_i32 = arith.constant 0 : i32
    %c0_i32_0 = arith.constant 0 : i32
    %c0_i32_1 = arith.constant 0 : i32
    return %c0_i32, %c0_i32_0 : i32, i32
  }
  func.func @transform_13(%arg0: i32) -> (i32, i32) {
    %c0_i32 = arith.constant 0 : i32
    %c0_i32_0 = arith.constant 0 : i32
    %c0_i32_1 = arith.constant 0 : i32
    return %c0_i32, %c0_i32_0 : i32, i32
  }
  func.func @transform_14(%arg0: i32) -> (i32, i32) {
    %c0_i32 = arith.constant 0 : i32
    %c0_i32_0 = arith.constant 0 : i32
    %c0_i32_1 = arith.constant 0 : i32
    return %c0_i32, %c0_i32_0 : i32, i32
  }
  func.func @transform_15(%arg0: i32) -> (i32, i32) {
    %c0_i32 = arith.constant 0 : i32
    %c0_i32_0 = arith.constant 0 : i32
    %c0_i32_1 = arith.constant 0 : i32
    return %c0_i32, %c0_i32_0 : i32, i32
  }
  func.func @transform_16(%arg0: i32) -> (i32, i32) {
    %c0_i32 = arith.constant 0 : i32
    %c0_i32_0 = arith.constant 0 : i32
    %c0_i32_1 = arith.constant 0 : i32
    return %c0_i32, %c0_i32_0 : i32, i32
  }
  func.func @transform_17(%arg0: i32) -> (i32, i32) {
    %c0_i32 = arith.constant 0 : i32
    %c0_i32_0 = arith.constant 0 : i32
    %c0_i32_1 = arith.constant 0 : i32
    return %c0_i32, %c0_i32_0 : i32, i32
  }
  func.func @transform_18(%arg0: i32) -> (i32, i32) {
    %c0_i32 = arith.constant 0 : i32
    %c0_i32_0 = arith.constant 0 : i32
    %c0_i32_1 = arith.constant 0 : i32
    return %c0_i32, %c0_i32_0 : i32, i32
  }
  func.func @transform_19(%arg0: i32) -> (i32, i32, i32) {
    %c0_i32 = arith.constant 0 : i32
    %c0_i32_0 = arith.constant 0 : i32
    %c0_i32_1 = arith.constant 0 : i32
    return %arg0, %c0_i32, %c0_i32_0 : i32, i32, i32
  }
}

</mosaic_0001>

<bundles_post_ra>
// kernel: encoder_layer_forward.1
= control target key start
LH: loop header
LB: loop body
LE: loop exit
PB: predicated region body
PF: predicated region fallthrough
CT: control target
= control target key end

     0   :  { %s4687_s0 = inlined_call_operand.hbm [shape: f32[2,8,32], index: 0, kind: input, shape index: {}]   ;;  %s4688_s1 = inlined_call_operand.hbm [shape: f32[2,8,32], index: 1, kind: input, shape index: {}]   ;;  %s4689_s2 = inlined_call_operand.vmem [shape: f32[8,8], index: 2, kind: input, shape index: {}]   ;;  %s4690_s3 = inlined_call_operand.hbm [shape: bf16[32,128], index: 3, kind: input, shape index: {}]   ;;  %s4691_s4 = inlined_call_operand.hbm [shape: f32[1,128], index: 4, kind: input, shape index: {}]   ;;  %s4692_s5 = inlined_call_operand.hbm [shape: bf16[32,32], index: 5, kind: input, shape index: {}]   ;;  %s4693_s6 = inlined_call_operand.hbm [shape: f32[1,32], index: 6, kind: input, shape index: {}]   ;;  %s4694_s7 = inlined_call_operand.hbm [shape: bf16[32,32], index: 7, kind: input, shape index: {}]   ;;  %s4695_s8 = inlined_call_operand.hbm [shape: f32[1,32], index: 8, kind: input, shape index: {}]   ;;  %s4696_s9 = inlined_call_operand.vmem [shape: bf16[128,128], index: 9, kind: input, shape index: {}]   ;;  %s4697_s10 = inlined_call_operand.hbm [shape: f32[1,128], index: 10, kind: input, shape index: {}]   ;;  %s4698_s11 = inlined_call_operand.vmem [shape: bf16[128,32], index: 11, kind: input, shape index: {}]   ;;  %s4699_s12 = inlined_call_operand.hbm [shape: f32[1,32], index: 12, kind: input, shape index: {}]   ;;  %s4700_s13 = inlined_call_operand.vmem [shape: bf16[128,128], index: 13, kind: input, shape index: {}]   ;;  %s4701_s14 = inlined_call_operand.hbm [shape: f32[1,128], index: 14, kind: input, shape index: {}]   ;;  %s4702_s15 = inlined_call_operand.hbm [shape: bf16[128,128], index: 15, kind: input, shape index: {}]   ;;  %s4703_s16 = inlined_call_operand.hbm [shape: f32[1,128], index: 16, kind: input, shape index: {}]   ;;  %s4704_s17 = inlined_call_operand.hbm [shape: bf16[32,32], index: 17, kind: input, shape index: {}]   ;;  %s4705_s18 = inlined_call_operand.hbm [shape: f32[1,32], index: 18, kind: input, shape index: {}]   ;;  %s4706_s19 = inlined_call_operand.hbm [shape: f32[2,8,32], index: 19, kind: output, shape index: {}]  }
   0x1   :  { %4739 = sst [smem:[#allocation45_spill]] %s4687_s0 }
   0x2   :  { %4740 = sst [smem:[#allocation46_spill]] %s4688_s1 }
   0x3   :  { %4741 = sst [smem:[#allocation47_spill]] %s4689_s2 }
   0x4   :  { %4742 = sst [smem:[#allocation48_spill]] %s4690_s3 }
   0x5   :  { %4743 = sst [smem:[#allocation49_spill]] %s4691_s4 }
   0x6   :  { %4744 = sst [smem:[#allocation50_spill]] %s4692_s5 }
   0x7   :  { %4745 = sst [smem:[#allocation51_spill]] %s4693_s6 }
   0x8   :  { %4746 = sst [smem:[#allocation52_spill]] %s4694_s7 }
   0x9   :  { %4747 = sst [smem:[#allocation53_spill]] %s4695_s8 }
   0xa   :  { %4748 = sst [smem:[#allocation54_spill]] %s4696_s9 }
   0xb   :  { %4749 = sst [smem:[#allocation55_spill]] %s4697_s10 }
   0xc   :  { %4750 = sst [smem:[#allocation56_spill]] %s4698_s11 }
   0xd   :  { %4751 = sst [smem:[#allocation57_spill]] %s4700_s13 }
   0xe   :  { %4752 = sst [smem:[#allocation58_spill]] %s4706_s19 }
   0xf   :  { %24 = vsyncpa [#allocation7], 0 }
  0x10   :  { %26 = vsyncpa [#allocation7 + $0x1], 0 }
  0x11   :  { %27 = vsyncpa [#allocation10], 0 }
  0x12   :  { %29 = vsyncpa [#allocation10 + $0x1], 0 }
  0x13   :  { %30 = vsyncpa [#allocation13], 0 }
  0x14   :  { %31 = vsyncpa [#allocation16], 0 }
  0x15   :  { %32 = vsyncpa [#allocation19], 0 }
  0x16   :  { %33 = vsyncpa [#allocation22], 0 }
  0x17   :  { %34 = vsyncpa [#allocation25], 0 }
  0x18   :  { %35 = vsyncpa [#allocation28], 0 }
  0x19   :  { %36 = vsyncpa [#allocation8], 0 }
  0x1a   :  { %38 = vsyncpa [#allocation8 + $0x1], 0  ;;  %s3852_s0 = smov 0   ;;  %s3854_s30 = smov 0  }
  0x1b   :  { %s3856_s20 = smov 0   ;;  %s3858_s21 = smov 0  }
  0x1c LB: > { %4753 = sst [smem:[#allocation41_spill]] %s3711_s0  ;;  %s3725_s1 = smov [#allocation11]   ;;  %s3723_s21 = sphi %s3858_s21, %s4815_s21   ;;  %s3719_s20 = sphi %s3856_s20, %s4814_s20   ;;  %s3715_s30 = sphi %s3854_s30, %s4813_s30   ;;  %s3711_s0 = sphi %s3852_s0, %s4812_s0  }
  0x1d   : > { %4754 = sst [smem:[#allocation42_spill]] %s3715_s30  ;;  %s499_s22 = sshll.u32 %s3725_s1, 4  ;;  %s3878_s22 = int_to_ptr.vmem [resolvable:$true] %s499_s22 }
  0x1e   : > { %s3873_s2 = sadd.s32 4294967295, %s3723_s21   ;;  %p2615_p0 = scmp.ge.s32.totalorder %s3723_s21, 1 }
  0x1f   : > { %4755 = sst [smem:[#allocation43_spill]] %s3873_s2  ;;  %p4722_p1 = scmp.eq.s32.totalorder %s3873_s2, 0 }
  0x20   : > { %p484_p2 = scmp.lt.s32.totalorder %s3723_s21, 3  ;;  %s3726_s24 = smov [#allocation12]  }
  0x21   : > { %s513_s25 = sshll.u32 %s3726_s24, 4  ;;  %s3727_s26 = smov [#allocation15]   ;;  %s3893_s25 = int_to_ptr.vmem [resolvable:$true] %s513_s25 }
  0x22   : > { %p3880_p3 = pnand %p2615_p0, %p484_p2  ;;  %s537_s27 = sshll.u32 %s3727_s26, 4  ;;  %s3895_s27 = int_to_ptr.vmem [resolvable:$true] %s537_s27 }
  0x23   : > { %s4759_s1 = sld [smem:[#allocation48_spill]] }
  0x24   : > { %s4756_s23 = scalar_select %p3880_p3, 1, 0 }
  0x25   : > { %p2941_p5 = pneg %p3880_p3 }
  0x26   : > { %4757 = sst [smem:[#allocation44_spill]] %s4756_s23 }
  0x27   : > { %p3889_p6 = pnand %p2941_p5, %p4722_p1 }
  0x29   : > { %s3201_s19 = scalar_lea.hbm %s4759_s1, 256  ;;  %p3905_p8 = pneg %p3889_p6 }
  0x2a   : > { %p3202_p7 = scmp.ne.s32.totalorder %s4759_s1, %s3201_s19  ;;  %p3208_p11 = scmp.lt.u32.totalorder %s3201_s19, %s4759_s1 }
  0x2c   : > { %p3204_p9 = pnand %p3905_p8, %p3202_p7 }
  0x2e   : > { %p3205_p10 = pneg %p3204_p9 }
  0x30   : > { %p3210_p12 = pnand %p3208_p11, %p3205_p10 }
  0x32   : > { %3213 = shalt.err (!%p3210_p12)
}
  0x33   : > { %s3214_s11 = scalar_lea.vmem %s3878_s22, 256  ;;  %p3222_p5 = scmp.lt.s32.totalorder %s3878_s22, %s3878_s22 }
  0x34   : > { %p3215_p13 = scmp.ne.s32.totalorder %s3878_s22, %s3214_s11  ;;  %p3223_p4 = scmp.lt.s32.totalorder %s3214_s11, %s3214_s11 }
  0x36   : > { %p3217_p0 = pnand %p3215_p13, %p3905_p8  ;;  %p3224_p7 = por %p3223_p4, %p3222_p5 }
  0x38   : > { %p3218_p2 = pneg %p3217_p0 }
  0x3a   : > { %p3225_p9 = pnand %p3224_p7, %p3218_p2 }
  0x3c   : > { %3228 = shalt.err (!%p3225_p9)
}
  0x3d   : > { %s4720_s13 = smov 64   ;;  %s3729_s9 = smov 4  }
  0x3e   : > { %2944 = dma.hbm_to_vmem [thread:$0]  (!%p3889_p6), %s4759_s1, 256, %s3878_s22, [#allocation10], %s4720_s13, %s4720_s13, %s3729_s9  }
  0x3f   : > { %s4761_s4 = sld [smem:[#allocation49_spill]] }
  0x45   : > { %s3229_s11 = scalar_lea.hbm %s4761_s4, 16 }
  0x46   : > { %p3230_p4 = scmp.ne.s32.totalorder %s4761_s4, %s3229_s11  ;;  %p3236_p12 = scmp.lt.u32.totalorder %s3229_s11, %s4761_s4 }
  0x48   : > { %p3232_p10 = pnand %p3230_p4, %p3905_p8 }
  0x4a   : > { %p3233_p11 = pneg %p3232_p10 }
  0x4c   : > { %p3238_p13 = pnand %p3236_p12, %p3233_p11 }
  0x4e   : > { %3241 = shalt.err (!%p3238_p13)
}
  0x4f   : > { %s3242_s22 = scalar_lea.vmem %s3893_s25, 16  ;;  %s3249_s2 = scalar_lea.vmem %s3893_s25, 32 }
  0x50   : > { %p3243_p0 = scmp.ne.s32.totalorder %s3893_s25, %s3242_s22  ;;  %p3250_p7 = scmp.lt.s32.totalorder %s3893_s25, %s3893_s25 }
  0x51   : > { %p3251_p9 = scmp.lt.s32.totalorder %s3249_s2, %s3242_s22 }
  0x52   : > { %p3245_p2 = pnand %p3243_p0, %p3905_p8 }
  0x53   : > { %p3252_p4 = por %p3251_p9, %p3250_p7 }
  0x54   : > { %p3246_p5 = pneg %p3245_p2 }
  0x56   : > { %p3253_p10 = pnand %p3252_p4, %p3246_p5 }
  0x58   : > { %3256 = shalt.err (!%p3253_p10)
}
  0x59   : > { %2947 = dma.hbm_to_vmem [thread:$0]  (!%p3889_p6), %s4761_s4, 16, %s3893_s25, [#allocation13]  }
  0x5a   : > { %s4762_s6 = sld [smem:[#allocation51_spill]] }
  0x60   : > { %s3257_s28 = scalar_lea.hbm %s4762_s6, 16 }
  0x61   : > { %p3258_p11 = scmp.ne.s32.totalorder %s4762_s6, %s3257_s28  ;;  %p3264_p0 = scmp.lt.u32.totalorder %s3257_s28, %s4762_s6 }
  0x63   : > { %p3260_p12 = pnand %p3258_p11, %p3905_p8 }
  0x65   : > { %p3261_p13 = pneg %p3260_p12 }
  0x67   : > { %p3266_p2 = pnand %p3264_p0, %p3261_p13 }
  0x69   : > { %3269 = shalt.err (!%p3266_p2)
}
  0x6a   : > { %s3270_s25 = scalar_lea.vmem %s3895_s27, 16  ;;  %s3277_s2 = scalar_lea.vmem %s3895_s27, 32 }
  0x6b   : > { %p3271_p5 = scmp.ne.s32.totalorder %s3895_s27, %s3270_s25  ;;  %p3278_p4 = scmp.lt.s32.totalorder %s3895_s27, %s3895_s27 }
  0x6c   : > { %p3279_p10 = scmp.lt.s32.totalorder %s3277_s2, %s3270_s25 }
  0x6d   : > { %p3273_p7 = pnand %p3271_p5, %p3905_p8 }
  0x6e   : > { %p3280_p11 = por %p3279_p10, %p3278_p4 }
  0x6f   : > { %p3274_p9 = pneg %p3273_p7 }
  0x71   : > { %p3281_p12 = pnand %p3280_p11, %p3274_p9 }
  0x73   : > { %3284 = shalt.err (!%p3281_p12)
}
  0x74   : > { %2953 = dma.hbm_to_vmem [thread:$0]  (!%p3889_p6), %s4762_s6, 16, %s3895_s27, [#allocation16]  }
  0x75   : > { %s3730_s23 = smov [#allocation18]   ;;  %s3731_s28 = smov [#allocation21]  }
  0x76   : > { %s561_s19 = sshll.u32 %s3730_s23, 4  ;;  %s589_s29 = sshll.u32 %s3731_s28, 4  ;;  %s562_s19 = int_to_ptr.vmem [resolvable:$true] %s561_s19  ;;  %s590_s29 = int_to_ptr.vmem [resolvable:$true] %s589_s29 }
  0x77   : > { %s4763_s8 = sld [smem:[#allocation53_spill]] }
  0x7d   : > { %s3285_s22 = scalar_lea.hbm %s4763_s8, 16 }
  0x7e   : > { %p3286_p13 = scmp.ne.s32.totalorder %s4763_s8, %s3285_s22  ;;  %p3292_p5 = scmp.lt.u32.totalorder %s3285_s22, %s4763_s8 }
  0x80   : > { %p3288_p0 = pnand %p3286_p13, %p3905_p8 }
  0x82   : > { %p3289_p2 = pneg %p3288_p0 }
  0x84   : > { %p3294_p7 = pnand %p3292_p5, %p3289_p2 }
  0x86   : > { %3297 = shalt.err (!%p3294_p7)
}
  0x87   : > { %s3298_s27 = scalar_lea.vmem %s562_s19, 16  ;;  %s3305_s30 = scalar_lea.vmem %s562_s19, 32 }
  0x88   : > { %p3299_p9 = scmp.ne.s32.totalorder %s562_s19, %s3298_s27  ;;  %p3306_p11 = scmp.lt.s32.totalorder %s562_s19, %s562_s19 }
  0x89   : > { %p3307_p12 = scmp.lt.s32.totalorder %s3305_s30, %s3298_s27 }
  0x8a   : > { %p3301_p4 = pnand %p3299_p9, %p3905_p8 }
  0x8b   : > { %p3308_p1 = por %p3307_p12, %p3306_p11 }
  0x8c   : > { %p3302_p10 = pneg %p3301_p4 }
  0x8e   : > { %p3309_p3 = pnand %p3308_p1, %p3302_p10 }
  0x90   : > { %3312 = shalt.err (!%p3309_p3)
}
  0x91   : > { %2959 = dma.hbm_to_vmem [thread:$0]  (!%p3889_p6), %s4763_s8, 16, %s562_s19, [#allocation19]  }
  0x92   : > { %s3313_s11 = scalar_lea.hbm %s4699_s12, 16 }
  0x93   : > { %p3314_p13 = scmp.ne.s32.totalorder %s4699_s12, %s3313_s11  ;;  %p3320_p3 = scmp.lt.u32.totalorder %s3313_s11, %s4699_s12 }
  0x95   : > { %p3316_p0 = pnand %p3314_p13, %p3905_p8 }
  0x97   : > { %p3317_p1 = pneg %p3316_p0 }
  0x99   : > { %p3322_p2 = pnand %p3320_p3, %p3317_p1 }
  0x9b   : > { %3325 = shalt.err (!%p3322_p2)
}
  0x9c   : > { %s3326_s27 = scalar_lea.vmem %s590_s29, 16  ;;  %s3333_s19 = scalar_lea.vmem %s590_s29, 32 }
  0x9d   : > { %p3327_p5 = scmp.ne.s32.totalorder %s590_s29, %s3326_s27  ;;  %p3334_p4 = scmp.lt.s32.totalorder %s590_s29, %s590_s29 }
  0x9e   : > { %p3335_p10 = scmp.lt.s32.totalorder %s3333_s19, %s3326_s27 }
  0x9f   : > { %p3329_p7 = pnand %p3327_p5, %p3905_p8 }
  0xa0   : > { %p3336_p11 = por %p3335_p10, %p3334_p4 }
  0xa1   : > { %p3330_p9 = pneg %p3329_p7 }
  0xa3   : > { %p3337_p12 = pnand %p3336_p11, %p3330_p9 }
  0xa5   : > { %3340 = shalt.err (!%p3337_p12)
}
  0xa6   : > { %2965 = dma.hbm_to_vmem [thread:$0]  (!%p3889_p6), %s4699_s12, 16, %s590_s29, [#allocation22]  }
  0xa7   : > { %s3732_s28 = smov [#allocation24]   ;;  %s3733_s26 = smov [#allocation27]  }
  0xa8   : > { %s613_s13 = sshll.u32 %s3732_s28, 4  ;;  %s637_s11 = sshll.u32 %s3733_s26, 4  ;;  %s614_s13 = int_to_ptr.vmem [resolvable:$true] %s613_s13  ;;  %s638_s11 = int_to_ptr.vmem [resolvable:$true] %s637_s11 }
  0xa9   : > { %s3341_s2 = scalar_lea.hbm %s4702_s15, 1024 }
  0xaa   : > { %p3342_p13 = scmp.ne.s32.totalorder %s4702_s15, %s3341_s2  ;;  %p3348_p3 = scmp.lt.u32.totalorder %s3341_s2, %s4702_s15 }
  0xac   : > { %p3344_p0 = pnand %p3342_p13, %p3905_p8 }
  0xae   : > { %p3345_p1 = pneg %p3344_p0 }
  0xb0   : > { %p3350_p2 = pnand %p3348_p3, %p3345_p1 }
  0xb2   : > { %3353 = shalt.err (!%p3350_p2)
}
  0xb3   : > { %s3354_s29 = scalar_lea.vmem %s614_s13, 1024  ;;  %p3362_p4 = scmp.lt.s32.totalorder %s614_s13, %s614_s13 }
  0xb4   : > { %p3355_p5 = scmp.ne.s32.totalorder %s614_s13, %s3354_s29  ;;  %p3363_p10 = scmp.lt.s32.totalorder %s3354_s29, %s3354_s29 }
  0xb6   : > { %p3357_p7 = pnand %p3355_p5, %p3905_p8  ;;  %p3364_p11 = por %p3363_p10, %p3362_p4 }
  0xb8   : > { %p3358_p9 = pneg %p3357_p7 }
  0xba   : > { %p3365_p12 = pnand %p3364_p11, %p3358_p9 }
  0xbc   : > { %3368 = shalt.err (!%p3365_p12)
}
  0xbd   : > { %s4764_s23 = smov 64   ;;  %s3369_s2 = scalar_lea.hbm %s4704_s17, 256 }
  0xbe   : > { %2971 = dma.hbm_to_vmem [thread:$0]  (!%p3889_p6), %s4702_s15, 1024, %s614_s13, [#allocation25], %s4764_s23, %s4764_s23, %s3729_s9  }
  0xbf   : > { %p3370_p13 = scmp.ne.s32.totalorder %s4704_s17, %s3369_s2  ;;  %p3376_p3 = scmp.lt.u32.totalorder %s3369_s2, %s4704_s17 }
  0xc1   : > { %p3372_p0 = pnand %p3370_p13, %p3905_p8 }
  0xc3   : > { %p3373_p1 = pneg %p3372_p0 }
  0xc5   : > { %p3378_p2 = pnand %p3376_p3, %p3373_p1 }
  0xc7   : > { %3381 = shalt.err (!%p3378_p2)
}
  0xc8   : > { %s3382_s29 = scalar_lea.vmem %s638_s11, 256  ;;  %p3390_p4 = scmp.lt.s32.totalorder %s638_s11, %s638_s11 }
  0xc9   : > { %p3383_p5 = scmp.ne.s32.totalorder %s638_s11, %s3382_s29  ;;  %p3391_p10 = scmp.lt.s32.totalorder %s3382_s29, %s3382_s29 }
  0xcb   : > { %p3385_p7 = pnand %p3383_p5, %p3905_p8  ;;  %p3392_p11 = por %p3391_p10, %p3390_p4 }
  0xcd   : > { %p3386_p9 = pneg %p3385_p7 }
  0xcf   : > { %p3393_p12 = pnand %p3392_p11, %p3386_p9 }
  0xd1   : > { %3396 = shalt.err (!%p3393_p12)
}
  0xd2   : > { %2977 = dma.hbm_to_vmem [thread:$0]  (!%p3889_p6), %s4704_s17, 256, %s638_s11, [#allocation28], %s4764_s23, %s4764_s23, %s3729_s9  }
  0xd3   : > { %s3734_s26 = smov [#allocation14]   ;;  %s3735_s25 = smov [#allocation17]  }
  0xd4   : > { %s523_s22 = sshll.u32 %s3734_s26, 4  ;;  %s547_s2 = sshll.u32 %s3735_s25, 4  ;;  %s524_s22 = int_to_ptr.vmem [resolvable:$true] %s523_s22  ;;  %s548_s2 = int_to_ptr.vmem [resolvable:$true] %s547_s2 }
  0xd5   : > { %s4765_s5 = sld [smem:[#allocation50_spill]] }
  0xdb   : > { %s3397_s19 = scalar_lea.hbm %s4765_s5, 256 }
  0xdc   : > { %p3398_p13 = scmp.ne.s32.totalorder %s4765_s5, %s3397_s19  ;;  %p3404_p3 = scmp.lt.u32.totalorder %s3397_s19, %s4765_s5 }
  0xde   : > { %p3400_p0 = pnand %p3398_p13, %p3905_p8 }
  0xe0   : > { %p3401_p1 = pneg %p3400_p0 }
  0xe2   : > { %p3406_p2 = pnand %p3404_p3, %p3401_p1 }
  0xe4   : > { %3409 = shalt.err (!%p3406_p2)
}
  0xe5   : > { %s3410_s11 = scalar_lea.vmem %s524_s22, 256  ;;  %p3418_p4 = scmp.lt.s32.totalorder %s524_s22, %s524_s22 }
  0xe6   : > { %p3411_p5 = scmp.ne.s32.totalorder %s524_s22, %s3410_s11  ;;  %p3419_p10 = scmp.lt.s32.totalorder %s3410_s11, %s3410_s11 }
  0xe8   : > { %p3413_p7 = pnand %p3411_p5, %p3905_p8  ;;  %p3420_p11 = por %p3419_p10, %p3418_p4 }
  0xea   : > { %p3414_p9 = pneg %p3413_p7 }
  0xec   : > { %p3421_p12 = pnand %p3420_p11, %p3414_p9 }
  0xee   : > { %3424 = shalt.err (!%p3421_p12)
}
  0xef   : > { %2950 = dma.hbm_to_vmem [thread:$0]  (!%p3889_p6), %s4765_s5, 256, %s524_s22, [#allocation13], %s4764_s23, %s4764_s23, %s3729_s9  }
  0xf0   : > { %s4766_s7 = sld [smem:[#allocation52_spill]] }
  0xf6   : > { %s3425_s0 = scalar_lea.hbm %s4766_s7, 256 }
  0xf7   : > { %p3426_p13 = scmp.ne.s32.totalorder %s4766_s7, %s3425_s0  ;;  %p3432_p3 = scmp.lt.u32.totalorder %s3425_s0, %s4766_s7 }
  0xf9   : > { %p3428_p0 = pnand %p3426_p13, %p3905_p8 }
  0xfb   : > { %p3429_p1 = pneg %p3428_p0 }
  0xfd   : > { %p3434_p2 = pnand %p3432_p3, %p3429_p1 }
  0xff   : > { %3437 = shalt.err (!%p3434_p2)
}
 0x100   : > { %s3438_s13 = scalar_lea.vmem %s548_s2, 256  ;;  %p3446_p4 = scmp.lt.s32.totalorder %s548_s2, %s548_s2 }
 0x101   : > { %p3439_p5 = scmp.ne.s32.totalorder %s548_s2, %s3438_s13  ;;  %p3447_p10 = scmp.lt.s32.totalorder %s3438_s13, %s3438_s13 }
 0x103   : > { %p3441_p7 = pnand %p3439_p5, %p3905_p8  ;;  %p3448_p11 = por %p3447_p10, %p3446_p4 }
 0x105   : > { %p3442_p9 = pneg %p3441_p7 }
 0x107   : > { %p3449_p12 = pnand %p3448_p11, %p3442_p9 }
 0x109   : > { %3452 = shalt.err (!%p3449_p12)
}
 0x10a   : > { %2956 = dma.hbm_to_vmem [thread:$0]  (!%p3889_p6), %s4766_s7, 256, %s548_s2, [#allocation16], %s4764_s23, %s4764_s23, %s3729_s9  }
 0x10b   : > { %s3736_s1 = smov [#allocation20]   ;;  %s3737_s26 = smov [#allocation23]  }
 0x10c   : > { %s575_s28 = sshll.u32 %s3736_s1, 4  ;;  %s603_s25 = sshll.u32 %s3737_s26, 4  ;;  %s576_s28 = int_to_ptr.vmem [resolvable:$true] %s575_s28  ;;  %s604_s25 = int_to_ptr.vmem [resolvable:$true] %s603_s25 }
 0x10d   : > { %s4767_s10 = sld [smem:[#allocation55_spill]] }
 0x113   : > { %s3453_s19 = scalar_lea.hbm %s4767_s10, 16 }
 0x114   : > { %p3454_p13 = scmp.ne.s32.totalorder %s4767_s10, %s3453_s19  ;;  %p3460_p3 = scmp.lt.u32.totalorder %s3453_s19, %s4767_s10 }
 0x116   : > { %p3456_p0 = pnand %p3454_p13, %p3905_p8 }
 0x118   : > { %p3457_p1 = pneg %p3456_p0 }
 0x11a   : > { %p3462_p2 = pnand %p3460_p3, %p3457_p1 }
 0x11c   : > { %3465 = shalt.err (!%p3462_p2)
}
 0x11d   : > { %s3466_s9 = scalar_lea.vmem %s576_s28, 16  ;;  %s3473_s23 = scalar_lea.vmem %s576_s28, 32 }
 0x11e   : > { %p3467_p5 = scmp.ne.s32.totalorder %s576_s28, %s3466_s9  ;;  %p3474_p4 = scmp.lt.s32.totalorder %s576_s28, %s576_s28 }
 0x11f   : > { %p3475_p10 = scmp.lt.s32.totalorder %s3473_s23, %s3466_s9 }
 0x120   : > { %p3469_p7 = pnand %p3467_p5, %p3905_p8 }
 0x121   : > { %p3476_p11 = por %p3475_p10, %p3474_p4 }
 0x122   : > { %p3470_p9 = pneg %p3469_p7 }
 0x124   : > { %p3477_p12 = pnand %p3476_p11, %p3470_p9 }
 0x126   : > { %3480 = shalt.err (!%p3477_p12)
}
 0x127   : > { %2962 = dma.hbm_to_vmem [thread:$0]  (!%p3889_p6), %s4767_s10, 16, %s576_s28, [#allocation19]  }
 0x128   : > { %s3481_s0 = scalar_lea.hbm %s4701_s14, 16 }
 0x129   : > { %p3482_p13 = scmp.ne.s32.totalorder %s4701_s14, %s3481_s0  ;;  %p3488_p3 = scmp.lt.u32.totalorder %s3481_s0, %s4701_s14 }
 0x12b   : > { %p3484_p0 = pnand %p3482_p13, %p3905_p8 }
 0x12d   : > { %p3485_p1 = pneg %p3484_p0 }
 0x12f   : > { %p3490_p2 = pnand %p3488_p3, %p3485_p1 }
 0x131   : > { %3493 = shalt.err (!%p3490_p2)
}
 0x132   : > { %s3494_s13 = scalar_lea.vmem %s604_s25, 16  ;;  %s3501_s28 = scalar_lea.vmem %s604_s25, 32 }
 0x133   : > { %p3495_p5 = scmp.ne.s32.totalorder %s604_s25, %s3494_s13  ;;  %p3502_p4 = scmp.lt.s32.totalorder %s604_s25, %s604_s25 }
 0x134   : > { %p3503_p10 = scmp.lt.s32.totalorder %s3501_s28, %s3494_s13 }
 0x135   : > { %p3497_p7 = pnand %p3495_p5, %p3905_p8 }
 0x136   : > { %p3504_p11 = por %p3503_p10, %p3502_p4 }
 0x137   : > { %p3498_p9 = pneg %p3497_p7 }
 0x139   : > { %p3505_p12 = pnand %p3504_p11, %p3498_p9 }
 0x13b   : > { %3508 = shalt.err (!%p3505_p12)
}
 0x13c   : > { %2968 = dma.hbm_to_vmem [thread:$0]  (!%p3889_p6), %s4701_s14, 16, %s604_s25, [#allocation22]  }
 0x13d   : > { %s3738_s23 = smov [#allocation26]   ;;  %s3739_s11 = smov [#allocation29]  }
 0x13e   : > { %s627_s2 = sshll.u32 %s3738_s23, 4  ;;  %s651_s1 = sshll.u32 %s3739_s11, 4  ;;  %s628_s2 = int_to_ptr.vmem [resolvable:$true] %s627_s2  ;;  %s652_s1 = int_to_ptr.vmem [resolvable:$true] %s651_s1 }
 0x13f   : > { %s3509_s27 = scalar_lea.hbm %s4703_s16, 16 }
 0x140   : > { %p3510_p13 = scmp.ne.s32.totalorder %s4703_s16, %s3509_s27  ;;  %p3516_p3 = scmp.lt.u32.totalorder %s3509_s27, %s4703_s16 }
 0x142   : > { %p3512_p0 = pnand %p3510_p13, %p3905_p8 }
 0x144   : > { %p3513_p1 = pneg %p3512_p0 }
 0x146   : > { %p3518_p2 = pnand %p3516_p3, %p3513_p1 }
 0x148   : > { %3521 = shalt.err (!%p3518_p2)
}
 0x149   : > { %s3522_s25 = scalar_lea.vmem %s628_s2, 16  ;;  %s3529_s28 = scalar_lea.vmem %s628_s2, 32 }
 0x14a   : > { %p3523_p5 = scmp.ne.s32.totalorder %s628_s2, %s3522_s25  ;;  %p3530_p4 = scmp.lt.s32.totalorder %s628_s2, %s628_s2 }
 0x14b   : > { %p3531_p10 = scmp.lt.s32.totalorder %s3529_s28, %s3522_s25 }
 0x14c   : > { %p3525_p7 = pnand %p3523_p5, %p3905_p8 }
 0x14d   : > { %p3532_p11 = por %p3531_p10, %p3530_p4 }
 0x14e   : > { %p3526_p9 = pneg %p3525_p7 }
 0x150   : > { %p3533_p12 = pnand %p3532_p11, %p3526_p9 }
 0x152   : > { %3536 = shalt.err (!%p3533_p12)
}
 0x153   : > { %2974 = dma.hbm_to_vmem [thread:$0]  (!%p3889_p6), %s4703_s16, 16, %s628_s2, [#allocation25]  }
 0x154   : > { %s3537_s26 = scalar_lea.hbm %s4705_s18, 16 }
 0x155   : > { %p3538_p13 = scmp.ne.s32.totalorder %s4705_s18, %s3537_s26  ;;  %p3544_p3 = scmp.lt.u32.totalorder %s3537_s26, %s4705_s18 }
 0x157   : > { %p3540_p0 = pnand %p3538_p13, %p3905_p8 }
 0x159   : > { %p3541_p1 = pneg %p3540_p0 }
 0x15b   : > { %p3546_p2 = pnand %p3544_p3, %p3541_p1 }
 0x15d   : > { %3549 = shalt.err (!%p3546_p2)
}
 0x15e   : > { %s3550_s29 = scalar_lea.vmem %s652_s1, 16  ;;  %s3557_s2 = scalar_lea.vmem %s652_s1, 32 }
 0x15f   : > { %p3551_p5 = scmp.ne.s32.totalorder %s652_s1, %s3550_s29  ;;  %p3558_p4 = scmp.lt.s32.totalorder %s652_s1, %s652_s1 }
 0x160   : > { %p3559_p10 = scmp.lt.s32.totalorder %s3557_s2, %s3550_s29 }
 0x161   : > { %p3553_p7 = pnand %p3551_p5, %p3905_p8 }
 0x162   : > { %p3560_p11 = por %p3559_p10, %p3558_p4 }
 0x163   : > { %p3554_p9 = pneg %p3553_p7 }
 0x165   : > { %p3561_p12 = pnand %p3560_p11, %p3554_p9 }
 0x167   : > { %3564 = shalt.err (!%p3561_p12)
}
 0x168   : > { %s4768_s28 = sld [smem:[#allocation42_spill]]  ;;  %s4769_s24 = sld [smem:[#allocation41_spill]] }
 0x169   : > { %s4770_s22 = sld [smem:[#allocation43_spill]]  ;;  %s2614_s9 = sadd.s32 4294967294, %s3723_s21  }
 0x16a   : > { %2980 = dma.hbm_to_vmem [thread:$0]  (!%p3889_p6), %s4705_s18, 16, %s652_s1, [#allocation28]  }
 0x16b   : > { %s4171_s3 = sadd.s32 1, %s3723_s21   ;;  %s51_s23 = sadd.s32 1, %s3719_s20 }
 0x16c   : > { %s48_s11 = ssub.s32 %s3723_s21, %s4171_s3  ;;  %p59_p0 = scmp.eq.s32.totalorder %s3723_s21, 0 }
 0x16d   : > { %p49_p13 = scmp.eq.s32.totalorder %s48_s11, 0  ;;  %p477_p9 = scmp.eq.s32.totalorder %s2614_s9, 1 }
 0x16e   : > { %p58_p8 = scmp.ne.s32.totalorder %s3719_s20, %s4768_s28  ;;  %p64_p1 = scmp.ne.s32.totalorder %s4768_s28, %s4769_s24 }
 0x16f   : > { %p471_p3 = scmp.eq.s32.totalorder %s4770_s22, 1  ;;  %p4771_p5 = scmp.eq.s32.totalorder %s4770_s22, 0 }
 0x170   : > { %s4183_s26 = scalar_select %p49_p13, %s3719_s20, %s51_s23  }
 0x171   : > { %p60_p2 = por %p59_p0, %p58_p8  ;;  %p4187_p7 = por %p4771_p5, %p64_p1 }
 0x172   : > { %p4191_p6 = por %p471_p3, %p58_p8  ;;  %p3005_p4 = scmp.lt.s32.totalorder %s3723_s21, 2 }
 0x173   : > { %s4772_s0 = scalar_select %p4187_p7, 1, 0 }
 0x174   : > { %s4773_s1 = scalar_select %p4191_p6, 1, 0 }
 0x175   : > { %s662_s27 = sand.u32 1, %s3719_s20   ;;  %p4197_p10 = por %p477_p9, %p64_p1 }
 0x176   : > { %s4201_s30 = sshll.u32 %s662_s27, 3  ;;  %s2631_s29 = sshll.u32 %s3723_s21, 7 }
 0x177   : > { %s4774_s19 = scalar_select %p4197_p10, 1, 0 }
 0x178   : > { %s4775_s25 = sld [smem:[#allocation45_spill]]  ;;  %s666_s24 = scalar_lea.vmem [#allocation6], %s4201_s30 }
 0x179   : > { %s673_s22 = sshll.u32 %s666_s24, 4  ;;  %p4210_p11 = pnand %p3005_p4, %p60_p2  ;;  %s4214_s22 = int_to_ptr.vmem [resolvable:$true] %s673_s22 }
 0x17a   : > { %s4777_s4 = sld [smem:[#allocation46_spill]]  ;;  %s663_s13 = scalar_lea.sflag [#allocation7], %s662_s27 }
 0x17b   : > { %p3567_p8 = pneg %p4210_p11 }
 0x17e   : > { %s4207_s28 = scalar_lea.hbm %s4775_s25, %s2631_s29  ;;  %s3570_s7 = scalar_lea.hbm %s4775_s25, 256 }
 0x17f   : > { %s3565_s5 = scalar_lea.hbm %s4207_s28, 128  ;;  %p3571_p1 = scmp.lt.u32.totalorder %s4207_s28, %s4775_s25 }
 0x180   : > { %s4219_s2 = scalar_lea.hbm %s4777_s4, %s2631_s29  ;;  %p3566_p12 = scmp.ne.s32.totalorder %s4207_s28, %s3565_s5 }
 0x181   : > { %p3572_p3 = scmp.lt.u32.totalorder %s3570_s7, %s3565_s5  ;;  %p3574_p5 = scmp.lt.u32.totalorder %s3565_s5, %s4207_s28 }
 0x182   : > { %p3568_p13 = pnand %p3567_p8, %p3566_p12 }
 0x183   : > { %p3573_p2 = por %p3572_p3, %p3571_p1 }
 0x184   : > { %p3569_p0 = pneg %p3568_p13 }
 0x185   : > { %p3575_p9 = por %p3574_p5, %p3573_p2 }
 0x187   : > { %p3576_p4 = pnand %p3575_p9, %p3569_p0 }
 0x189   : > { %3579 = shalt.err (!%p3576_p4)
}
 0x18a   : > { %s3580_s27 = scalar_lea.vmem %s4214_s22, 128  ;;  %s3740_s6 = smov [#allocation6]  }
 0x18b   : > { %p3581_p12 = scmp.ne.s32.totalorder %s4214_s22, %s3580_s27  ;;  %s3585_s29 = sshll.u32 %s3740_s6, 4  ;;  %s3586_s29 = int_to_ptr.vmem [resolvable:$false] %s3585_s29 }
 0x18c   : > { %s3587_s8 = scalar_lea.vmem %s3586_s29, 256  ;;  %p3588_p6 = scmp.lt.s32.totalorder %s4214_s22, %s3586_s29 }
 0x18d   : > { %p3583_p13 = pnand %p3581_p12, %p3567_p8  ;;  %p3589_p1 = scmp.lt.s32.totalorder %s3587_s8, %s3580_s27 }
 0x18f   : > { %p3584_p10 = pneg %p3583_p13  ;;  %p3590_p3 = por %p3589_p1, %p3588_p6 }
 0x191   : > { %p3591_p2 = pnand %p3590_p3, %p3584_p10 }
 0x193   : > { %3594 = shalt.err (!%p3591_p2)
}
 0x194   : > { %2984 = dma.hbm_to_vmem [thread:$0]  (!%p4210_p11), %s4207_s28, 128, %s4214_s22, %s663_s13  }
 0x195   : > { %s680_s5 = sand.u32 1, %s3723_s21   ;;  %s684_s7 = scalar_lea.vmem [#allocation9], %s4201_s30 }
 0x196   : > { %s691_s10 = sshll.u32 %s684_s7, 4  ;;  %s681_s23 = scalar_lea.sflag [#allocation10], %s680_s5  ;;  %s692_s10 = int_to_ptr.vmem [resolvable:$true] %s691_s10 }
 0x197   : > { %s3595_s11 = scalar_lea.hbm %s4219_s2, 128  ;;  %s3600_s6 = scalar_lea.hbm %s4777_s4, 256 }
 0x198   : > { %p3596_p6 = scmp.ne.s32.totalorder %s4219_s2, %s3595_s11  ;;  %p3601_p5 = scmp.lt.u32.totalorder %s4219_s2, %s4777_s4 }
 0x199   : > { %p3602_p9 = scmp.lt.u32.totalorder %s3600_s6, %s3595_s11  ;;  %p3604_p12 = scmp.lt.u32.totalorder %s3595_s11, %s4219_s2 }
 0x19a   : > { %p3598_p10 = pnand %p3596_p6, %p3567_p8 }
 0x19b   : > { %p3603_p4 = por %p3602_p9, %p3601_p5 }
 0x19c   : > { %p3599_p0 = pneg %p3598_p10 }
 0x19d   : > { %p3605_p13 = por %p3604_p12, %p3603_p4 }
 0x19f   : > { %p3606_p1 = pnand %p3605_p13, %p3599_p0 }
 0x1a1   : > { %3609 = shalt.err (!%p3606_p1)
}
 0x1a2   : > { %s3610_s30 = scalar_lea.vmem %s692_s10, 128  ;;  %s3741_s28 = smov [#allocation9]  }
 0x1a3   : > { %p3611_p3 = scmp.ne.s32.totalorder %s692_s10, %s3610_s30  ;;  %s3615_s22 = sshll.u32 %s3741_s28, 4  ;;  %s3616_s22 = int_to_ptr.vmem [resolvable:$false] %s3615_s22 }
 0x1a4   : > { %s3617_s13 = scalar_lea.vmem %s3616_s22, 256  ;;  %p3618_p10 = scmp.lt.s32.totalorder %s692_s10, %s3616_s22 }
 0x1a5   : > { %p3613_p2 = pnand %p3611_p3, %p3567_p8  ;;  %p3619_p7 = scmp.lt.s32.totalorder %s3617_s13, %s3610_s30 }
 0x1a7   : > { %p3614_p6 = pneg %p3613_p2  ;;  %p3620_p5 = por %p3619_p7, %p3618_p10 }
 0x1a9   : > { %p3621_p9 = pnand %p3620_p5, %p3614_p6 }
 0x1ab   : > { %3624 = shalt.err (!%p3621_p9)
}
 0x1ac   : > { %2987 = dma.hbm_to_vmem [thread:$0]  (!%p4210_p11), %s4219_s2, 128, %s692_s10, %s681_s23  }
 0x1ad   : > { %s4778_s5 = sld [smem:[#allocation44_spill]] }
 0x1b3   : > { %p4779_p0 = scmp.ne.s32.totalorder %s4778_s5, 0 }
 0x1b4   : > { %s4780_s7 = sld [smem:[#allocation42_spill]] (!%p4779_p0)  ;;  %p4781_p7 = scmp.ne.s32.totalorder (!%p4779_p0), %s4772_s0, 0 }
 0x1b5   : > { %700 = sbr.rel (%p4779_p0) target bundleno = 3185 (0xc71), region = 96 }
 0x1ba   : > { %s4270_s11 = sand.u32 (!%p4779_p0), 1, %s4780_s7  }
 0x1bb   : > { %s4273_s24 = sshll.u32 (!%p4779_p0), %s4270_s11, 3  ;;  %s703_s27 = scalar_lea.sflag (!%p4779_p0), [#allocation7], %s4270_s11 }
 0x1bc   : > { %s706_s6 = scalar_lea.vmem [#allocation6], %s4273_s24 }
 0x1bd   : > { %3670 = dma.done.wait (%p4781_p7), %s703_s27, 128  }
 0x1be   : > { %3672 = vsyncadd (%p4781_p7), %s703_s27, 4294967168  ;;  %s4782_s9 = sld [smem:[#allocation43_spill]]  ;;  %s715_s23 = scalar_lea.vmem [#allocation9], %s4273_s24 }
 0x1c4   : > { %s711_s2 = sand.u32 1, %s4782_s9  }
 0x1c5   : > { %s712_s10 = scalar_lea.sflag [#allocation10], %s711_s2 }
 0x1c6   : > { %3674 = dma.done.wait (%p4781_p7), %s712_s10, 128  }
 0x1c7   : > { %3676 = vsyncadd (%p4781_p7), %s712_s10, 4294967168  ;;  %p4783_p11 = scmp.eq.s32.totalorder %s4782_s9, 0 }
 0x1c9   : > { %3678 = dma.done.wait (%p4783_p11), [#allocation10], 256   ;;  %p4784_p8 = pmov %p4783_p11 }
 0x1cb   : > { %3680 = vsyncadd (%p4784_p8), [#allocation10], 4294967040  ;;  %p4785_p4 = pmov %p4784_p8 }
 0x1cd   : > { %3682 = dma.done.wait (%p4785_p4), [#allocation13], 272   ;;  %p4786_p12 = pmov %p4785_p4 }
 0x1ce   : > { %p4787_p13 = pmov %p4785_p4 }
 0x1cf   : > { %3684 = vsyncadd (%p4786_p12), [#allocation13], 4294967024 }
 0x1d0   : > { %3686 = dma.done.wait (%p4787_p13), [#allocation16], 272   ;;  %p4788_p1 = pmov %p4785_p4 }
 0x1d2   : > { %3688 = vsyncadd (%p4788_p1), [#allocation16], 4294967024  ;;  %p4789_p3 = pmov %p4788_p1 }
 0x1d3   : > { %p4790_p2 = pmov %p4788_p1 }
 0x1d4   : > { %3690 = dma.done.wait (%p4789_p3), [#allocation19], 32  }
 0x1d5   : > { %3692 = vsyncadd (%p4790_p2), [#allocation19], 4294967264  ;;  %p4791_p6 = pmov %p4788_p1 }
 0x1d6   : > { %p4792_p10 = pmov %p4788_p1 }
 0x1d7   : > { %3694 = dma.done.wait (%p4791_p6), [#allocation22], 32  }
 0x1d8   : > { %3696 = vsyncadd (%p4792_p10), [#allocation22], 4294967264  ;;  %p4793_p5 = pmov %p4788_p1 }
 0x1d9   : > { %p4794_p9 = pmov %p4788_p1 }
 0x1da   : > { %3698 = dma.done.wait (%p4793_p5), [#allocation25], 1040  }
 0x1db   : > { %3700 = vsyncadd (%p4794_p9), [#allocation25], 4294966256  ;;  %p4795_p0 = pmov %p4788_p1 }
 0x1dd   : > { %3702 = dma.done.wait (%p4795_p0), [#allocation28], 272   ;;  %p4796_p7 = pmov %p4795_p0 }
 0x1de   : > { %v3742_v0 = vmov 0.0   ;;  %vm3743_vm0 = vmmov 0   ;;  %v829_v1 = vld [vmem:[%s706_s6] sm:$0xff]  ;;  %v830_v2 = vld [vmem:[%s715_s23] sm:$0xff]  ;;  %s4797_s8 = sld [smem:[#allocation47_spill]]  ;;  %vm832_vm1 = vcmask 64512  }
 0x1df   : > { %3704 = vsyncadd (%p4796_p7), [#allocation28], 4294967024  ;;  %2761 = vmatprep.subr.mxu0 %v3742_v0  ;;  %2763 = vmatprep.mubr.msk.f32.mxu0 %vm3743_vm0, %v3742_v0  ;;  %v831_v4 = vadd.f32 %v830_v2, %v829_v1  ;;  %v3076_v5 = vld [vmem:[#allocation11] sm:$0xff]   ;;  %v3077_v6 = vld [vmem:[#allocation14] sm:$0xff]   ;;  %vm931_vm2 = vcmask 261120   ;;  %s4733_s30 = smov 48  }
 0x1e0   : > { %2766 = vmatprep.subr.bf16.mxu1 %v3742_v0  ;;  %2770 = vmatprep.mubr.msk.bf16.mxu1 %vm3743_vm0, %v3742_v0  ;;  %v3078_v7 = vld [vmem:[#allocation11 + $0x8] sm:$0xff]   ;;  %v3079_v8 = vld [vmem:[#allocation14 + $0x8] sm:$0xff]   ;;  %v2652_v15 = vld [vmem:[#allocation12] ss:$0 sm:$0xff]  ;;  %s4737_s28 = smov 16   ;;  %s4731_s22 = smov 64  }
 0x1e1   : > { %2762 = vmatpush3.msra.mxu0 %v831_v4  ;;  %2767 = vmatpush3.bf16.msra.mxu1 %v3076_v5  ;;  %v3080_v12 = vld [vmem:[#allocation17] sm:$0xff]   ;;  %v3081_v14 = vld [vmem:[#allocation17 + $0x8] sm:$0xff]   ;;  %v2656_v16 = vld [vmem:[#allocation15] ss:$0 sm:$0xff]  ;;  %s4729_s13 = smov 32   ;;  %s4727_s5 = smov 96  }
 0x1e2   : > { %2774 = vmatprep.subr.bf16.mxu0 %v3742_v0  ;;  %2768 = vmatprep.subr.bf16.mxu1 %v3742_v0  ;;  %v2660_v28 = vld [vmem:[#allocation18] ss:$0 sm:$0xff]  ;;  %s4735_s7 = smov 80   ;;  %s3750_s27 = smov 112   ;;  %vm1110_vm3 = vcmask 130048   ;;  %vm1187_vm4 = vcmask 261248  }
 0x1e3   : > { %s4798_s10 = sld [smem:[#allocation54_spill]]  ;;  %s4799_s0 = smov 96   ;;  %vm1233_vm5 = vcmask 392448   ;;  %vm1279_vm6 = vcmask 523648   ;;  %vm1325_vm7 = vcmask 654848   ;;  %vm1371_vm8 = vcmask 786048  }
 0x1e4   : > { %v828_v3 = vld [vmem:[%s4797_s8] sm:$0xff]  ;;  %s4800_s2 = sld [smem:[#allocation56_spill]]  ;;  %vm1417_vm9 = vcmask 917248   ;;  %vm1460_vm10 = vcmask 1048448   ;;  %s4804_s29 = smov 48  }
 0x1e5   : > { %2764 = vmatmul.mubr.msk.f32.vlgmr.msra.gmra.mrb[0].mxu0 %vm832_vm1, %v828_v3  ;;  %2769 = vmatpush3.bf16.msra.mxu1 %v3078_v7  ;;  %s4805_s6 = smov 64   ;;  %s4806_s23 = smov 32  }
 0x1e6   : > { %2775 = vmatpush3.bf16.msra.mxu0 %v3077_v6  ;;  %2778 = vmatprep.mubr.msk.bf16.mxu0 %vm3743_vm0, %v3742_v0  ;;  %p4808_p8 = scmp.ne.s32.totalorder %s4773_s1, 0 }
 0x1e7   : > { %2776 = vmatprep.subr.bf16.mxu0 %v3742_v0  ;;  %2782 = vmatprep.subr.bf16.mxu1 %v3742_v0 }
 0x1ea   : > { %2777 = vmatpush3.bf16.msra.mxu0 %v3079_v8 }
 0x1eb   : > { %2790 = vmatprep.subr.bf16.mxu0 %v3742_v0 }
 0x2b8   : > { %v902_v9 = vpop.f32.mrb[0].mxu0 }
 0x2b9   : > { %v4332_v10 = vsub.f32 %v831_v4, %v902_v9  ;;  %v2765_v11 = vpop.f32.mrb[1].mxu0 }
 0x2bb   : > { %v907_v13 = vpack.c.bf16 %v4332_v10, %v4332_v10 }
 0x2bd   : > { %2771 = vmatmul.mubr.msk.bf16.vlgmr.msra.gmra.mrb[0].mxu1 %vm931_vm2, %v907_v13  ;;  %2779 = vmatmul.mubr.msk.bf16.vlgmr.msra.gmra.mrb[4].mxu0 %vm931_vm2, %v907_v13 }
 0x2be   : > { %2783 = vmatpush3.bf16.msra.mxu1 %v3080_v12  ;;  %2786 = vmatprep.mubr.msk.bf16.mxu1 %vm3743_vm0, %v3742_v0 }
 0x2bf   : > { %2784 = vmatprep.subr.bf16.mxu1 %v3742_v0  ;;  %2806 = vmatprep.mubr.msk.bf16.mxu0 %vm3743_vm0, %v3742_v0 }
 0x2c2   : > { %2785 = vmatpush3.bf16.msra.mxu1 %v3081_v14 }
 0x2c3   : > { %2810 = vmatprep.subr.bf16.mxu1 %v3742_v0 }
 0x2c5   : > { %2787 = vmatmul.mubr.msk.bf16.vlgmr.msra.gmra.mrb[4].mxu1 %vm931_vm2, %v907_v13 }
 0x2c6   : > { %2826 = vmatprep.mubr.msk.bf16.mxu1 %vm3743_vm0, %v3742_v0 }
 0x390   : > { %v969_v17 = vpop.f32.mrb[0].mxu1  ;;  %v1033_v18 = vpop.f32.mrb[4].mxu0 }
 0x391   : > { %v970_v19 = vadd.f32 %v2652_v15, %v969_v17  ;;  %v1034_v20 = vadd.f32 %v2656_v16, %v1033_v18  ;;  %v2772_v21 = vpop.f32.mrb[1].mxu1  ;;  %v2780_v22 = vpop.f32.mrb[5].mxu0 }
 0x392   : > { %v972_v23 = vpop.f32.mrb[2].mxu1  ;;  %v1036_v24 = vpop.f32.mrb[6].mxu0 }
 0x393   : > { %v4347_v25 = vmax.f32 %v970_v19, 0.0  ;;  %1104 = vst.msk [vmem:[#allocation3] sm:$0xff] %vm931_vm2, %v1034_v20  ;;  %v2773_v26 = vpop.f32.mrb[3].mxu1  ;;  %v2781_v27 = vpop.f32.mrb[7].mxu0 }
 0x395   : > { %1103 = vst [vmem:[#allocation2] sm:$0xff] %v4347_v25 }
 0x398   : > { %v1096_v29 = vpop.f32.mrb[4].mxu1 }
 0x399   : > { %v1097_v30 = vadd.f32 %v2660_v28, %v1096_v29  ;;  %v2788_v31 = vpop.f32.mrb[5].mxu1 }
 0x39a   : > { %v1099_v32 = vpop.f32.mrb[6].mxu1  ;;  %v1106_v33 = vld [vmem:[#allocation3] sm:$0xff] }
 0x39b   : > { %v1102_v34 = vmax.f32 %v1097_v30, 0.0  ;;  %v2789_v35 = vpop.f32.mrb[7].mxu1  ;;  %1236 = vrot.lane.b32.xlu1 %v1106_v33, %s4733_s30  ;;  %1144 = vrot.lane.b32.xlu0 %v1106_v33, %s4737_s28  ;;  %v4360_v36 = vmul.f32 %v1106_v33, %v4347_v25 }
 0x39d   : > { %1105 = vst.msk [vmem:[#allocation4] sm:$0xff] %vm931_vm2, %v1102_v34  ;;  %v1111_v18 = vsel %vm1110_vm3, %v4360_v36, 0.0 }
 0x39f   : > { %1282 = vrot.lane.b32.xlu1 %v1106_v33, %s4731_s22  ;;  %1190 = vrot.lane.b32.xlu0 %v1106_v33, %s4729_s13 }
 0x3a3   : > { %1374 = vrot.lane.b32.xlu1 %v1106_v33, %s4727_s5  ;;  %1328 = vrot.lane.b32.xlu0 %v1106_v33, %s4735_s7 }
 0x3a7   : > { %1116 = vrot.lane.b32.xlu0 %v1106_v33, %s3750_s27 }
 0x3ab   : > { %1158 = vrot.lane.b32.xlu0 %v4360_v36, %s3750_s27 }
 0x40d   : > { %v1145_v37 = vpop.permute.xlu0 %1144  ;;  %v1237_v39 = vpop.permute.xlu1 %1236 }
 0x40e   : > { %v1147_v38 = vmul.f32 %v1145_v37, %v4347_v25  ;;  %v1239_v42 = vmul.f32 %v1237_v39, %v4347_v25 }
 0x410   : > { %1149 = vrot.lane.b32.xlu1 %v1147_v38, %s3750_s27  ;;  %1204 = vrot.lane.b32.xlu0 %v1147_v38, %s4727_s5 }
 0x411   : > { %v1191_v40 = vpop.permute.xlu0 %1190  ;;  %v1283_v43 = vpop.permute.xlu1 %1282 }
 0x412   : > { %v1193_v41 = vmul.f32 %v1191_v40, %v4347_v25  ;;  %v1285_v44 = vmul.f32 %v1283_v43, %v4347_v25 }
 0x414   : > { %1195 = vrot.lane.b32.xlu1 %v1193_v41, %s4727_s5  ;;  %1250 = vrot.lane.b32.xlu0 %v1193_v41, %s4735_s7  ;;  %s4801_s5 = sld [smem:[#allocation57_spill]] }
 0x415   : > { %v1329_v45 = vpop.permute.xlu0 %1328  ;;  %v1375_v47 = vpop.permute.xlu1 %1374 }
 0x416   : > { %v1331_v46 = vmul.f32 %v1329_v45, %v4347_v25  ;;  %v1377_v48 = vmul.f32 %v1375_v47, %v4347_v25 }
 0x418   : > { %1241 = vrot.lane.b32.xlu1 %v1239_v42, %s4735_s7  ;;  %1296 = vrot.lane.b32.xlu0 %v1239_v42, %s4731_s22 }
 0x419   : > { %v1117_v49 = vpop.permute.xlu0 %1116 }
 0x41a   : > { %v1420_v50 = vmul.f32 %v1117_v49, %v4347_v25 }
 0x41c   : > { %1287 = vrot.lane.b32.xlu1 %v1285_v44, %s4731_s22  ;;  %1342 = vrot.lane.b32.xlu0 %v1285_v44, %s4733_s30  ;;  %v1120_v17 = vsel %vm1110_vm3, %v1420_v50, 0.0 }
 0x41d   : > { %v1159_v51 = vpop.permute.xlu0 %1158 }
 0x41e   : > { %v1161_v52 = vsel %vm1110_vm3, %v1159_v51, 0.0 }
 0x420   : > { %1333 = vrot.lane.b32.xlu1 %v1331_v46, %s4733_s30  ;;  %1388 = vrot.lane.b32.xlu0 %v1331_v46, %s4729_s13 }
 0x424   : > { %1379 = vrot.lane.b32.xlu1 %v1377_v48, %s4729_s13  ;;  %1431 = vrot.lane.b32.xlu0 %v1377_v48, %s4737_s28 }
 0x428   : > { %1422 = vrot.lane.b32.xlu1 %v1420_v50, %s4737_s28 }
 0x443   : > { %1162 = vadd.xlane.f32.xlu0 %v1161_v52 }
 0x482   : > { %v1150_v53 = vpop.permute.xlu1 %1149  ;;  %v1205_v54 = vpop.permute.xlu0 %1204 }
 0x483   : > { %v1152_v55 = vsel %vm1110_vm3, %v1150_v53, 0.0  ;;  %v1207_v59 = vsel %vm1110_vm3, %v1205_v54, 0.0 }
 0x484   : > { %1153 = vadd.xlane.f32.xlu1 %v1152_v55 }
 0x486   : > { %v1196_v56 = vpop.permute.xlu1 %1195  ;;  %v1251_v57 = vpop.permute.xlu0 %1250 }
 0x487   : > { %v1198_v58 = vsel %vm1110_vm3, %v1196_v56, 0.0  ;;  %v1253_v63 = vsel %vm1110_vm3, %v1251_v57, 0.0 }
 0x488   : > { %1199 = vadd.xlane.f32.xlu0 %v1198_v58  ;;  %1208 = vadd.xlane.f32.xlu1 %v1207_v59 }
 0x48a   : > { %v1242_v60 = vpop.permute.xlu1 %1241  ;;  %v1297_v61 = vpop.permute.xlu0 %1296 }
 0x48b   : > { %v1244_v62 = vsel %vm1110_vm3, %v1242_v60, 0.0  ;;  %v1299_v4 = vsel %vm1110_vm3, %v1297_v61, 0.0 }
 0x48c   : > { %1245 = vadd.xlane.f32.xlu0 %v1244_v62  ;;  %1254 = vadd.xlane.f32.xlu1 %v1253_v63 }
 0x48e   : > { %v1288_v1 = vpop.permute.xlu1 %1287  ;;  %v1343_v2 = vpop.permute.xlu0 %1342 }
 0x48f   : > { %v1290_v3 = vsel %vm1110_vm3, %v1288_v1, 0.0  ;;  %v1345_v8 = vsel %vm1110_vm3, %v1343_v2, 0.0 }
 0x490   : > { %1291 = vadd.xlane.f32.xlu0 %v1290_v3  ;;  %1300 = vadd.xlane.f32.xlu1 %v1299_v4 }
 0x492   : > { %v1334_v5 = vpop.permute.xlu1 %1333  ;;  %v1389_v6 = vpop.permute.xlu0 %1388 }
 0x493   : > { %v1336_v7 = vsel %vm1110_vm3, %v1334_v5, 0.0  ;;  %v1391_v12 = vsel %vm1110_vm3, %v1389_v6, 0.0 }
 0x494   : > { %1337 = vadd.xlane.f32.xlu0 %v1336_v7  ;;  %1346 = vadd.xlane.f32.xlu1 %v1345_v8 }
 0x496   : > { %v1380_v9 = vpop.permute.xlu1 %1379  ;;  %v1432_v13 = vpop.permute.xlu0 %1431 }
 0x497   : > { %v1382_v11 = vsel %vm1110_vm3, %v1380_v9, 0.0  ;;  %v1434_v16 = vsel %vm1110_vm3, %v1432_v13, 0.0 }
 0x498   : > { %1383 = vadd.xlane.f32.xlu0 %v1382_v11  ;;  %1392 = vadd.xlane.f32.xlu1 %v1391_v12 }
 0x49a   : > { %v1423_v14 = vpop.permute.xlu1 %1422 }
 0x49b   : > { %v1425_v15 = vsel %vm1110_vm3, %v1423_v14, 0.0 }
 0x49c   : > { %1426 = vadd.xlane.f32.xlu0 %v1425_v15  ;;  %1435 = vadd.xlane.f32.xlu1 %v1434_v16 }
 0x4a0   : > { %1121 = vadd.xlane.f32.xlu1 %v1120_v17  ;;  %1112 = vadd.xlane.f32.xlu0 %v1111_v18 }
 0x4d0   : > { %v1163_v19 = vpop.xlane.xlu0 %1162 }
 0x4d1   : > { %v1164_v21 = vmul.f32 0.25, %v1163_v19 }
 0x511   : > { %v1154_v20 = vpop.xlane.xlu1 %1153 }
 0x512   : > { %v1155_v22 = vmul.f32 0.25, %v1154_v20 }
 0x514   : > { %v1165_v23 = vmax.f32 %v1155_v22, %v1164_v21 }
 0x515   : > { %v1209_v24 = vpop.xlane.xlu1 %1208  ;;  %v1200_v26 = vpop.xlane.xlu0 %1199 }
 0x516   : > { %v1166_v27 = vsub.f32 %v1155_v22, %v1165_v23  ;;  %v1169_v28 = vsub.f32 %v1164_v21, %v1165_v23  ;;  %v1210_v29 = vmul.f32 0.25, %v1209_v24  ;;  %v1201_v30 = vmul.f32 0.25, %v1200_v26 }
 0x518   : > { %v1167_v31 = vmul.f32 1.442695, %v1166_v27  ;;  %v1170_v32 = vmul.f32 1.442695, %v1169_v28  ;;  %v1211_v33 = vmax.f32 %v1201_v30, %v1210_v29 }
 0x519   : > { %v1255_v34 = vpop.xlane.xlu1 %1254  ;;  %v1246_v35 = vpop.xlane.xlu0 %1245 }
 0x51a   : > { %3116 = vpow2.f32 %v1167_v31  ;;  %v1212_v36 = vsub.f32 %v1201_v30, %v1211_v33  ;;  %v1215_v37 = vsub.f32 %v1210_v29, %v1211_v33  ;;  %v1256_v38 = vmul.f32 0.25, %v1255_v34 }
 0x51b   : > { %3118 = vpow2.f32 %v1170_v32  ;;  %v1247_v39 = vmul.f32 0.25, %v1246_v35 }
 0x51c   : > { %v1213_v40 = vmul.f32 1.442695, %v1212_v36  ;;  %v1216_v41 = vmul.f32 1.442695, %v1215_v37 }
 0x51d   : > { %v1257_v42 = vmax.f32 %v1247_v39, %v1256_v38  ;;  %v1301_v43 = vpop.xlane.xlu1 %1300  ;;  %v1292_v44 = vpop.xlane.xlu0 %1291 }
 0x51e   : > { %3120 = vpow2.f32 %v1213_v40  ;;  %v1302_v45 = vmul.f32 0.25, %v1301_v43  ;;  %v1293_v46 = vmul.f32 0.25, %v1292_v44 }
 0x51f   : > { %3122 = vpow2.f32 %v1216_v41  ;;  %v1258_v47 = vsub.f32 %v1247_v39, %v1257_v42  ;;  %v1261_v48 = vsub.f32 %v1256_v38, %v1257_v42 }
 0x520   : > { %v1303_v49 = vmax.f32 %v1293_v46, %v1302_v45 }
 0x521   : > { %v1259_v50 = vmul.f32 1.442695, %v1258_v47  ;;  %v1262_v51 = vmul.f32 1.442695, %v1261_v48  ;;  %v1347_v52 = vpop.xlane.xlu1 %1346  ;;  %v1338_v53 = vpop.xlane.xlu0 %1337 }
 0x522   : > { %v1304_v54 = vsub.f32 %v1293_v46, %v1303_v49  ;;  %v1307_v55 = vsub.f32 %v1302_v45, %v1303_v49  ;;  %v1348_v56 = vmul.f32 0.25, %v1347_v52  ;;  %v1339_v57 = vmul.f32 0.25, %v1338_v53  ;;  %v4403_v45 = vld [vmem:[#allocation4] sm:$0xff] }
 0x523   : > { %3124 = vpow2.f32 %v1259_v50 }
 0x524   : > { %v3117_v58 = vpop.eup %3116  ;;  %3126 = vpow2.f32 %v1262_v51  ;;  %v1305_v59 = vmul.f32 1.442695, %v1304_v54  ;;  %v1308_v60 = vmul.f32 1.442695, %v1307_v55  ;;  %v1349_v61 = vmax.f32 %v1339_v57, %v1348_v56 }
 0x525   : > { %v3119_v62 = vpop.eup %3118  ;;  %v1393_v63 = vpop.xlane.xlu1 %1392 }
 0x526   : > { %v1384_v1 = vpop.xlane.xlu0 %1383  ;;  %v1172_v2 = vadd.f32 %v3119_v62, %v3117_v58  ;;  %3128 = vpow2.f32 %v1305_v59  ;;  %v1350_v3 = vsub.f32 %v1339_v57, %v1349_v61  ;;  %v1353_v4 = vsub.f32 %v1348_v56, %v1349_v61 }
 0x527   : > { %3130 = vpow2.f32 %v1308_v60  ;;  %v1394_v5 = vmul.f32 0.25, %v1393_v63  ;;  %v1385_v6 = vmul.f32 0.25, %v1384_v1 }
 0x528   : > { %v3121_v7 = vpop.eup %3120  ;;  %3132 = vrcp.f32 %v1172_v2  ;;  %v1351_v8 = vmul.f32 1.442695, %v1350_v3  ;;  %v1354_v9 = vmul.f32 1.442695, %v1353_v4 }
 0x529   : > { %v3123_v11 = vpop.eup %3122  ;;  %v1395_v12 = vmax.f32 %v1385_v6, %v1394_v5  ;;  %v1436_v13 = vpop.xlane.xlu1 %1435 }
 0x52a   : > { %v1427_v14 = vpop.xlane.xlu0 %1426  ;;  %v1218_v15 = vadd.f32 %v3123_v11, %v3121_v7  ;;  %3134 = vpow2.f32 %v1351_v8  ;;  %v1437_v16 = vmul.f32 0.25, %v1436_v13 }
 0x52b   : > { %v1428_v17 = vmul.f32 0.25, %v1427_v14  ;;  %3136 = vpow2.f32 %v1354_v9  ;;  %v1396_v18 = vsub.f32 %v1385_v6, %v1395_v12  ;;  %v1399_v19 = vsub.f32 %v1394_v5, %v1395_v12 }
 0x52c   : > { %3138 = vrcp.f32 %v1218_v15 }
 0x52d   : > { %v1438_v20 = vmax.f32 %v1428_v17, %v1437_v16  ;;  %v3125_v21 = vpop.eup %3124  ;;  %v1397_v22 = vmul.f32 1.442695, %v1396_v18  ;;  %v1400_v23 = vmul.f32 1.442695, %v1399_v19  ;;  %v1122_v24 = vpop.xlane.xlu1 %1121 }
 0x52e   : > { %v1113_v26 = vpop.xlane.xlu0 %1112  ;;  %v3127_v27 = vpop.eup %3126  ;;  %v1123_v30 = vmul.f32 0.25, %v1122_v24 }
 0x52f   : > { %v1439_v28 = vsub.f32 %v1428_v17, %v1438_v20  ;;  %v1442_v29 = vsub.f32 %v1437_v16, %v1438_v20  ;;  %v1114_v31 = vmul.f32 0.25, %v1113_v26  ;;  %v1264_v32 = vadd.f32 %v3127_v27, %v3125_v21 }
 0x530   : > { %3140 = vpow2.f32 %v1397_v22  ;;  %v3129_v33 = vpop.eup %3128 }
 0x531   : > { %3142 = vpow2.f32 %v1400_v23  ;;  %v1440_v34 = vmul.f32 1.442695, %v1439_v28  ;;  %v1443_v35 = vmul.f32 1.442695, %v1442_v29  ;;  %v1124_v36 = vmax.f32 %v1114_v31, %v1123_v30  ;;  %v3131_v37 = vpop.eup %3130  ;;  %v3083_v28 = vld [vmem:[%s4798_s10 + $0x8] sm:$0xff]  }
 0x532   : > { %3144 = vrcp.f32 %v1264_v32  ;;  %v3133_v38 = vpop.eup %3132  ;;  %v1310_v39 = vadd.f32 %v3131_v37, %v3129_v33 }
 0x533   : > { %3146 = vpow2.f32 %v1440_v34  ;;  %v1125_v40 = vsub.f32 %v1114_v31, %v1124_v36  ;;  %v1128_v41 = vsub.f32 %v1123_v30, %v1124_v36  ;;  %v1176_v42 = vmul.f32 %v3133_v38, %v3119_v62  ;;  %v3084_v30 = vld [vmem:[%s4798_s10 + $0x10] sm:$0xff]  }
 0x534   : > { %3148 = vpow2.f32 %v1443_v35  ;;  %v4401_v43 = vmul.f32 %v3133_v38, %v3117_v58  ;;  %v3135_v44 = vpop.eup %3134 }
 0x535   : > { %3150 = vrcp.f32 %v1310_v39  ;;  %v1126_v46 = vmul.f32 1.442695, %v1125_v40  ;;  %v1129_v47 = vmul.f32 1.442695, %v1128_v41  ;;  %v3137_v48 = vpop.eup %3136  ;;  %v1177_v49 = vmul.f32 %v1176_v42, %v4403_v45  ;;  %v3087_v42 = vld [vmem:[%s4798_s10 + $0x28] sm:$0xff]  }
 0x536   : > { %v3139_v50 = vpop.eup %3138  ;;  %v1356_v51 = vadd.f32 %v3137_v48, %v3135_v44  ;;  %v1175_v29 = vmul.f32 %v4401_v43, %v4403_v45 }
 0x537   : > { %3152 = vpow2.f32 %v1126_v46  ;;  %1179 = vrot.lane.b32.xlu0 %v1177_v49, %s3750_s27  ;;  %v1222_v52 = vmul.f32 %v3139_v50, %v3123_v11  ;;  %v1220_v53 = vmul.f32 %v3139_v50, %v3121_v7  ;;  %v3088_v46 = vld [vmem:[%s4798_s10 + $0x30] sm:$0xff]   ;;  %v3089_v50 = vld [vmem:[%s4798_s10 + $0x38] sm:$0xff]  }
 0x538   : > { %3154 = vpow2.f32 %v1129_v47 }
 0x539   : > { %3156 = vrcp.f32 %v1356_v51  ;;  %v1223_v55 = vmul.f32 %v1222_v52, %v4403_v45  ;;  %v1221_v34 = vmul.f32 %v1220_v53, %v4403_v45 }
 0x53a   : > { %v3141_v54 = vpop.eup %3140 }
 0x53b   : > { %v3143_v56 = vpop.eup %3142  ;;  %1225 = vrot.lane.b32.xlu1 %v1223_v55, %s3750_s27 }
 0x53c   : > { %v3145_v57 = vpop.eup %3144  ;;  %v1402_v58 = vadd.f32 %v3143_v56, %v3141_v54 }
 0x53d   : > { %v3147_v59 = vpop.eup %3146  ;;  %v1268_v60 = vmul.f32 %v3145_v57, %v3127_v27  ;;  %v1266_v61 = vmul.f32 %v3145_v57, %v3125_v21  ;;  %v3082_v27 = vld [vmem:[%s4798_s10] sm:$0xff]  }
 0x53e   : > { %v3149_v62 = vpop.eup %3148  ;;  %3158 = vrcp.f32 %v1402_v58  ;;  %2791 = vmatpush3.bf16.msra.mxu0 %v3082_v27  ;;  %v3092_v58 = vld [vmem:[%s4800_s2 + $0x8] sm:$0xff]  }
 0x53f   : > { %v3151_v63 = vpop.eup %3150  ;;  %v1445_v1 = vadd.f32 %v3149_v62, %v3147_v59  ;;  %v1269_v2 = vmul.f32 %v1268_v60, %v4403_v45  ;;  %2792 = vmatprep.subr.bf16.mxu0 %v3742_v0  ;;  %v1267_v38 = vmul.f32 %v1266_v61, %v4403_v45 }
 0x540   : > { %v1314_v3 = vmul.f32 %v3151_v63, %v3131_v37  ;;  %v1312_v4 = vmul.f32 %v3151_v63, %v3129_v33  ;;  %v3085_v33 = vld [vmem:[%s4798_s10 + $0x18] sm:$0xff]   ;;  %v3086_v37 = vld [vmem:[%s4798_s10 + $0x20] sm:$0xff]  }
 0x541   : > { %v3153_v5 = vpop.eup %3152  ;;  %3160 = vrcp.f32 %v1445_v1  ;;  %1271 = vrot.lane.b32.xlu1 %v1269_v2, %s3750_s27  ;;  %v3096_v63 = vld [vmem:[%s4800_s2 + $0x18] sm:$0xff]   ;;  %v3100_v1 = vld [vmem:[%s4800_s2 + $0x28] sm:$0xff]  }
 0x542   : > { %v3155_v6 = vpop.eup %3154  ;;  %v1315_v7 = vmul.f32 %v1314_v3, %v4403_v45  ;;  %2793 = vmatpush3.bf16.msra.mxu0 %v3083_v28  ;;  %v1313_v41 = vmul.f32 %v1312_v4, %v4403_v45 }
 0x543   : > { %v3157_v8 = vpop.eup %3156  ;;  %v1131_v9 = vadd.f32 %v3155_v6, %v3153_v5  ;;  %2794 = vmatprep.subr.bf16.mxu0 %v3742_v0 }
 0x544   : > { %1317 = vrot.lane.b32.xlu0 %v1315_v7, %s3750_s27  ;;  %v1360_v11 = vmul.f32 %v3157_v8, %v3137_v48  ;;  %v1358_v12 = vmul.f32 %v3157_v8, %v3135_v44 }
 0x545   : > { %3162 = vrcp.f32 %v1131_v9 }
 0x546   : > { %v1361_v13 = vmul.f32 %v1360_v11, %v4403_v45  ;;  %2795 = vmatpush3.bf16.msra.mxu0 %v3084_v30  ;;  %v1359_v47 = vmul.f32 %v1358_v12, %v4403_v45  ;;  %v3091_v11 = vld [vmem:[%s4801_s5] sm:$0xff]  }
 0x547   : > { %2796 = vmatprep.subr.bf16.mxu0 %v3742_v0 }
 0x548   : > { %v3159_v14 = vpop.eup %3158  ;;  %1363 = vrot.lane.b32.xlu1 %v1361_v13, %s3750_s27  ;;  %v3093_v13 = vld [vmem:[%s4801_s5 + $0x8] sm:$0xff]  }
 0x549   : > { %v1406_v15 = vmul.f32 %v3159_v14, %v3143_v56  ;;  %v1404_v16 = vmul.f32 %v3159_v14, %v3141_v54  ;;  %v3090_v56 = vld [vmem:[%s4800_s2] sm:$0xff]   ;;  %v3095_v14 = vld [vmem:[%s4801_s5 + $0x10] sm:$0xff]  }
 0x54a   : > { %2797 = vmatpush3.bf16.msra.mxu0 %v3085_v33  ;;  %2811 = vmatpush3.bf16.msra.mxu1 %v3090_v56  ;;  %v3107_v33 = vld [vmem:[#allocation24 + $0x8] sm:$0xff]  }
 0x54b   : > { %v3161_v17 = vpop.eup %3160  ;;  %v1407_v18 = vmul.f32 %v1406_v15, %v4403_v45  ;;  %2798 = vmatprep.subr.bf16.mxu0 %v3742_v0  ;;  %v1405_v51 = vmul.f32 %v1404_v16, %v4403_v45  ;;  %2812 = vmatprep.subr.bf16.mxu1 %v3742_v0  ;;  %v3097_v15 = vld [vmem:[%s4801_s5 + $0x18] sm:$0xff]   ;;  %v3099_v16 = vld [vmem:[%s4801_s5 + $0x20] sm:$0xff]  }
 0x54c   : > { %v1449_v19 = vmul.f32 %v3161_v17, %v3149_v62  ;;  %v1447_v20 = vmul.f32 %v3161_v17, %v3147_v59  ;;  %v3094_v62 = vld [vmem:[%s4800_s2 + $0x10] sm:$0xff]   ;;  %v3101_v17 = vld [vmem:[%s4801_s5 + $0x28] sm:$0xff]  }
 0x54d   : > { %1409 = vrot.lane.b32.xlu0 %v1407_v18, %s3750_s27  ;;  %v3102_v18 = vld [vmem:[%s4800_s2 + $0x30] sm:$0xff]  }
 0x54e   : > { %v1450_v21 = vmul.f32 %v1449_v19, %v4403_v45  ;;  %2799 = vmatpush3.bf16.msra.mxu0 %v3086_v37  ;;  %v1448_v54 = vmul.f32 %v1447_v20, %v4403_v45  ;;  %2813 = vmatpush3.bf16.msra.mxu1 %v3092_v58  ;;  %v3103_v19 = vld [vmem:[%s4801_s5 + $0x30] sm:$0xff]   ;;  %v3104_v20 = vld [vmem:[%s4800_s2 + $0x38] sm:$0xff]  }
 0x54f   : > { %v3163_v22 = vpop.eup %3162  ;;  %2800 = vmatprep.subr.bf16.mxu0 %v3742_v0  ;;  %2814 = vmatprep.subr.bf16.mxu1 %v3742_v0  ;;  %v3112_v37 = vld [vmem:[#allocation24 + $0x30] sm:$0xff]  }
 0x550   : > { %1452 = vrot.lane.b32.xlu1 %v1450_v21, %s3750_s27  ;;  %v1135_v23 = vmul.f32 %v3163_v22, %v3155_v6  ;;  %v1133_v24 = vmul.f32 %v3163_v22, %v3153_v5  ;;  %v3105_v21 = vld [vmem:[%s4801_s5 + $0x38] sm:$0xff]  }
 0x552   : > { %v1136_v26 = vmul.f32 %v1135_v23, %v4403_v45  ;;  %2801 = vmatpush3.bf16.msra.mxu0 %v3087_v42  ;;  %v1134_v59 = vmul.f32 %v1133_v24, %v4403_v45  ;;  %2815 = vmatpush3.bf16.msra.mxu1 %v3094_v62  ;;  %v3098_v45 = vld [vmem:[%s4800_s2 + $0x20] sm:$0xff]   ;;  %v2672_v23 = vld [vmem:[#allocation20] ss:$0 sm:$0xff] }
 0x553   : > { %2802 = vmatprep.subr.bf16.mxu0 %v3742_v0  ;;  %2816 = vmatprep.subr.bf16.mxu1 %v3742_v0 }
 0x554   : > { %1138 = vrot.lane.b32.xlu0 %v1136_v26, %s3750_s27 }
 0x556   : > { %2803 = vmatpush3.bf16.msra.mxu0 %v3088_v46  ;;  %2817 = vmatpush3.bf16.msra.mxu1 %v3096_v63 }
 0x557   : > { %2804 = vmatprep.subr.bf16.mxu0 %v3742_v0  ;;  %2818 = vmatprep.subr.bf16.mxu1 %v3742_v0 }
 0x55a   : > { %2805 = vmatpush3.bf16.msra.mxu0 %v3089_v50  ;;  %2819 = vmatpush3.bf16.msra.mxu1 %v3098_v45 }
 0x55b   : > { %2830 = vmatprep.subr.bf16.mxu0 %v3742_v0  ;;  %2820 = vmatprep.subr.bf16.mxu1 %v3742_v0 }
 0x55e   : > { %2821 = vmatpush3.bf16.msra.mxu1 %v3100_v1 }
 0x55f   : > { %2822 = vmatprep.subr.bf16.mxu1 %v3742_v0 }
 0x562   : > { %2823 = vmatpush3.bf16.msra.mxu1 %v3102_v18 }
 0x563   : > { %2824 = vmatprep.subr.bf16.mxu1 %v3742_v0 }
 0x566   : > { %2825 = vmatpush3.bf16.msra.mxu1 %v3104_v20 }
 0x567   : > { %2850 = vmatprep.subr.bf16.mxu1 %v3742_v0 }
 0x5a9   : > { %v1180_v31 = vpop.permute.xlu0 %1179 }
 0x5aa   : > { %v1182_v32 = vadd.f32 %v1180_v31, %v1175_v29  ;;  %v3106_v31 = vld [vmem:[#allocation24] sm:$0xff]  }
 0x5ac   : > { %1184 = vrot.lane.b32.xlu1 %v1182_v32, %s4737_s28  ;;  %s4802_s28 = smov 16  }
 0x5ad   : > { %v1226_v35 = vpop.permute.xlu1 %1225 }
 0x5ae   : > { %v1228_v36 = vadd.f32 %v1226_v35, %v1221_v34  ;;  %v3109_v34 = vld [vmem:[#allocation24 + $0x18] sm:$0xff]   ;;  %v3110_v35 = vld [vmem:[#allocation24 + $0x20] sm:$0xff]  }
 0x5b0   : > { %1230 = vrot.lane.b32.xlu0 %v1228_v36, %s4729_s13  ;;  %v3111_v36 = vld [vmem:[#allocation24 + $0x28] sm:$0xff]   ;;  %s4803_s13 = smov 80  }
 0x5b3   : > { %v1272_v39 = vpop.permute.xlu1 %1271 }
 0x5b4   : > { %v1274_v40 = vadd.f32 %v1272_v39, %v1267_v38  ;;  %v3113_v38 = vld [vmem:[#allocation24 + $0x38] sm:$0xff]  }
 0x5b5   : > { %v2673_v39 = vld [vmem:[#allocation21] ss:$0 sm:$0xff] }
 0x5b6   : > { %1276 = vrot.lane.b32.xlu1 %v1274_v40, %s4733_s30  ;;  %v1318_v43 = vpop.permute.xlu0 %1317  ;;  %v2682_v40 = vld [vmem:[#allocation23] ss:$0 sm:$0xff] }
 0x5b7   : > { %v1320_v44 = vadd.f32 %v1318_v43, %v1313_v41 }
 0x5b9   : > { %1322 = vrot.lane.b32.xlu0 %v1320_v44, %s4731_s22  ;;  %s826_s22 = scalar_lea.vmem [#allocation30], %s4273_s24  ;;  %s3751_s24 = smov [#allocation30]  }
 0x5ba   : > { %v1364_v48 = vpop.permute.xlu1 %1363  ;;  %s2398_s30 = sshll.u32 %s826_s22, 4  ;;  %s4644_s30 = int_to_ptr.vmem [resolvable:$true] %s2398_s30 }
 0x5bb   : > { %v1366_v49 = vadd.f32 %v1364_v48, %v1359_v47 }
 0x5bd   : > { %1368 = vrot.lane.b32.xlu1 %v1366_v49, %s4735_s7  ;;  %s2706_s7 = sshll.u32 %s4782_s9, 7  ;;  %s3629_s9 = sshll.u32 %s3751_s24, 4  ;;  %s3630_s9 = int_to_ptr.vmem [resolvable:$false] %s3629_s9 }
 0x5be   : > { %p3632_p13 = scmp.lt.s32.totalorder %s4644_s30, %s3630_s9 }
 0x5bf   : > { %v1410_v52 = vpop.permute.xlu0 %1409 }
 0x5c0   : > { %v1412_v53 = vadd.f32 %v1410_v52, %v1405_v51 }
 0x5c2   : > { %1414 = vrot.lane.b32.xlu0 %v1412_v53, %s4799_s0  ;;  %v1453_v55 = vpop.permute.xlu1 %1452 }
 0x5c3   : > { %v1455_v57 = vadd.f32 %v1453_v55, %v1448_v54  ;;  %v2691_v55 = vld [vmem:[#allocation26] ss:$0 sm:$0xff] }
 0x5c5   : > { %1457 = vrot.lane.b32.xlu1 %v1455_v57, %s3750_s27 }
 0x5c6   : > { %v1139_v60 = vpop.permute.xlu0 %1138 }
 0x5c7   : > { %v1141_v61 = vadd.f32 %v1139_v60, %v1134_v59 }
 0x5c9   : > { %1142 = vst.msk [vmem:[#allocation5] sm:$0xff] %vm1110_vm3, %v1141_v61 }
 0x61e   : > { %v1185_v2 = vpop.permute.xlu1 %1184 }
 0x61f   : > { %1188 = vst.msk [vmem:[#allocation5] sm:$0xff] %vm1187_vm4, %v1185_v2 }
 0x622   : > { %v1231_v3 = vpop.permute.xlu0 %1230 }
 0x623   : > { %1234 = vst.msk [vmem:[#allocation5] sm:$0xff] %vm1233_vm5, %v1231_v3 }
 0x628   : > { %v1277_v4 = vpop.permute.xlu1 %1276 }
 0x629   : > { %1280 = vst.msk [vmem:[#allocation5] sm:$0xff] %vm1279_vm6, %v1277_v4 }
 0x62b   : > { %v1323_v5 = vpop.permute.xlu0 %1322 }
 0x62c   : > { %1326 = vst.msk [vmem:[#allocation5] sm:$0xff] %vm1325_vm7, %v1323_v5 }
 0x62f   : > { %v1369_v6 = vpop.permute.xlu1 %1368 }
 0x630   : > { %1372 = vst.msk [vmem:[#allocation5] sm:$0xff] %vm1371_vm8, %v1369_v6 }
 0x634   : > { %v1415_v7 = vpop.permute.xlu0 %1414 }
 0x635   : > { %1418 = vst.msk [vmem:[#allocation5] sm:$0xff] %vm1417_vm9, %v1415_v7 }
 0x637   : > { %v1458_v8 = vpop.permute.xlu1 %1457 }
 0x638   : > { %1461 = vst.msk [vmem:[#allocation5] sm:$0xff] %vm1460_vm10, %v1458_v8 }
 0x63f   : > { %v1462_v9 = vld [vmem:[#allocation5] sm:$0xff] }
 0x640   : > { %v1463_v12 = vpack.c.bf16 %v1462_v9, %v1462_v9 }
 0x642   : > { %2807 = vmatmul.mubr.bf16.vlgmr.msra.gmra.mrb[8].mxu0 %v1463_v12 }
 0x643   : > { %2831 = vmatpush3.bf16.msra.mxu0 %v3091_v11  ;;  %2846 = vmatprep.mubr.msk.bf16.mxu0 %vm3743_vm0, %v3742_v0 }
 0x644   : > { %2832 = vmatprep.subr.bf16.mxu0 %v3742_v0 }
 0x647   : > { %2833 = vmatpush3.bf16.msra.mxu0 %v3093_v13 }
 0x648   : > { %2834 = vmatprep.subr.bf16.mxu0 %v3742_v0 }
 0x64b   : > { %2835 = vmatpush3.bf16.msra.mxu0 %v3095_v14 }
 0x64c   : > { %2836 = vmatprep.subr.bf16.mxu0 %v3742_v0 }
 0x64f   : > { %2837 = vmatpush3.bf16.msra.mxu0 %v3097_v15 }
 0x650   : > { %2838 = vmatprep.subr.bf16.mxu0 %v3742_v0 }
 0x653   : > { %2839 = vmatpush3.bf16.msra.mxu0 %v3099_v16 }
 0x654   : > { %2840 = vmatprep.subr.bf16.mxu0 %v3742_v0 }
 0x657   : > { %2841 = vmatpush3.bf16.msra.mxu0 %v3101_v17 }
 0x658   : > { %2842 = vmatprep.subr.bf16.mxu0 %v3742_v0 }
 0x65b   : > { %2843 = vmatpush3.bf16.msra.mxu0 %v3103_v19 }
 0x65c   : > { %2844 = vmatprep.subr.bf16.mxu0 %v3742_v0 }
 0x65f   : > { %2845 = vmatpush3.bf16.msra.mxu0 %v3105_v21 }
 0x660   : > { %2870 = vmatprep.subr.bf16.mxu0 %v3742_v0 }
 0x715   : > { %v1562_v22 = vpop.f32.mrb[8].mxu0 }
 0x716   : > { %v1568_v24 = vadd.f32 %v1562_v22, %v4347_v25  ;;  %v2808_v26 = vpop.f32.mrb[9].mxu0  ;;  %v3108_v25 = vld [vmem:[#allocation24 + $0x10] sm:$0xff]  }
 0x717   : > { %v1565_v27 = vpop.f32.mrb[10].mxu0 }
 0x718   : > { %v1576_v28 = vadd.f32 %v2672_v23, %v1568_v24  ;;  %v2809_v29 = vpop.f32.mrb[11].mxu0 }
 0x71a   : > { %v1577_v30 = vmax.f32 %v1576_v28, 0.0 }
 0x71c   : > { %v1578_v32 = vpack.c.bf16 %v1577_v30, %v1577_v30 }
 0x71e   : > { %2827 = vmatmul.mubr.bf16.vlgmr.msra.gmra.mrb[8].mxu1 %v1578_v32  ;;  %2847 = vmatmul.mubr.bf16.vlgmr.msra.gmra.mrb[12].mxu0 %v1578_v32 }
 0x71f   : > { %2851 = vmatpush3.bf16.msra.mxu1 %v3106_v31  ;;  %2866 = vmatprep.mubr.msk.bf16.mxu1 %vm3743_vm0, %v3742_v0 }
 0x720   : > { %2852 = vmatprep.subr.bf16.mxu1 %v3742_v0  ;;  %2874 = vmatprep.mubr.msk.bf16.mxu0 %vm3743_vm0, %v3742_v0 }
 0x723   : > { %2853 = vmatpush3.bf16.msra.mxu1 %v3107_v33 }
 0x724   : > { %2854 = vmatprep.subr.bf16.mxu1 %v3742_v0 }
 0x727   : > { %2855 = vmatpush3.bf16.msra.mxu1 %v3108_v25 }
 0x728   : > { %2856 = vmatprep.subr.bf16.mxu1 %v3742_v0 }
 0x72b   : > { %2857 = vmatpush3.bf16.msra.mxu1 %v3109_v34 }
 0x72c   : > { %2858 = vmatprep.subr.bf16.mxu1 %v3742_v0 }
 0x72f   : > { %2859 = vmatpush3.bf16.msra.mxu1 %v3110_v35 }
 0x730   : > { %2860 = vmatprep.subr.bf16.mxu1 %v3742_v0 }
 0x733   : > { %2861 = vmatpush3.bf16.msra.mxu1 %v3111_v36 }
 0x734   : > { %2862 = vmatprep.subr.bf16.mxu1 %v3742_v0 }
 0x737   : > { %2863 = vmatpush3.bf16.msra.mxu1 %v3112_v37 }
 0x738   : > { %2864 = vmatprep.subr.bf16.mxu1 %v3742_v0 }
 0x73b   : > { %2865 = vmatpush3.bf16.msra.mxu1 %v3113_v38 }
 0x73c   : > { %2878 = vmatprep.subr.mxu1 %v3742_v0 }
 0x73e   : > { %2867 = vmatmul.mubr.bf16.vlgmr.msra.gmra.mrb[12].mxu1 %v1578_v32 }
 0x73f   : > { %2880 = vmatprep.mubr.msk.f32.mxu1 %vm3743_vm0, %v3742_v0 }
 0x7f1   : > { %v1684_v41 = vpop.f32.mrb[8].mxu1  ;;  %v1796_v42 = vpop.f32.mrb[12].mxu0 }
 0x7f2   : > { %v4552_v43 = vadd.f32 %v2673_v39, %v1684_v41  ;;  %v1797_v44 = vadd.f32 %v2682_v40, %v1796_v42  ;;  %v2828_v46 = vpop.f32.mrb[9].mxu1  ;;  %v2848_v47 = vpop.f32.mrb[13].mxu0 }
 0x7f3   : > { %v1687_v48 = vpop.f32.mrb[10].mxu1  ;;  %v1799_v49 = vpop.f32.mrb[14].mxu0 }
 0x7f4   : > { %v1690_v50 = vmax.f32 %v4552_v43, 0.0  ;;  %1915 = vst [vmem:[#allocation3] sm:$0xff] %v1797_v44  ;;  %v2829_v51 = vpop.f32.mrb[11].mxu1  ;;  %v2849_v52 = vpop.f32.mrb[15].mxu0  ;;  %1926 = vrot.lane.b32.xlu1 %v1797_v44, %s3750_s27  ;;  %1974 = vrot.lane.b32.xlu0 %v1797_v44, %s4802_s28 }
 0x7f6   : > { %1914 = vst.msk [vmem:[#allocation2] sm:$0xff] %vm931_vm2, %v1690_v50 }
 0x7f8   : > { %1942 = vrot.lane.b32.xlu1 %v1797_v44, %s4803_s13  ;;  %1934 = vrot.lane.b32.xlu0 %v1797_v44, %s4799_s0 }
 0x7fc   : > { %1958 = vrot.lane.b32.xlu1 %v1797_v44, %s4804_s29  ;;  %1950 = vrot.lane.b32.xlu0 %v1797_v44, %s4805_s6 }
 0x7fd   : > { %v2073_v53 = vld [vmem:[#allocation2] sm:$0xff] }
 0x7fe   : > { %v2083_v54 = vmul.f32 %v2073_v53, %v1797_v44 }
 0x800   : > { %1966 = vrot.lane.b32.xlu0 %v1797_v44, %s4806_s23  ;;  %v1921_v62 = vsel %vm1110_vm3, %v2083_v54, 0.0 }
 0x804   : > { %2085 = vrot.lane.b32.xlu0 %v2083_v54, %s3750_s27 }
 0x811   : > { %v1907_v56 = vpop.f32.mrb[12].mxu1 }
 0x812   : > { %v1908_v57 = vadd.f32 %v2691_v55, %v1907_v56  ;;  %v2868_v58 = vpop.f32.mrb[13].mxu1 }
 0x813   : > { %v1910_v59 = vpop.f32.mrb[14].mxu1 }
 0x814   : > { %v4566_v60 = vmax.f32 %v1908_v57, 0.0  ;;  %v2869_v61 = vpop.f32.mrb[15].mxu1 }
 0x816   : > { %1916 = vst [vmem:[#allocation4] sm:$0xff] %v4566_v60 }
 0x820   : > { %1922 = vadd.xlane.f32.xlu1 %v1921_v62 }
 0x866   : > { %v1927_v63 = vpop.permute.xlu1 %1926  ;;  %v1975_v45 = vpop.permute.xlu0 %1974 }
 0x867   : > { %v2074_v1 = vmul.f32 %v2073_v53, %v1975_v45  ;;  %v2092_v4 = vmul.f32 %v2073_v53, %v1927_v63 }
 0x869   : > { %2076 = vrot.lane.b32.xlu0 %v2074_v1, %s3750_s27  ;;  %v1978_v19 = vsel %vm1110_vm3, %v2074_v1, 0.0  ;;  %v1930_v20 = vsel %vm1110_vm3, %v2092_v4, 0.0 }
 0x86a   : > { %v1943_v2 = vpop.permute.xlu1 %1942  ;;  %v1935_v3 = vpop.permute.xlu0 %1934 }
 0x86b   : > { %v1937_v5 = vmul.f32 %v2073_v53, %v1935_v3  ;;  %v1945_v6 = vmul.f32 %v2073_v53, %v1943_v2 }
 0x86d   : > { %2094 = vrot.lane.b32.xlu0 %v2092_v4, %s3750_s27  ;;  %v1938_v7 = vsel %vm1110_vm3, %v1937_v5, 0.0  ;;  %v1946_v11 = vsel %vm1110_vm3, %v1945_v6, 0.0 }
 0x86e   : > { %v1951_v8 = vpop.permute.xlu0 %1950  ;;  %1939 = vadd.xlane.f32.xlu1 %v1938_v7  ;;  %v1959_v12 = vpop.permute.xlu1 %1958 }
 0x86f   : > { %v1953_v9 = vmul.f32 %v2073_v53, %v1951_v8  ;;  %v1961_v13 = vmul.f32 %v2073_v53, %v1959_v12 }
 0x871   : > { %2103 = vrot.lane.b32.xlu0 %v1937_v5, %s3750_s27  ;;  %v1954_v14 = vsel %vm1110_vm3, %v1953_v9, 0.0  ;;  %v1962_v17 = vsel %vm1110_vm3, %v1961_v13, 0.0 }
 0x872   : > { %1947 = vadd.xlane.f32.xlu1 %v1946_v11  ;;  %v1967_v15 = vpop.permute.xlu0 %1966 }
 0x873   : > { %v1969_v16 = vmul.f32 %v2073_v53, %v1967_v15 }
 0x875   : > { %2112 = vrot.lane.b32.xlu0 %v1945_v6, %s3750_s27  ;;  %v1970_v18 = vsel %vm1110_vm3, %v1969_v16, 0.0 }
 0x876   : > { %1955 = vadd.xlane.f32.xlu1 %v1954_v14  ;;  %v2086_v21 = vpop.permute.xlu0 %2085 }
 0x877   : > { %v2088_v22 = vsel %vm1110_vm3, %v2086_v21, 0.0 }
 0x879   : > { %2121 = vrot.lane.b32.xlu0 %v1953_v9, %s3750_s27 }
 0x87a   : > { %1963 = vadd.xlane.f32.xlu1 %v1962_v17 }
 0x87d   : > { %2130 = vrot.lane.b32.xlu0 %v1961_v13, %s3750_s27 }
 0x87e   : > { %1971 = vadd.xlane.f32.xlu1 %v1970_v18 }
 0x881   : > { %2139 = vrot.lane.b32.xlu0 %v1969_v16, %s3750_s27 }
 0x882   : > { %1979 = vadd.xlane.f32.xlu1 %v1978_v19 }
 0x8a0   : > { %1931 = vadd.xlane.f32.xlu0 %v1930_v20 }
 0x8a4   : > { %2089 = vadd.xlane.f32.xlu0 %v2088_v22 }
 0x8ad   : > { %v1923_v37 = vpop.xlane.xlu1 %1922 }
 0x8ae   : > { %v1924_v44 = vmul.f32 0.25, %v1923_v37 }
 0x8db   : > { %v2077_v23 = vpop.permute.xlu0 %2076 }
 0x8dc   : > { %v2079_v24 = vsel %vm1110_vm3, %v2077_v23, 0.0 }
 0x8dd   : > { %2080 = vadd.xlane.f32.xlu0 %v2079_v24 }
 0x8df   : > { %v2095_v26 = vpop.permute.xlu0 %2094 }
 0x8e0   : > { %v2097_v27 = vsel %vm1110_vm3, %v2095_v26, 0.0 }
 0x8e1   : > { %2098 = vadd.xlane.f32.xlu0 %v2097_v27 }
 0x8e3   : > { %v2104_v28 = vpop.permute.xlu0 %2103 }
 0x8e4   : > { %v2106_v29 = vsel %vm1110_vm3, %v2104_v28, 0.0 }
 0x8e5   : > { %2107 = vadd.xlane.f32.xlu1 %v2106_v29 }
 0x8e7   : > { %v2113_v30 = vpop.permute.xlu0 %2112 }
 0x8e8   : > { %v2115_v31 = vsel %vm1110_vm3, %v2113_v30, 0.0 }
 0x8e9   : > { %2116 = vadd.xlane.f32.xlu0 %v2115_v31 }
 0x8eb   : > { %v2122_v32 = vpop.permute.xlu0 %2121 }
 0x8ec   : > { %v2124_v33 = vsel %vm1110_vm3, %v2122_v32, 0.0 }
 0x8ed   : > { %2125 = vadd.xlane.f32.xlu0 %v2124_v33 }
 0x8ef   : > { %v2131_v25 = vpop.permute.xlu0 %2130 }
 0x8f0   : > { %v2133_v34 = vsel %vm1110_vm3, %v2131_v25, 0.0 }
 0x8f1   : > { %2134 = vadd.xlane.f32.xlu0 %v2133_v34 }
 0x8f3   : > { %v2140_v35 = vpop.permute.xlu0 %2139 }
 0x8f4   : > { %v2142_v36 = vsel %vm1110_vm3, %v2140_v35, 0.0 }
 0x8f5   : > { %2143 = vadd.xlane.f32.xlu0 %v2142_v36 }
 0x8fb   : > { %v1940_v38 = vpop.xlane.xlu1 %1939 }
 0x8fc   : > { %v1941_v47 = vmul.f32 0.25, %v1940_v38 }
 0x8ff   : > { %v1948_v39 = vpop.xlane.xlu1 %1947 }
 0x900   : > { %v1949_v51 = vmul.f32 0.25, %v1948_v39 }
 0x903   : > { %v1956_v40 = vpop.xlane.xlu1 %1955 }
 0x904   : > { %v1957_v53 = vmul.f32 0.25, %v1956_v40 }
 0x907   : > { %v1964_v41 = vpop.xlane.xlu1 %1963 }
 0x908   : > { %v1965_v55 = vmul.f32 0.25, %v1964_v41 }
 0x90b   : > { %v1972_v49 = vpop.xlane.xlu1 %1971 }
 0x90c   : > { %v1973_v58 = vmul.f32 0.25, %v1972_v49 }
 0x90f   : > { %v1980_v57 = vpop.xlane.xlu1 %1979 }
 0x910   : > { %v1981_v61 = vmul.f32 0.25, %v1980_v57 }
 0x92d   : > { %v1932_v42 = vpop.xlane.xlu0 %1931 }
 0x92e   : > { %v1933_v46 = vmul.f32 0.25, %v1932_v42 }
 0x930   : > { %v1982_v48 = vmax.f32 %v1924_v44, %v1933_v46 }
 0x931   : > { %v2090_v35 = vpop.xlane.xlu0 %2089 }
 0x932   : > { %v1983_v52 = vmax.f32 %v1982_v48, %v1941_v47 }
 0x934   : > { %v1984_v54 = vmax.f32 %v1983_v52, %v1949_v51 }
 0x936   : > { %v1985_v56 = vmax.f32 %v1984_v54, %v1957_v53 }
 0x938   : > { %v1986_v59 = vmax.f32 %v1985_v56, %v1965_v55  ;;  %v2091_v56 = vmul.f32 0.25, %v2090_v35 }
 0x93a   : > { %v1987_v62 = vmax.f32 %v1986_v59, %v1973_v58 }
 0x93c   : > { %v1988_v63 = vmax.f32 %v1987_v62, %v1981_v61 }
 0x93e   : > { %v1989_v45 = vsub.f32 %v1924_v44, %v1988_v63  ;;  %v1992_v1 = vsub.f32 %v1933_v46, %v1988_v63  ;;  %v1995_v2 = vsub.f32 %v1941_v47, %v1988_v63  ;;  %v1998_v3 = vsub.f32 %v1949_v51, %v1988_v63 }
 0x93f   : > { %v2001_v7 = vsub.f32 %v1957_v53, %v1988_v63  ;;  %v2004_v9 = vsub.f32 %v1965_v55, %v1988_v63  ;;  %v2007_v12 = vsub.f32 %v1973_v58, %v1988_v63  ;;  %v2010_v14 = vsub.f32 %v1981_v61, %v1988_v63 }
 0x940   : > { %v1990_v4 = vmul.f32 1.442695, %v1989_v45  ;;  %v1993_v5 = vmul.f32 1.442695, %v1992_v1  ;;  %v1996_v6 = vmul.f32 1.442695, %v1995_v2 }
 0x941   : > { %v1999_v8 = vmul.f32 1.442695, %v1998_v3  ;;  %v2002_v11 = vmul.f32 1.442695, %v2001_v7  ;;  %v2005_v13 = vmul.f32 1.442695, %v2004_v9 }
 0x942   : > { %3164 = vpow2.f32 %v1990_v4  ;;  %v2008_v15 = vmul.f32 1.442695, %v2007_v12  ;;  %v2011_v16 = vmul.f32 1.442695, %v2010_v14 }
 0x943   : > { %3166 = vpow2.f32 %v1993_v5 }
 0x944   : > { %3168 = vpow2.f32 %v1996_v6 }
 0x945   : > { %3170 = vpow2.f32 %v1999_v8 }
 0x946   : > { %3172 = vpow2.f32 %v2002_v11 }
 0x947   : > { %3174 = vpow2.f32 %v2005_v13 }
 0x948   : > { %3176 = vpow2.f32 %v2008_v15 }
 0x949   : > { %3178 = vpow2.f32 %v2011_v16 }
 0x94c   : > { %v3165_v17 = vpop.eup %3164 }
 0x94d   : > { %v3167_v18 = vpop.eup %3166 }
 0x94e   : > { %v2013_v19 = vadd.f32 %v3167_v18, %v3165_v17  ;;  %v3169_v20 = vpop.eup %3168 }
 0x94f   : > { %v3171_v22 = vpop.eup %3170 }
 0x950   : > { %v2014_v21 = vadd.f32 %v3169_v20, %v2013_v19  ;;  %v3173_v24 = vpop.eup %3172 }
 0x951   : > { %v3175_v27 = vpop.eup %3174 }
 0x952   : > { %v2015_v23 = vadd.f32 %v3171_v22, %v2014_v21  ;;  %v3177_v29 = vpop.eup %3176 }
 0x953   : > { %v3179_v31 = vpop.eup %3178 }
 0x954   : > { %v2016_v26 = vadd.f32 %v3173_v24, %v2015_v23 }
 0x956   : > { %v2017_v28 = vadd.f32 %v3175_v27, %v2016_v26 }
 0x958   : > { %v2018_v30 = vadd.f32 %v3177_v29, %v2017_v28 }
 0x95a   : > { %v2019_v32 = vadd.f32 %v3179_v31, %v2018_v30 }
 0x95c   : > { %3180 = vrcp.f32 %v2019_v32 }
 0x966   : > { %v3181_v33 = vpop.eup %3180 }
 0x967   : > { %v2030_v25 = vmul.f32 %v3181_v33, %v3169_v20  ;;  %v2023_v34 = vmul.f32 %v3181_v33, %v3167_v18  ;;  %v4592_v36 = vmul.f32 %v3181_v33, %v3165_v17  ;;  %v2044_v39 = vmul.f32 %v3181_v33, %v3173_v24 }
 0x968   : > { %v2037_v40 = vmul.f32 %v3181_v33, %v3171_v22  ;;  %v2051_v46 = vmul.f32 %v3181_v33, %v3175_v27  ;;  %v2058_v48 = vmul.f32 %v3181_v33, %v3177_v29  ;;  %v2065_v53 = vmul.f32 %v3181_v33, %v3179_v31 }
 0x969   : > { %v2031_v37 = vmul.f32 %v2030_v25, %v4566_v60  ;;  %v2024_v38 = vmul.f32 %v2023_v34, %v4566_v60  ;;  %v2045_v42 = vmul.f32 %v2044_v39, %v4566_v60 }
 0x96a   : > { %v2081_v41 = vpop.xlane.xlu0 %2080  ;;  %v2038_v44 = vmul.f32 %v2037_v40, %v4566_v60  ;;  %v2052_v47 = vmul.f32 %v2051_v46, %v4566_v60  ;;  %v2059_v52 = vmul.f32 %v2058_v48, %v4566_v60  ;;  %v2066_v61 = vmul.f32 %v2065_v53, %v4566_v60 }
 0x96b   : > { %2033 = vrot.lane.b32.xlu0 %v2031_v37, %s4799_s0  ;;  %2026 = vrot.lane.b32.xlu1 %v2024_v38, %s3750_s27  ;;  %v2082_v51 = vmul.f32 0.25, %v2081_v41 }
 0x96d   : > { %v2146_v58 = vmax.f32 %v2082_v51, %v2091_v56 }
 0x96e   : > { %v2099_v49 = vpop.xlane.xlu0 %2098 }
 0x96f   : > { %2047 = vrot.lane.b32.xlu0 %v2045_v42, %s4805_s6  ;;  %2040 = vrot.lane.b32.xlu1 %v2038_v44, %s4803_s13  ;;  %v2100_v57 = vmul.f32 0.25, %v2099_v49 }
 0x971   : > { %v2147_v63 = vmax.f32 %v2146_v58, %v2100_v57 }
 0x972   : > { %v2108_v54 = vpop.xlane.xlu1 %2107 }
 0x973   : > { %2054 = vrot.lane.b32.xlu0 %v2052_v47, %s4804_s29  ;;  %v2109_v59 = vmul.f32 0.25, %v2108_v54 }
 0x975   : > { %v2148_v1 = vmax.f32 %v2147_v63, %v2109_v59 }
 0x976   : > { %v2117_v55 = vpop.xlane.xlu0 %2116 }
 0x977   : > { %2061 = vrot.lane.b32.xlu0 %v2059_v52, %s4806_s23  ;;  %v2118_v45 = vmul.f32 0.25, %v2117_v55 }
 0x979   : > { %v2149_v4 = vmax.f32 %v2148_v1, %v2118_v45 }
 0x97a   : > { %v2126_v62 = vpop.xlane.xlu0 %2125 }
 0x97b   : > { %2068 = vrot.lane.b32.xlu0 %v2066_v61, %s4802_s28  ;;  %v2127_v2 = vmul.f32 0.25, %v2126_v62 }
 0x97d   : > { %v2150_v6 = vmax.f32 %v2149_v4, %v2127_v2 }
 0x97e   : > { %v2135_v3 = vpop.xlane.xlu0 %2134 }
 0x97f   : > { %v2136_v5 = vmul.f32 0.25, %v2135_v3 }
 0x981   : > { %v2151_v8 = vmax.f32 %v2150_v6, %v2136_v5 }
 0x982   : > { %v2144_v7 = vpop.xlane.xlu0 %2143 }
 0x983   : > { %v2145_v9 = vmul.f32 0.25, %v2144_v7 }
 0x985   : > { %v2152_v11 = vmax.f32 %v2151_v8, %v2145_v9 }
 0x987   : > { %v2153_v12 = vsub.f32 %v2082_v51, %v2152_v11  ;;  %v2156_v13 = vsub.f32 %v2091_v56, %v2152_v11  ;;  %v2159_v14 = vsub.f32 %v2100_v57, %v2152_v11  ;;  %v2162_v15 = vsub.f32 %v2109_v59, %v2152_v11 }
 0x988   : > { %v2165_v19 = vsub.f32 %v2118_v45, %v2152_v11  ;;  %v2168_v21 = vsub.f32 %v2127_v2, %v2152_v11  ;;  %v2171_v23 = vsub.f32 %v2136_v5, %v2152_v11  ;;  %v2174_v26 = vsub.f32 %v2145_v9, %v2152_v11 }
 0x989   : > { %v2154_v16 = vmul.f32 1.442695, %v2153_v12  ;;  %v2157_v17 = vmul.f32 1.442695, %v2156_v13  ;;  %v2160_v18 = vmul.f32 1.442695, %v2159_v14  ;;  %v2022_v45 = vmul.f32 %v4592_v36, %v4566_v60 }
 0x98a   : > { %v2163_v20 = vmul.f32 1.442695, %v2162_v15  ;;  %v2166_v22 = vmul.f32 1.442695, %v2165_v19  ;;  %v2169_v24 = vmul.f32 1.442695, %v2168_v21 }
 0x98b   : > { %3182 = vpow2.f32 %v2154_v16  ;;  %v2172_v27 = vmul.f32 1.442695, %v2171_v23  ;;  %v2175_v28 = vmul.f32 1.442695, %v2174_v26  ;;  %v3114_v19 = vld [vmem:[#allocation27] sm:$0xff]   ;;  %v3115_v23 = vld [vmem:[#allocation27 + $0x8] sm:$0xff]  }
 0x98c   : > { %3184 = vpow2.f32 %v2157_v17  ;;  %2871 = vmatpush3.bf16.msra.mxu0 %v3114_v19 }
 0x98d   : > { %3186 = vpow2.f32 %v2160_v18  ;;  %2872 = vmatprep.subr.bf16.mxu0 %v3742_v0 }
 0x98e   : > { %3188 = vpow2.f32 %v2163_v20 }
 0x98f   : > { %3190 = vpow2.f32 %v2166_v22 }
 0x990   : > { %3192 = vpow2.f32 %v2169_v24  ;;  %2873 = vmatpush3.bf16.msra.mxu0 %v3115_v23 }
 0x991   : > { %3194 = vpow2.f32 %v2172_v27 }
 0x992   : > { %3196 = vpow2.f32 %v2175_v28 }
 0x995   : > { %v3183_v29 = vpop.eup %3182 }
 0x996   : > { %v3185_v30 = vpop.eup %3184 }
 0x997   : > { %v2177_v31 = vadd.f32 %v3185_v30, %v3183_v29  ;;  %v3187_v32 = vpop.eup %3186 }
 0x998   : > { %v3189_v25 = vpop.eup %3188 }
 0x999   : > { %v2178_v33 = vadd.f32 %v3187_v32, %v2177_v31  ;;  %v3191_v35 = vpop.eup %3190 }
 0x99a   : > { %v3193_v38 = vpop.eup %3192 }
 0x99b   : > { %v2179_v34 = vadd.f32 %v3189_v25, %v2178_v33  ;;  %v3195_v40 = vpop.eup %3194 }
 0x99c   : > { %v3197_v42 = vpop.eup %3196 }
 0x99d   : > { %v2180_v37 = vadd.f32 %v3191_v35, %v2179_v34  ;;  %v2703_v34 = vld [vmem:[#allocation29] ss:$0 sm:$0xff] }
 0x99f   : > { %v2181_v39 = vadd.f32 %v3193_v38, %v2180_v37 }
 0x9a1   : > { %v2182_v41 = vadd.f32 %v3195_v40, %v2181_v39 }
 0x9a3   : > { %v2183_v44 = vadd.f32 %v3197_v42, %v2182_v41 }
 0x9a5   : > { %3198 = vrcp.f32 %v2183_v44 }
 0x9af   : > { %v3199_v46 = vpop.eup %3198 }
 0x9b0   : > { %v2194_v47 = vmul.f32 %v3199_v46, %v3187_v32  ;;  %v2187_v48 = vmul.f32 %v3199_v46, %v3185_v30  ;;  %v2185_v49 = vmul.f32 %v3199_v46, %v3183_v29  ;;  %v2208_v53 = vmul.f32 %v3199_v46, %v3191_v35 }
 0x9b1   : > { %v2201_v54 = vmul.f32 %v3199_v46, %v3189_v25  ;;  %v2222_v57 = vmul.f32 %v3199_v46, %v3195_v40  ;;  %v2215_v58 = vmul.f32 %v3199_v46, %v3193_v38  ;;  %v2229_v62 = vmul.f32 %v3199_v46, %v3197_v42  ;;  %v3200_v42 = vld [vmem:[%s4797_s8] sm:$0xff] }
 0x9b2   : > { %v2195_v51 = vmul.f32 %v2194_v47, %v4566_v60  ;;  %v2188_v52 = vmul.f32 %v2187_v48, %v4566_v60  ;;  %v2209_v55 = vmul.f32 %v2208_v53, %v4566_v60  ;;  %v2186_v16 = vmul.f32 %v2185_v49, %v4566_v60 }
 0x9b3   : > { %v2202_v56 = vmul.f32 %v2201_v54, %v4566_v60  ;;  %v2223_v59 = vmul.f32 %v2222_v57, %v4566_v60  ;;  %v2216_v61 = vmul.f32 %v2215_v58, %v4566_v60  ;;  %v2230_v63 = vmul.f32 %v2229_v62, %v4566_v60 }
 0x9b4   : > { %2197 = vrot.lane.b32.xlu0 %v2195_v51, %s4799_s0  ;;  %2190 = vrot.lane.b32.xlu1 %v2188_v52, %s3750_s27  ;;  %s3625_s27 = scalar_lea.vmem %s4644_s30, 128  ;;  %s3631_s0 = scalar_lea.vmem %s3630_s9, 256 }
 0x9b5   : > { %p3626_p11 = scmp.ne.s32.totalorder %s4644_s30, %s3625_s27  ;;  %p3633_p1 = scmp.lt.s32.totalorder %s3631_s0, %s3625_s27 }
 0x9b7   : > { %p3627_p4 = pnand %p3626_p11, %p4808_p8  ;;  %p3634_p3 = por %p3633_p1, %p3632_p13 }
 0x9b8   : > { %2211 = vrot.lane.b32.xlu0 %v2209_v55, %s4805_s6  ;;  %2204 = vrot.lane.b32.xlu1 %v2202_v56, %s4803_s13 }
 0x9b9   : > { %p3628_p12 = pneg %p3627_p4 }
 0x9bb   : > { %p3635_p2 = pnand %p3634_p3, %p3628_p12 }
 0x9bc   : > { %2225 = vrot.lane.b32.xlu0 %v2223_v59, %s4806_s23  ;;  %2218 = vrot.lane.b32.xlu1 %v2216_v61, %s4804_s29  ;;  %s4807_s29 = sld [smem:[#allocation58_spill]]  ;;  %s2385_s23 = scalar_lea.sflag [#allocation8], %s4270_s11 }
 0x9c0   : > { %2232 = vrot.lane.b32.xlu1 %v2230_v63, %s4802_s28 }
 0x9c2   : > { %s4642_s6 = scalar_lea.hbm %s4807_s29, %s2706_s7 }
 0x9dd   : > { %v2034_v1 = vpop.permute.xlu0 %2033  ;;  %v2027_v2 = vpop.permute.xlu1 %2026 }
 0x9de   : > { %v2029_v3 = vadd.f32 %v2027_v2, %v2022_v45 }
 0x9e0   : > { %v2036_v4 = vadd.f32 %v2034_v1, %v2029_v3 }
 0x9e1   : > { %v2048_v5 = vpop.permute.xlu0 %2047  ;;  %v2041_v6 = vpop.permute.xlu1 %2040 }
 0x9e2   : > { %v2043_v7 = vadd.f32 %v2041_v6, %v2036_v4 }
 0x9e4   : > { %v2050_v9 = vadd.f32 %v2048_v5, %v2043_v7 }
 0x9e5   : > { %v2055_v8 = vpop.permute.xlu0 %2054 }
 0x9e6   : > { %v2057_v12 = vadd.f32 %v2055_v8, %v2050_v9 }
 0x9e9   : > { %v2062_v11 = vpop.permute.xlu0 %2061 }
 0x9ea   : > { %v2064_v13 = vadd.f32 %v2062_v11, %v2057_v12 }
 0x9ed   : > { %v2069_v14 = vpop.permute.xlu0 %2068 }
 0x9ee   : > { %v2071_v15 = vadd.f32 %v2069_v14, %v2064_v13 }
 0x9f0   : > { %2072 = vst.msk [vmem:[#allocation5] sm:$0xff] %vm1110_vm3, %v2071_v15 }
 0xa26   : > { %v2198_v17 = vpop.permute.xlu0 %2197  ;;  %v2191_v36 = vpop.permute.xlu1 %2190 }
 0xa27   : > { %v2193_v18 = vadd.f32 %v2191_v36, %v2186_v16 }
 0xa29   : > { %v2200_v20 = vadd.f32 %v2198_v17, %v2193_v18 }
 0xa2a   : > { %v2212_v21 = vpop.permute.xlu0 %2211  ;;  %v2205_v22 = vpop.permute.xlu1 %2204 }
 0xa2b   : > { %v2207_v24 = vadd.f32 %v2205_v22, %v2200_v20 }
 0xa2d   : > { %v2214_v26 = vadd.f32 %v2212_v21, %v2207_v24 }
 0xa2e   : > { %v2219_v27 = vpop.permute.xlu1 %2218  ;;  %v2226_v29 = vpop.permute.xlu0 %2225 }
 0xa2f   : > { %v2221_v28 = vadd.f32 %v2219_v27, %v2214_v26 }
 0xa31   : > { %v2228_v30 = vadd.f32 %v2226_v29, %v2221_v28 }
 0xa32   : > { %v2233_v31 = vpop.permute.xlu1 %2232 }
 0xa33   : > { %v2235_v60 = vadd.f32 %v2233_v31, %v2228_v30 }
 0xa35   : > { %2237 = vrot.lane.b32.xlu0 %v2235_v60, %s4802_s28 }
 0xaa7   : > { %v2238_v32 = vpop.permute.xlu0 %2237 }
 0xaa8   : > { %2240 = vst.msk [vmem:[#allocation5] sm:$0xff] %vm1187_vm4, %v2238_v32 }
 0xaaf   : > { %v2241_v33 = vld [vmem:[#allocation5] sm:$0xff] }
 0xab0   : > { %v2242_v25 = vpack.c.bf16 %v2241_v33, %v2241_v33 }
 0xab2   : > { %2875 = vmatmul.mubr.msk.bf16.vlgmr.msra.gmra.mrb[16].mxu0 %vm931_vm2, %v2242_v25 }
 0xb85   : > { %v2296_v0 = vpop.f32.mrb[16].mxu0 }
 0xb86   : > { %v2302_v35 = vadd.f32 %v2296_v0, %v1690_v50  ;;  %v2876_v37 = vpop.f32.mrb[17].mxu0 }
 0xb87   : > { %v2299_v38 = vpop.f32.mrb[18].mxu0 }
 0xb88   : > { %v2310_v39 = vadd.f32 %v2703_v34, %v2302_v35  ;;  %v2877_v40 = vpop.f32.mrb[19].mxu0 }
 0xb8a   : > { %v2311_v41 = vadd.f32 %v2310_v39, %v4332_v10 }
 0xb8c   : > { %2879 = vmatpush3.msra.mxu1 %v2311_v41 }
 0xb8d   : > { %2881 = vmatmul.mubr.msk.f32.vlgmr.msra.gmra.mrb[16].mxu1 %vm832_vm1, %v3200_v42 }
 0xc60   : > { %v2378_v43 = vpop.f32.mrb[16].mxu1 }
 0xc61   : > { %v2382_v50 = vsub.f32 %v2311_v41, %v2378_v43  ;;  %v2882_v44 = vpop.f32.mrb[17].mxu1 }
 0xc63   : > { %2383 = vst.msk [vmem:[%s826_s22] sm:$0xff] %vm931_vm2, %v2382_v50 }
 0xc64   : > { %3638 = shalt.err (!%p3635_p2)
}
 0xc65   : > { %s3639_s11 = scalar_lea.hbm %s4642_s6, 128  ;;  %s3643_s28 = scalar_lea.hbm %s4807_s29, 256 }
 0xc66   : > { %p3640_p6 = scmp.ne.s32.totalorder %s4642_s6, %s3639_s11  ;;  %p3644_p9 = scmp.lt.u32.totalorder %s4642_s6, %s4807_s29 }
 0xc67   : > { %p3645_p0 = scmp.lt.u32.totalorder %s3643_s28, %s3639_s11  ;;  %p3647_p11 = scmp.lt.u32.totalorder %s3639_s11, %s4642_s6 }
 0xc68   : > { %p3641_p10 = pnand %p3640_p6, %p4808_p8 }
 0xc69   : > { %p3646_p7 = por %p3645_p0, %p3644_p9 }
 0xc6a   : > { %p3642_p5 = pneg %p3641_p10 }
 0xc6b   : > { %p3648_p4 = por %p3647_p11, %p3646_p7 }
 0xc6d   : > { %p3649_p12 = pnand %p3648_p4, %p3642_p5 }
 0xc6f   : > { %3652 = shalt.err (!%p3649_p12)
}
 0xc70   : > { %2939 = dma.vmem_to_hbm [thread:$0]  (%p4808_p8), %s4644_s30, 128, %s4642_s6, %s2385_s23  }
 0xc71 PF: > { %s4809_s27 = sld [smem:[#allocation41_spill]]  ;;  %p4810_p13 = scmp.ne.s32.totalorder %s4774_s19, 0 }
 0xc72   : > { %p4811_p1 = scmp.ge.s32.totalorder %s3723_s21, 2 }
 0xc74   : > { %p2989_p3 = pnand %p4811_p1, %p4810_p13 }
 0xc77   : > { %s2410_s9 = sand.u32 1, %s4809_s27  }
 0xc78   : > { %s2411_s0 = scalar_lea.sflag [#allocation8], %s2410_s9 }
 0xc79   : > { %3706 = dma.done.wait (!%p2989_p3), %s2411_s0, 128  }
 0xc7a   : > { %3708 = vsyncadd (!%p2989_p3), %s2411_s0, 4294967168  ;;  %s4812_s0 = sld [smem:[#allocation42_spill]]  ;;  %p41_p2 = scmp.ge.s32.totalorder %s4171_s3, 4  }
 0xc7b   : > { %s4813_s30 = smov %s3719_s20  ;;  %s4814_s20 = smov %s4183_s26 }
 0xc7c   : > { %s4815_s21 = smov %s4171_s3  ;;  %43 = sbr.rel (!%p41_p2) target bundleno = 28 (0x1c), region = 206 }
 0xc83   :  { %2416 = vsyncpa [#allocation7], 1 }
 0xc84   :  { %2418 = vsyncpa [#allocation7 + $0x1], 1 }
 0xc85   :  { %2419 = vsyncpa [#allocation10], 1 }
 0xc86   :  { %2421 = vsyncpa [#allocation10 + $0x1], 1 }
 0xc87   :  { %2422 = vsyncpa [#allocation13], 1 }
 0xc88   :  { %2423 = vsyncpa [#allocation16], 1 }
 0xc89   :  { %2424 = vsyncpa [#allocation19], 1 }
 0xc8a   :  { %2425 = vsyncpa [#allocation22], 1 }
 0xc8b   :  { %2426 = vsyncpa [#allocation25], 1 }
 0xc8c   :  { %2427 = vsyncpa [#allocation28], 1 }
 0xc8d   :  { %2428 = vsyncpa [#allocation8], 1 }
 0xc8e   :  { %2430 = vsyncpa [#allocation8 + $0x1], 1 }

</bundles_post_ra>
